<compile_context>
chip_gen: v6e
topology: v6e:2x2x1
jax: 0.10.0
libtpu: 0.0.40
codegen_flags: <defaults>
</compile_context>

<pallas_src>
import functools

import jax
import jax.numpy as jnp
from jax.experimental import pallas as pl
from jax.experimental.pallas import tpu as pltpu


def _round_up(x, m):
    return (x + m - 1) // m * m


def _vmem_budget_bytes():
    """Generation-aware VMEM budget with headroom for compiler-internal scratch."""
    cap = 64 << 20  # conservative default: v7x per-TensorCore VMEM
    try:
        info = pltpu.get_tpu_info()
        cap = int(getattr(info, "vmem_capacity_bytes", cap) or cap)
    except Exception:
        pass
    return int(cap * 0.6)


# -----------------------------------------------------------------------------
# Kernel 1: stacked GRU + weighted-sum epilogue -> user_emb (one batch block)
# -----------------------------------------------------------------------------
def gru_user_emb_kernel(num_layers, L, TB, E,
                        xemb_ref,   # (L, TB, E)           bf16  embedded inputs (time-major)
                        wgt_ref,    # (L, TB, 1)           f32   fac * (t+1)/B/2 (last t = 0)
                        wih_ref,    # (num_layers, E, 3E)  bf16  input->gate weights [r|z|n]
                        whh_ref,    # (num_layers, E, 3E)  bf16  hidden->gate weights [r|z|n]
                        bgx_ref,    # (num_layers, 1, 3E)  f32   [bih_r+bhh_r | bih_z+bhh_z | bih_n]
                        bhn_ref,    # (num_layers, 1, E)   f32   bhh_n (stays inside r*(...))
                        uemb_ref,   # out: (TB, E)         f32
                        io_ref,     # scratch: (L, TB, E)  f32   per-layer hidden states
                        gx_ref):    # scratch: (L, TB, 3E) f32   precomputed input gates
    E3 = 3 * E

    for k in range(num_layers):
        # (1) Batched input->gate matmul for the whole sequence: one MXU call per layer.
        if k == 0:
            x2d = xemb_ref[...].reshape(L * TB, E)                     # already bf16
        else:
            x2d = io_ref[...].reshape(L * TB, E).astype(jnp.bfloat16)
        gx2d = jnp.dot(x2d, wih_ref[k], preferred_element_type=jnp.float32)
        gx_ref[...] = gx2d.reshape(L, TB, E3) + bgx_ref[k]

        whh_k = whh_ref[k]                                             # (E, 3E) bf16
        bhn_b = jnp.broadcast_to(bhn_ref[k], (TB, E))                  # hoisted out of the loop

        # (2) Serial recurrence: one fused (TB, E) @ (E, 3E) per step; gate math in f32.
        #     E is a multiple of 128, so the gate slices below are lane-aligned.
        def step(t, h):
            gh = jnp.dot(h.astype(jnp.bfloat16), whh_k,
                         preferred_element_type=jnp.float32)           # (TB, 3E)
            gxt = gx_ref[t]                                            # (TB, 3E)
            r = jax.nn.sigmoid(gxt[:, :E] + gh[:, :E])
            z = jax.nn.sigmoid(gxt[:, E:2 * E] + gh[:, E:2 * E])
            n = jnp.tanh(gxt[:, 2 * E:] + r * (gh[:, 2 * E:] + bhn_b))
            h_new = (1.0 - z) * n + z * h
            io_ref[t] = h_new                                          # layer-k output[t]
            return h_new

        jax.lax.fori_loop(0, L, step, jnp.zeros((TB, E), jnp.float32),
                          unroll=True)

    # (3) Epilogue: user_emb = out[L-1] + sum_t wgt[t] * out[t].
    outs = io_ref[...]                                                 # (L, TB, E)
    uemb_ref[...] = outs[L - 1] + jnp.sum(wgt_ref[...] * outs, axis=0)


# -----------------------------------------------------------------------------
# Kernel 2: logits = tanh(user_emb @ wff + bff), tiled over (batch, vocab)
# -----------------------------------------------------------------------------
def logits_kernel(uemb_ref,   # (TB, E)   bf16
                  wff_ref,    # (E, TN)   bf16
                  bff_ref,    # (1, TN)   f32
                  out_ref):   # (TB, TN)  f32
    logits = jnp.dot(uemb_ref[...], wff_ref[...],
                     preferred_element_type=jnp.float32) + bff_ref[...]
    out_ref[...] = jnp.tanh(logits)
    # TODO(synk): emit bf16 logits instead if downstream tolerance allows (halves writeback).


# -----------------------------------------------------------------------------
# Wrapper: plain-JAX glue + two pallas_calls
# -----------------------------------------------------------------------------
def gru4rec_forward(X, y, p, *, num_layers, gamma1, gamma2):
    """X: (B, L) int, y: (B,) int. Returns (B, V+1) f32 logits (eval semantics)."""
    B, L = X.shape
    Vp1, E = p["emb"].shape
    E_pad = _round_up(max(E, 128), 128)   # lane-aligned gate slices (v6e: 256 is even better)
    E3 = 3 * E_pad

    # Softmax preprocessing of the cluster parameters (matches __init__).
    ae = jax.nn.softmax(p["ae_raw"] * 10.0 * gamma1, axis=1)          # (V+1, C)
    w = jax.nn.softmax(p["w_raw"] * 100.0 * gamma2, axis=0)           # (C, C)

    # fac / per-step weights computed in plain JAX (tiny C; keep out of the kernel).
    fac = jnp.einsum("blc,cd,bd->bl", ae[X], w, ae[y])                # (B, L)
    coeff = jnp.asarray([(i + 1) / B / 2.0 for i in range(L - 1)] + [0.0],
                        jnp.float32)                                  # original B; last entry 0
    wgt_bl = (fac * coeff[None, :]).astype(jnp.float32)               # (B, L)

    # Batch-block size chosen against the per-generation VMEM budget.
    vmem_budget = _vmem_budget_bytes()

    def k1_step_bytes(tb):
        return (2 * L * tb * E_pad * 2                    # xemb block (bf16, 2 buffers)
                + 2 * L * tb * 128 * 4                    # wgt block (lane-padded, 2 buffers)
                + 2 * 2 * num_layers * E_pad * E3 * 2     # wih + whh (bf16, 2 buffers)
                + 2 * num_layers * 8 * (E3 + E_pad) * 4   # biases (sublane-padded)
                + 2 * tb * E_pad * 4                      # output block
                + L * tb * E_pad * 4                      # io scratch
                + L * tb * E3 * 4)                        # gx scratch

    TB = min(256, _round_up(B, 8))
    while TB > 8 and k1_step_bytes(TB) > vmem_budget:
        TB //= 2
    TB = max(8, _round_up(TB, 8))
    B_pad = _round_up(B, TB)
    pad_b = B_pad - B

    # Embedding gather, batch/feature padding, time-major, bf16 MXU operand.
    emb_pad = jnp.pad(p["emb"], ((0, 0), (0, E_pad - E)))
    X_emb = jnp.pad(emb_pad[X], ((0, pad_b), (0, 0), (0, 0)))         # (B_pad, L, E_pad)
    X_emb_t = jnp.transpose(X_emb, (1, 0, 2)).astype(jnp.bfloat16)    # (L, B_pad, E_pad)
    wgt_t = jnp.pad(wgt_bl, ((0, pad_b), (0, 0))).T[:, :, None]       # (L, B_pad, 1)

    # GRU weight repack: per layer, gate-stacked (E_pad, 3*E_pad); bf16 MXU operands.
    # r/z hidden biases folded into the input-gate bias; b_hn stays inside r*(...).
    def pad_mat(m):   # (E, E) -> (E_pad, E_pad), zero padding keeps padded lanes at 0
        return jnp.pad(m, ((0, E_pad - E), (0, E_pad - E)))

    def pad_vec(v):   # (1, E) -> (1, E_pad)
        return jnp.pad(v, ((0, 0), (0, E_pad - E)))

    wih_cat = jnp.stack([
        jnp.concatenate([pad_mat(p["wih"][3 * k + g]) for g in range(3)], axis=1)
        for k in range(num_layers)]).astype(jnp.bfloat16)             # (nl, E_pad, 3E_pad)
    whh_cat = jnp.stack([
        jnp.concatenate([pad_mat(p["whh"][3 * k + g]) for g in range(3)], axis=1)
        for k in range(num_layers)]).astype(jnp.bfloat16)             # (nl, E_pad, 3E_pad)
    bgx = jnp.stack([
        jnp.concatenate([pad_vec(p["bih"][3 * k + 0] + p["bhh"][3 * k + 0]),
                         pad_vec(p["bih"][3 * k + 1] + p["bhh"][3 * k + 1]),
                         pad_vec(p["bih"][3 * k + 2])], axis=1)
        for k in range(num_layers)]).astype(jnp.float32)              # (nl, 1, 3E_pad)
    bhn = jnp.stack([pad_vec(p["bhh"][3 * k + 2])
                     for k in range(num_layers)]).astype(jnp.float32) # (nl, 1, E_pad)

    # ---- Kernel 1 call: batch-tiled GRU + epilogue ----
    vmem_k1 = int(min(max(k1_step_bytes(TB) + (2 << 20), 16 << 20), vmem_budget))
    cost_k1 = pl.CostEstimate(
        flops=int(num_layers * 4 * L * B_pad * E_pad * E3 + 2 * L * B_pad * E_pad),
        transcendentals=int(num_layers * L * B_pad * E3),
        bytes_accessed=int(L * B_pad * E_pad * 2 + L * B_pad * 4
                           + 2 * num_layers * E_pad * E3 * 2 + B_pad * E_pad * 4))

    kernel1 = functools.partial(gru_user_emb_kernel, num_layers, L, TB, E_pad)
    user_emb = pl.pallas_call(
        kernel1,
        out_shape=jax.ShapeDtypeStruct((B_pad, E_pad), jnp.float32),
        grid=(B_pad // TB,),
        in_specs=[
            pl.BlockSpec((L, TB, E_pad), lambda b: (0, b, 0)),
            pl.BlockSpec((L, TB, 1), lambda b: (0, b, 0)),
            pl.BlockSpec((num_layers, E_pad, E3), lambda b: (0, 0, 0)),
            pl.BlockSpec((num_layers, E_pad, E3), lambda b: (0, 0, 0)),
            pl.BlockSpec((num_layers, 1, E3), lambda b: (0, 0, 0)),
            pl.BlockSpec((num_layers, 1, E_pad), lambda b: (0, 0, 0)),
        ],
        out_specs=pl.BlockSpec((TB, E_pad), lambda b: (b, 0)),
        scratch_shapes=[pltpu.VMEM((L, TB, E_pad), jnp.float32),
                        pltpu.VMEM((L, TB, E3), jnp.float32)],
        compiler_params=pltpu.CompilerParams(
            dimension_semantics=("parallel",), vmem_limit_bytes=vmem_k1),
        cost_estimate=cost_k1,
    )(X_emb_t, wgt_t, wih_cat, whh_cat, bgx, bhn)

    # ---- Kernel 2 call: (batch, vocab)-tiled final linear + tanh ----
    TN = min(1024, _round_up(Vp1, 128))
    Vp1_pad = _round_up(Vp1, TN)
    wff = jnp.pad(p["wffT"], ((0, E_pad - E), (0, Vp1_pad - Vp1))).astype(jnp.bfloat16)
    bff = jnp.pad(p["bff"], ((0, 0), (0, Vp1_pad - Vp1))).astype(jnp.float32)
    uemb_bf16 = user_emb.astype(jnp.bfloat16)

    k2_step_bytes = 2 * (TB * E_pad * 2 + E_pad * TN * 2 + 8 * TN * 4 + TB * TN * 4)
    vmem_k2 = int(min(max(k2_step_bytes + (2 << 20), 16 << 20), vmem_budget))
    cost_k2 = pl.CostEstimate(
        flops=int(2 * B_pad * E_pad * Vp1_pad),
        transcendentals=int(B_pad * Vp1_pad),
        bytes_accessed=int(E_pad * Vp1_pad * 2 + B_pad * Vp1_pad * 4
                           + B_pad * E_pad * 2 + Vp1_pad * 4))

    out = pl.pallas_call(
        logits_kernel,
        out_shape=jax.ShapeDtypeStruct((B_pad, Vp1_pad), jnp.float32),
        grid=(B_pad // TB, Vp1_pad // TN),
        in_specs=[pl.BlockSpec((TB, E_pad), lambda b, j: (b, 0)),
                  pl.BlockSpec((E_pad, TN), lambda b, j: (0, j)),
                  pl.BlockSpec((1, TN), lambda b, j: (0, j))],
        out_specs=pl.BlockSpec((TB, TN), lambda b, j: (b, j)),
        compiler_params=pltpu.CompilerParams(
            dimension_semantics=("parallel", "parallel"), vmem_limit_bytes=vmem_k2),
        cost_estimate=cost_k2,
    )(uemb_bf16, wff, bff)

    return out[:B, :Vp1]


# -----------------------------------------------------------------------------
# Pure-JAX reference mirroring the PyTorch forward (eval semantics, f32)
# -----------------------------------------------------------------------------
def reference_forward(X, y, p, *, num_layers, gamma1, gamma2):
    ae = jax.nn.softmax(p["ae_raw"] * 10.0 * gamma1, axis=1)
    w = jax.nn.softmax(p["w_raw"] * 100.0 * gamma2, axis=0)
    X_emb = p["emb"][X]                                               # (B, L, E)
    B, L, E = X_emb.shape
    xs = X_emb
    for k in range(num_layers):
        h = jnp.zeros((B, E), jnp.float32)
        outs = []
        for t in range(L):
            x_t = xs[:, t]
            r = jax.nn.sigmoid(x_t @ p["wih"][3 * k + 0] + p["bih"][3 * k + 0]
                               + h @ p["whh"][3 * k + 0] + p["bhh"][3 * k + 0])
            z = jax.nn.sigmoid(x_t @ p["wih"][3 * k + 1] + p["bih"][3 * k + 1]
                               + h @ p["whh"][3 * k + 1] + p["bhh"][3 * k + 1])
            n = jnp.tanh(x_t @ p["wih"][3 * k + 2] + p["bih"][3 * k + 2]
                         + r * (h @ p["whh"][3 * k + 2] + p["bhh"][3 * k + 2]))
            h = (1.0 - z) * n + z * h
            outs.append(h)
        xs = jnp.stack(outs, axis=1)
    output = xs
    user_emb = output[:, -1]
    fac = jnp.einsum("blc,cd,bd->bl", ae[X], w, ae[y])
    for i in range(L - 1):
        user_emb = user_emb + output[:, i] * ((i + 1) / B / 2.0) * fac[:, i:i + 1]
    return jnp.tanh(user_emb @ p["wffT"] + p["bff"])


if __name__ == "__main__":
    input_size = 10          # item vocabulary (padding idx 0 -> V+1 rows)
    emb_size = 32
    num_layers = 2
    cluster_num = 4
    gamma1, gamma2 = 5.0, 5.0
    B, L = 2, 8
    Vp1 = input_size + 1

    key = jax.random.PRNGKey(0)
    ks = jax.random.split(key, 12)

    emb = 0.1 * jax.random.normal(ks[0], (Vp1, emb_size), jnp.float32)
    emb = emb.at[0].set(0.0)                          # padding_idx=0
    params = {
        "emb": emb,
        "ae_raw": jax.random.normal(ks[1], (Vp1, cluster_num), jnp.float32),
        "w_raw": jax.random.normal(ks[2], (cluster_num, cluster_num), jnp.float32),
        # GRU weights, pre-transposed so x @ W works; gate order (r, z, n) stacked per layer.
        "wih": 0.1 * jax.random.normal(ks[3], (num_layers * 3, emb_size, emb_size), jnp.float32),
        "whh": 0.1 * jax.random.normal(ks[4], (num_layers * 3, emb_size, emb_size), jnp.float32),
        "bih": 0.1 * jax.random.normal(ks[5], (num_layers * 3, 1, emb_size), jnp.float32),
        "bhh": 0.1 * jax.random.normal(ks[6], (num_layers * 3, 1, emb_size), jnp.float32),
        "wffT": 0.1 * jax.random.normal(ks[7], (emb_size, Vp1), jnp.float32),
        "bff": 0.1 * jax.random.normal(ks[8], (1, Vp1), jnp.float32),
    }

    X = jax.random.randint(ks[9], (B, L), 0, Vp1, dtype=jnp.int32)
    y = jax.random.randint(ks[10], (B,), 1, Vp1, dtype=jnp.int32)

    fwd = jax.jit(functools.partial(gru4rec_forward, num_layers=num_layers,
                                    gamma1=gamma1, gamma2=gamma2))
    out = jax.block_until_ready(fwd(X, y, params))

    ref = jax.block_until_ready(
        reference_forward(X, y, params, num_layers=num_layers,
                          gamma1=gamma1, gamma2=gamma2))

    assert out.shape == (B, Vp1)
    max_err = float(jnp.max(jnp.abs(out - ref)))
    if max_err > 2e-2:
        raise AssertionError(f"Pallas kernel mismatch vs reference: max_err={max_err}")
    print("KERNEL_OK")
</pallas_src>

<mosaic_0001>
module attributes {stable_mosaic.version = 11 : i64} {
  func.func @gru_user_emb_kernel(%arg0: i32, %arg1: memref<8x8x128xbf16, #tpu.memory_space<vmem>>, %arg2: memref<8x8x1xf32, #tpu.memory_space<vmem>>, %arg3: memref<2x128x384xbf16, #tpu.memory_space<vmem>>, %arg4: memref<2x128x384xbf16, #tpu.memory_space<vmem>>, %arg5: memref<2x1x384xf32, #tpu.memory_space<vmem>>, %arg6: memref<2x1x128xf32, #tpu.memory_space<vmem>>, %arg7: memref<8x128xf32, #tpu.memory_space<vmem>>, %arg8: memref<8x8x128xf32, #tpu.memory_space<vmem>>, %arg9: memref<8x8x384xf32, #tpu.memory_space<vmem>>) attributes {dimension_semantics = [#tpu.dimension_semantics<parallel>], iteration_bounds = array<i64: 1>, scalar_prefetch = 0 : i64, scratch_operands = 2 : i64, tpu.core_type = #tpu.core_type<tc>, window_params = [{transform_indices = @transform_0, window_bounds = array<i64: 8, 8, 128>}, {transform_indices = @transform_1, window_bounds = array<i64: 8, 8, 1>}, {pipeline_mode = #tpu.pipeline_mode<synchronous>, transform_indices = @transform_2, window_bounds = array<i64: 2, 128, 384>}, {pipeline_mode = #tpu.pipeline_mode<synchronous>, transform_indices = @transform_3, window_bounds = array<i64: 2, 128, 384>}, {pipeline_mode = #tpu.pipeline_mode<synchronous>, transform_indices = @transform_4, window_bounds = array<i64: 2, 1, 384>}, {pipeline_mode = #tpu.pipeline_mode<synchronous>, transform_indices = @transform_5, window_bounds = array<i64: 2, 1, 128>}, {transform_indices = @transform_6, window_bounds = array<i64: 8, 128>}]} {
    %c0 = arith.constant 0 : index
    %c0_0 = arith.constant 0 : index
    %c0_1 = arith.constant 0 : index
    %0 = vector.load %arg1[%c0, %c0_0, %c0_1] : memref<8x8x128xbf16, #tpu.memory_space<vmem>>, vector<8x8x128xbf16>
    %1 = vector.shape_cast %0 : vector<8x8x128xbf16> to vector<64x128xbf16>
    %c0_2 = arith.constant 0 : index
    %c0_3 = arith.constant 0 : index
    %c0_4 = arith.constant 0 : index
    %2 = vector.load %arg3[%c0_2, %c0_3, %c0_4] : memref<2x128x384xbf16, #tpu.memory_space<vmem>>, vector<1x128x384xbf16>
    %3 = vector.shape_cast %2 : vector<1x128x384xbf16> to vector<128x384xbf16>
    %cst = arith.constant dense<0.000000e+00> : vector<64x384xf32>
    %4 = tpu.matmul %1, %3, %cst {dimension_numbers = #tpu.dot_dimension_numbers<[1], [0], [0], [1], [0, 0, 1, 1], [], []>} : vector<64x128xbf16>, vector<128x384xbf16>, vector<64x384xf32> -> vector<64x384xf32>
    %5 = vector.shape_cast %4 : vector<64x384xf32> to vector<8x8x384xf32>
    %c0_5 = arith.constant 0 : index
    %c0_6 = arith.constant 0 : index
    %c0_7 = arith.constant 0 : index
    %6 = vector.load %arg5[%c0_5, %c0_6, %c0_7] : memref<2x1x384xf32, #tpu.memory_space<vmem>>, vector<1x1x384xf32>
    %7 = vector.shape_cast %6 : vector<1x1x384xf32> to vector<1x384xf32>
    %8 = vector.shape_cast %7 : vector<1x384xf32> to vector<1x1x384xf32>
    %9 = vector.broadcast %8 : vector<1x1x384xf32> to vector<8x8x384xf32>
    %10 = arith.addf %5, %9 : vector<8x8x384xf32>
    %c0_8 = arith.constant 0 : index
    %c0_9 = arith.constant 0 : index
    %c0_10 = arith.constant 0 : index
    %11 = vector.load %arg9[%c0_8, %c0_9, %c0_10] : memref<8x8x384xf32, #tpu.memory_space<vmem>>, vector<8x8x384xf32>
    tpu.vector_store %arg9[%c0_8, %c0_9, %c0_10], %10 {strides = array<i32>} : memref<8x8x384xf32, #tpu.memory_space<vmem>>, vector<8x8x384xf32>,
    %c0_11 = arith.constant 0 : index
    %c0_12 = arith.constant 0 : index
    %c0_13 = arith.constant 0 : index
    %12 = vector.load %arg4[%c0_11, %c0_12, %c0_13] : memref<2x128x384xbf16, #tpu.memory_space<vmem>>, vector<1x128x384xbf16>
    %13 = vector.shape_cast %12 : vector<1x128x384xbf16> to vector<128x384xbf16>
    %c0_14 = arith.constant 0 : index
    %c0_15 = arith.constant 0 : index
    %c0_16 = arith.constant 0 : index
    %14 = vector.load %arg6[%c0_14, %c0_15, %c0_16] : memref<2x1x128xf32, #tpu.memory_space<vmem>>, vector<1x1x128xf32>
    %15 = vector.shape_cast %14 : vector<1x1x128xf32> to vector<1x128xf32>
    %16 = vector.shape_cast %15 : vector<1x128xf32> to vector<1x128xf32>
    %17 = vector.broadcast %16 : vector<1x128xf32> to vector<8x128xf32>
    %cst_17 = arith.constant 0.000000e+00 : f32
    %18 = vector.broadcast %cst_17 : f32 to vector<8x128xf32>
    %c0_i32 = arith.constant 0 : i32
    %19 = arith.truncf %18 : vector<8x128xf32> to vector<8x128xbf16>
    %cst_18 = arith.constant dense<0.000000e+00> : vector<8x384xf32>
    %20 = tpu.matmul %19, %13, %cst_18 {dimension_numbers = #tpu.dot_dimension_numbers<[1], [0], [0], [1], [0, 0, 1, 1], [], []>} : vector<8x128xbf16>, vector<128x384xbf16>, vector<8x384xf32> -> vector<8x384xf32>
    %21 = arith.index_cast %c0_i32 : i32 to index
    %c0_19 = arith.constant 0 : index
    %c0_20 = arith.constant 0 : index
    %22 = vector.load %arg9[%21, %c0_19, %c0_20] : memref<8x8x384xf32, #tpu.memory_space<vmem>>, vector<1x8x384xf32>
    %23 = vector.shape_cast %22 : vector<1x8x384xf32> to vector<8x384xf32>
    %24 = vector.extract_strided_slice %23 {offsets = [0, 0], sizes = [8, 128], strides = [1, 1]} : vector<8x384xf32> to vector<8x128xf32>
    %25 = vector.extract_strided_slice %20 {offsets = [0, 0], sizes = [8, 128], strides = [1, 1]} : vector<8x384xf32> to vector<8x128xf32>
    %26 = arith.addf %24, %25 : vector<8x128xf32>
    %27 = arith.negf %26 : vector<8x128xf32>
    %28 = math.exp %27 : vector<8x128xf32>
    %cst_21 = arith.constant 1.000000e+00 : f32
    %29 = vector.broadcast %cst_21 : f32 to vector<8x128xf32>
    %30 = arith.addf %29, %28 : vector<8x128xf32>
    %31 = arith.divf %29, %30 : vector<8x128xf32>
    %32 = vector.extract_strided_slice %23 {offsets = [0, 128], sizes = [8, 128], strides = [1, 1]} : vector<8x384xf32> to vector<8x128xf32>
    %33 = vector.extract_strided_slice %20 {offsets = [0, 128], sizes = [8, 128], strides = [1, 1]} : vector<8x384xf32> to vector<8x128xf32>
    %34 = arith.addf %32, %33 : vector<8x128xf32>
    %35 = arith.negf %34 : vector<8x128xf32>
    %36 = math.exp %35 : vector<8x128xf32>
    %cst_22 = arith.constant 1.000000e+00 : f32
    %37 = vector.broadcast %cst_22 : f32 to vector<8x128xf32>
    %38 = arith.addf %37, %36 : vector<8x128xf32>
    %39 = arith.divf %37, %38 : vector<8x128xf32>
    %40 = vector.extract_strided_slice %23 {offsets = [0, 256], sizes = [8, 128], strides = [1, 1]} : vector<8x384xf32> to vector<8x128xf32>
    %41 = vector.extract_strided_slice %20 {offsets = [0, 256], sizes = [8, 128], strides = [1, 1]} : vector<8x384xf32> to vector<8x128xf32>
    %42 = arith.addf %41, %17 : vector<8x128xf32>
    %43 = arith.mulf %31, %42 : vector<8x128xf32>
    %44 = arith.addf %40, %43 : vector<8x128xf32>
    %45 = math.tanh %44 : vector<8x128xf32>
    %cst_23 = arith.constant 1.000000e+00 : f32
    %46 = vector.broadcast %cst_23 : f32 to vector<8x128xf32>
    %47 = arith.subf %46, %39 : vector<8x128xf32>
    %48 = arith.mulf %47, %45 : vector<8x128xf32>
    %49 = arith.mulf %39, %18 : vector<8x128xf32>
    %50 = arith.addf %48, %49 : vector<8x128xf32>
    %51 = arith.index_cast %c0_i32 : i32 to index
    %c0_24 = arith.constant 0 : index
    %c0_25 = arith.constant 0 : index
    %52 = vector.load %arg8[%51, %c0_24, %c0_25] : memref<8x8x128xf32, #tpu.memory_space<vmem>>, vector<1x8x128xf32>
    %53 = vector.shape_cast %52 : vector<1x8x128xf32> to vector<8x128xf32>
    %54 = vector.shape_cast %50 : vector<8x128xf32> to vector<1x8x128xf32>
    tpu.vector_store %arg8[%51, %c0_24, %c0_25], %54 {strides = array<i32>} : memref<8x8x128xf32, #tpu.memory_space<vmem>>, vector<1x8x128xf32>,
    %c1_i32 = arith.constant 1 : i32
    %55 = arith.truncf %50 : vector<8x128xf32> to vector<8x128xbf16>
    %cst_26 = arith.constant dense<0.000000e+00> : vector<8x384xf32>
    %56 = tpu.matmul %55, %13, %cst_26 {dimension_numbers = #tpu.dot_dimension_numbers<[1], [0], [0], [1], [0, 0, 1, 1], [], []>} : vector<8x128xbf16>, vector<128x384xbf16>, vector<8x384xf32> -> vector<8x384xf32>
    %57 = arith.index_cast %c1_i32 : i32 to index
    %c0_27 = arith.constant 0 : index
    %c0_28 = arith.constant 0 : index
    %58 = vector.load %arg9[%57, %c0_27, %c0_28] : memref<8x8x384xf32, #tpu.memory_space<vmem>>, vector<1x8x384xf32>
    %59 = vector.shape_cast %58 : vector<1x8x384xf32> to vector<8x384xf32>
    %60 = vector.extract_strided_slice %59 {offsets = [0, 0], sizes = [8, 128], strides = [1, 1]} : vector<8x384xf32> to vector<8x128xf32>
    %61 = vector.extract_strided_slice %56 {offsets = [0, 0], sizes = [8, 128], strides = [1, 1]} : vector<8x384xf32> to vector<8x128xf32>
    %62 = arith.addf %60, %61 : vector<8x128xf32>
    %63 = arith.negf %62 : vector<8x128xf32>
    %64 = math.exp %63 : vector<8x128xf32>
    %cst_29 = arith.constant 1.000000e+00 : f32
    %65 = vector.broadcast %cst_29 : f32 to vector<8x128xf32>
    %66 = arith.addf %65, %64 : vector<8x128xf32>
    %67 = arith.divf %65, %66 : vector<8x128xf32>
    %68 = vector.extract_strided_slice %59 {offsets = [0, 128], sizes = [8, 128], strides = [1, 1]} : vector<8x384xf32> to vector<8x128xf32>
    %69 = vector.extract_strided_slice %56 {offsets = [0, 128], sizes = [8, 128], strides = [1, 1]} : vector<8x384xf32> to vector<8x128xf32>
    %70 = arith.addf %68, %69 : vector<8x128xf32>
    %71 = arith.negf %70 : vector<8x128xf32>
    %72 = math.exp %71 : vector<8x128xf32>
    %cst_30 = arith.constant 1.000000e+00 : f32
    %73 = vector.broadcast %cst_30 : f32 to vector<8x128xf32>
    %74 = arith.addf %73, %72 : vector<8x128xf32>
    %75 = arith.divf %73, %74 : vector<8x128xf32>
    %76 = vector.extract_strided_slice %59 {offsets = [0, 256], sizes = [8, 128], strides = [1, 1]} : vector<8x384xf32> to vector<8x128xf32>
    %77 = vector.extract_strided_slice %56 {offsets = [0, 256], sizes = [8, 128], strides = [1, 1]} : vector<8x384xf32> to vector<8x128xf32>
    %78 = arith.addf %77, %17 : vector<8x128xf32>
    %79 = arith.mulf %67, %78 : vector<8x128xf32>
    %80 = arith.addf %76, %79 : vector<8x128xf32>
    %81 = math.tanh %80 : vector<8x128xf32>
    %cst_31 = arith.constant 1.000000e+00 : f32
    %82 = vector.broadcast %cst_31 : f32 to vector<8x128xf32>
    %83 = arith.subf %82, %75 : vector<8x128xf32>
    %84 = arith.mulf %83, %81 : vector<8x128xf32>
    %85 = arith.mulf %75, %50 : vector<8x128xf32>
    %86 = arith.addf %84, %85 : vector<8x128xf32>
    %87 = arith.index_cast %c1_i32 : i32 to index
    %c0_32 = arith.constant 0 : index
    %c0_33 = arith.constant 0 : index
    %88 = vector.load %arg8[%87, %c0_32, %c0_33] : memref<8x8x128xf32, #tpu.memory_space<vmem>>, vector<1x8x128xf32>
    %89 = vector.shape_cast %88 : vector<1x8x128xf32> to vector<8x128xf32>
    %90 = vector.shape_cast %86 : vector<8x128xf32> to vector<1x8x128xf32>
    tpu.vector_store %arg8[%87, %c0_32, %c0_33], %90 {strides = array<i32>} : memref<8x8x128xf32, #tpu.memory_space<vmem>>, vector<1x8x128xf32>,
    %c2_i32 = arith.constant 2 : i32
    %91 = arith.truncf %86 : vector<8x128xf32> to vector<8x128xbf16>
    %cst_34 = arith.constant dense<0.000000e+00> : vector<8x384xf32>
    %92 = tpu.matmul %91, %13, %cst_34 {dimension_numbers = #tpu.dot_dimension_numbers<[1], [0], [0], [1], [0, 0, 1, 1], [], []>} : vector<8x128xbf16>, vector<128x384xbf16>, vector<8x384xf32> -> vector<8x384xf32>
    %93 = arith.index_cast %c2_i32 : i32 to index
    %c0_35 = arith.constant 0 : index
    %c0_36 = arith.constant 0 : index
    %94 = vector.load %arg9[%93, %c0_35, %c0_36] : memref<8x8x384xf32, #tpu.memory_space<vmem>>, vector<1x8x384xf32>
    %95 = vector.shape_cast %94 : vector<1x8x384xf32> to vector<8x384xf32>
    %96 = vector.extract_strided_slice %95 {offsets = [0, 0], sizes = [8, 128], strides = [1, 1]} : vector<8x384xf32> to vector<8x128xf32>
    %97 = vector.extract_strided_slice %92 {offsets = [0, 0], sizes = [8, 128], strides = [1, 1]} : vector<8x384xf32> to vector<8x128xf32>
    %98 = arith.addf %96, %97 : vector<8x128xf32>
    %99 = arith.negf %98 : vector<8x128xf32>
    %100 = math.exp %99 : vector<8x128xf32>
    %cst_37 = arith.constant 1.000000e+00 : f32
    %101 = vector.broadcast %cst_37 : f32 to vector<8x128xf32>
    %102 = arith.addf %101, %100 : vector<8x128xf32>
    %103 = arith.divf %101, %102 : vector<8x128xf32>
    %104 = vector.extract_strided_slice %95 {offsets = [0, 128], sizes = [8, 128], strides = [1, 1]} : vector<8x384xf32> to vector<8x128xf32>
    %105 = vector.extract_strided_slice %92 {offsets = [0, 128], sizes = [8, 128], strides = [1, 1]} : vector<8x384xf32> to vector<8x128xf32>
    %106 = arith.addf %104, %105 : vector<8x128xf32>
    %107 = arith.negf %106 : vector<8x128xf32>
    %108 = math.exp %107 : vector<8x128xf32>
    %cst_38 = arith.constant 1.000000e+00 : f32
    %109 = vector.broadcast %cst_38 : f32 to vector<8x128xf32>
    %110 = arith.addf %109, %108 : vector<8x128xf32>
    %111 = arith.divf %109, %110 : vector<8x128xf32>
    %112 = vector.extract_strided_slice %95 {offsets = [0, 256], sizes = [8, 128], strides = [1, 1]} : vector<8x384xf32> to vector<8x128xf32>
    %113 = vector.extract_strided_slice %92 {offsets = [0, 256], sizes = [8, 128], strides = [1, 1]} : vector<8x384xf32> to vector<8x128xf32>
    %114 = arith.addf %113, %17 : vector<8x128xf32>
    %115 = arith.mulf %103, %114 : vector<8x128xf32>
    %116 = arith.addf %112, %115 : vector<8x128xf32>
    %117 = math.tanh %116 : vector<8x128xf32>
    %cst_39 = arith.constant 1.000000e+00 : f32
    %118 = vector.broadcast %cst_39 : f32 to vector<8x128xf32>
    %119 = arith.subf %118, %111 : vector<8x128xf32>
    %120 = arith.mulf %119, %117 : vector<8x128xf32>
    %121 = arith.mulf %111, %86 : vector<8x128xf32>
    %122 = arith.addf %120, %121 : vector<8x128xf32>
    %123 = arith.index_cast %c2_i32 : i32 to index
    %c0_40 = arith.constant 0 : index
    %c0_41 = arith.constant 0 : index
    %124 = vector.load %arg8[%123, %c0_40, %c0_41] : memref<8x8x128xf32, #tpu.memory_space<vmem>>, vector<1x8x128xf32>
    %125 = vector.shape_cast %124 : vector<1x8x128xf32> to vector<8x128xf32>
    %126 = vector.shape_cast %122 : vector<8x128xf32> to vector<1x8x128xf32>
    tpu.vector_store %arg8[%123, %c0_40, %c0_41], %126 {strides = array<i32>} : memref<8x8x128xf32, #tpu.memory_space<vmem>>, vector<1x8x128xf32>,
    %c3_i32 = arith.constant 3 : i32
    %127 = arith.truncf %122 : vector<8x128xf32> to vector<8x128xbf16>
    %cst_42 = arith.constant dense<0.000000e+00> : vector<8x384xf32>
    %128 = tpu.matmul %127, %13, %cst_42 {dimension_numbers = #tpu.dot_dimension_numbers<[1], [0], [0], [1], [0, 0, 1, 1], [], []>} : vector<8x128xbf16>, vector<128x384xbf16>, vector<8x384xf32> -> vector<8x384xf32>
    %129 = arith.index_cast %c3_i32 : i32 to index
    %c0_43 = arith.constant 0 : index
    %c0_44 = arith.constant 0 : index
    %130 = vector.load %arg9[%129, %c0_43, %c0_44] : memref<8x8x384xf32, #tpu.memory_space<vmem>>, vector<1x8x384xf32>
    %131 = vector.shape_cast %130 : vector<1x8x384xf32> to vector<8x384xf32>
    %132 = vector.extract_strided_slice %131 {offsets = [0, 0], sizes = [8, 128], strides = [1, 1]} : vector<8x384xf32> to vector<8x128xf32>
    %133 = vector.extract_strided_slice %128 {offsets = [0, 0], sizes = [8, 128], strides = [1, 1]} : vector<8x384xf32> to vector<8x128xf32>
    %134 = arith.addf %132, %133 : vector<8x128xf32>
    %135 = arith.negf %134 : vector<8x128xf32>
    %136 = math.exp %135 : vector<8x128xf32>
    %cst_45 = arith.constant 1.000000e+00 : f32
    %137 = vector.broadcast %cst_45 : f32 to vector<8x128xf32>
    %138 = arith.addf %137, %136 : vector<8x128xf32>
    %139 = arith.divf %137, %138 : vector<8x128xf32>
    %140 = vector.extract_strided_slice %131 {offsets = [0, 128], sizes = [8, 128], strides = [1, 1]} : vector<8x384xf32> to vector<8x128xf32>
    %141 = vector.extract_strided_slice %128 {offsets = [0, 128], sizes = [8, 128], strides = [1, 1]} : vector<8x384xf32> to vector<8x128xf32>
    %142 = arith.addf %140, %141 : vector<8x128xf32>
    %143 = arith.negf %142 : vector<8x128xf32>
    %144 = math.exp %143 : vector<8x128xf32>
    %cst_46 = arith.constant 1.000000e+00 : f32
    %145 = vector.broadcast %cst_46 : f32 to vector<8x128xf32>
    %146 = arith.addf %145, %144 : vector<8x128xf32>
    %147 = arith.divf %145, %146 : vector<8x128xf32>
    %148 = vector.extract_strided_slice %131 {offsets = [0, 256], sizes = [8, 128], strides = [1, 1]} : vector<8x384xf32> to vector<8x128xf32>
    %149 = vector.extract_strided_slice %128 {offsets = [0, 256], sizes = [8, 128], strides = [1, 1]} : vector<8x384xf32> to vector<8x128xf32>
    %150 = arith.addf %149, %17 : vector<8x128xf32>
    %151 = arith.mulf %139, %150 : vector<8x128xf32>
    %152 = arith.addf %148, %151 : vector<8x128xf32>
    %153 = math.tanh %152 : vector<8x128xf32>
    %cst_47 = arith.constant 1.000000e+00 : f32
    %154 = vector.broadcast %cst_47 : f32 to vector<8x128xf32>
    %155 = arith.subf %154, %147 : vector<8x128xf32>
    %156 = arith.mulf %155, %153 : vector<8x128xf32>
    %157 = arith.mulf %147, %122 : vector<8x128xf32>
    %158 = arith.addf %156, %157 : vector<8x128xf32>
    %159 = arith.index_cast %c3_i32 : i32 to index
    %c0_48 = arith.constant 0 : index
    %c0_49 = arith.constant 0 : index
    %160 = vector.load %arg8[%159, %c0_48, %c0_49] : memref<8x8x128xf32, #tpu.memory_space<vmem>>, vector<1x8x128xf32>
    %161 = vector.shape_cast %160 : vector<1x8x128xf32> to vector<8x128xf32>
    %162 = vector.shape_cast %158 : vector<8x128xf32> to vector<1x8x128xf32>
    tpu.vector_store %arg8[%159, %c0_48, %c0_49], %162 {strides = array<i32>} : memref<8x8x128xf32, #tpu.memory_space<vmem>>, vector<1x8x128xf32>,
    %c4_i32 = arith.constant 4 : i32
    %163 = arith.truncf %158 : vector<8x128xf32> to vector<8x128xbf16>
    %cst_50 = arith.constant dense<0.000000e+00> : vector<8x384xf32>
    %164 = tpu.matmul %163, %13, %cst_50 {dimension_numbers = #tpu.dot_dimension_numbers<[1], [0], [0], [1], [0, 0, 1, 1], [], []>} : vector<8x128xbf16>, vector<128x384xbf16>, vector<8x384xf32> -> vector<8x384xf32>
    %165 = arith.index_cast %c4_i32 : i32 to index
    %c0_51 = arith.constant 0 : index
    %c0_52 = arith.constant 0 : index
    %166 = vector.load %arg9[%165, %c0_51, %c0_52] : memref<8x8x384xf32, #tpu.memory_space<vmem>>, vector<1x8x384xf32>
    %167 = vector.shape_cast %166 : vector<1x8x384xf32> to vector<8x384xf32>
    %168 = vector.extract_strided_slice %167 {offsets = [0, 0], sizes = [8, 128], strides = [1, 1]} : vector<8x384xf32> to vector<8x128xf32>
    %169 = vector.extract_strided_slice %164 {offsets = [0, 0], sizes = [8, 128], strides = [1, 1]} : vector<8x384xf32> to vector<8x128xf32>
    %170 = arith.addf %168, %169 : vector<8x128xf32>
    %171 = arith.negf %170 : vector<8x128xf32>
    %172 = math.exp %171 : vector<8x128xf32>
    %cst_53 = arith.constant 1.000000e+00 : f32
    %173 = vector.broadcast %cst_53 : f32 to vector<8x128xf32>
    %174 = arith.addf %173, %172 : vector<8x128xf32>
    %175 = arith.divf %173, %174 : vector<8x128xf32>
    %176 = vector.extract_strided_slice %167 {offsets = [0, 128], sizes = [8, 128], strides = [1, 1]} : vector<8x384xf32> to vector<8x128xf32>
    %177 = vector.extract_strided_slice %164 {offsets = [0, 128], sizes = [8, 128], strides = [1, 1]} : vector<8x384xf32> to vector<8x128xf32>
    %178 = arith.addf %176, %177 : vector<8x128xf32>
    %179 = arith.negf %178 : vector<8x128xf32>
    %180 = math.exp %179 : vector<8x128xf32>
    %cst_54 = arith.constant 1.000000e+00 : f32
    %181 = vector.broadcast %cst_54 : f32 to vector<8x128xf32>
    %182 = arith.addf %181, %180 : vector<8x128xf32>
    %183 = arith.divf %181, %182 : vector<8x128xf32>
    %184 = vector.extract_strided_slice %167 {offsets = [0, 256], sizes = [8, 128], strides = [1, 1]} : vector<8x384xf32> to vector<8x128xf32>
    %185 = vector.extract_strided_slice %164 {offsets = [0, 256], sizes = [8, 128], strides = [1, 1]} : vector<8x384xf32> to vector<8x128xf32>
    %186 = arith.addf %185, %17 : vector<8x128xf32>
    %187 = arith.mulf %175, %186 : vector<8x128xf32>
    %188 = arith.addf %184, %187 : vector<8x128xf32>
    %189 = math.tanh %188 : vector<8x128xf32>
    %cst_55 = arith.constant 1.000000e+00 : f32
    %190 = vector.broadcast %cst_55 : f32 to vector<8x128xf32>
    %191 = arith.subf %190, %183 : vector<8x128xf32>
    %192 = arith.mulf %191, %189 : vector<8x128xf32>
    %193 = arith.mulf %183, %158 : vector<8x128xf32>
    %194 = arith.addf %192, %193 : vector<8x128xf32>
    %195 = arith.index_cast %c4_i32 : i32 to index
    %c0_56 = arith.constant 0 : index
    %c0_57 = arith.constant 0 : index
    %196 = vector.load %arg8[%195, %c0_56, %c0_57] : memref<8x8x128xf32, #tpu.memory_space<vmem>>, vector<1x8x128xf32>
    %197 = vector.shape_cast %196 : vector<1x8x128xf32> to vector<8x128xf32>
    %198 = vector.shape_cast %194 : vector<8x128xf32> to vector<1x8x128xf32>
    tpu.vector_store %arg8[%195, %c0_56, %c0_57], %198 {strides = array<i32>} : memref<8x8x128xf32, #tpu.memory_space<vmem>>, vector<1x8x128xf32>,
    %c5_i32 = arith.constant 5 : i32
    %199 = arith.truncf %194 : vector<8x128xf32> to vector<8x128xbf16>
    %cst_58 = arith.constant dense<0.000000e+00> : vector<8x384xf32>
    %200 = tpu.matmul %199, %13, %cst_58 {dimension_numbers = #tpu.dot_dimension_numbers<[1], [0], [0], [1], [0, 0, 1, 1], [], []>} : vector<8x128xbf16>, vector<128x384xbf16>, vector<8x384xf32> -> vector<8x384xf32>
    %201 = arith.index_cast %c5_i32 : i32 to index
    %c0_59 = arith.constant 0 : index
    %c0_60 = arith.constant 0 : index
    %202 = vector.load %arg9[%201, %c0_59, %c0_60] : memref<8x8x384xf32, #tpu.memory_space<vmem>>, vector<1x8x384xf32>
    %203 = vector.shape_cast %202 : vector<1x8x384xf32> to vector<8x384xf32>
    %204 = vector.extract_strided_slice %203 {offsets = [0, 0], sizes = [8, 128], strides = [1, 1]} : vector<8x384xf32> to vector<8x128xf32>
    %205 = vector.extract_strided_slice %200 {offsets = [0, 0], sizes = [8, 128], strides = [1, 1]} : vector<8x384xf32> to vector<8x128xf32>
    %206 = arith.addf %204, %205 : vector<8x128xf32>
    %207 = arith.negf %206 : vector<8x128xf32>
    %208 = math.exp %207 : vector<8x128xf32>
    %cst_61 = arith.constant 1.000000e+00 : f32
    %209 = vector.broadcast %cst_61 : f32 to vector<8x128xf32>
    %210 = arith.addf %209, %208 : vector<8x128xf32>
    %211 = arith.divf %209, %210 : vector<8x128xf32>
    %212 = vector.extract_strided_slice %203 {offsets = [0, 128], sizes = [8, 128], strides = [1, 1]} : vector<8x384xf32> to vector<8x128xf32>
    %213 = vector.extract_strided_slice %200 {offsets = [0, 128], sizes = [8, 128], strides = [1, 1]} : vector<8x384xf32> to vector<8x128xf32>
    %214 = arith.addf %212, %213 : vector<8x128xf32>
    %215 = arith.negf %214 : vector<8x128xf32>
    %216 = math.exp %215 : vector<8x128xf32>
    %cst_62 = arith.constant 1.000000e+00 : f32
    %217 = vector.broadcast %cst_62 : f32 to vector<8x128xf32>
    %218 = arith.addf %217, %216 : vector<8x128xf32>
    %219 = arith.divf %217, %218 : vector<8x128xf32>
    %220 = vector.extract_strided_slice %203 {offsets = [0, 256], sizes = [8, 128], strides = [1, 1]} : vector<8x384xf32> to vector<8x128xf32>
    %221 = vector.extract_strided_slice %200 {offsets = [0, 256], sizes = [8, 128], strides = [1, 1]} : vector<8x384xf32> to vector<8x128xf32>
    %222 = arith.addf %221, %17 : vector<8x128xf32>
    %223 = arith.mulf %211, %222 : vector<8x128xf32>
    %224 = arith.addf %220, %223 : vector<8x128xf32>
    %225 = math.tanh %224 : vector<8x128xf32>
    %cst_63 = arith.constant 1.000000e+00 : f32
    %226 = vector.broadcast %cst_63 : f32 to vector<8x128xf32>
    %227 = arith.subf %226, %219 : vector<8x128xf32>
    %228 = arith.mulf %227, %225 : vector<8x128xf32>
    %229 = arith.mulf %219, %194 : vector<8x128xf32>
    %230 = arith.addf %228, %229 : vector<8x128xf32>
    %231 = arith.index_cast %c5_i32 : i32 to index
    %c0_64 = arith.constant 0 : index
    %c0_65 = arith.constant 0 : index
    %232 = vector.load %arg8[%231, %c0_64, %c0_65] : memref<8x8x128xf32, #tpu.memory_space<vmem>>, vector<1x8x128xf32>
    %233 = vector.shape_cast %232 : vector<1x8x128xf32> to vector<8x128xf32>
    %234 = vector.shape_cast %230 : vector<8x128xf32> to vector<1x8x128xf32>
    tpu.vector_store %arg8[%231, %c0_64, %c0_65], %234 {strides = array<i32>} : memref<8x8x128xf32, #tpu.memory_space<vmem>>, vector<1x8x128xf32>,
    %c6_i32 = arith.constant 6 : i32
    %235 = arith.truncf %230 : vector<8x128xf32> to vector<8x128xbf16>
    %cst_66 = arith.constant dense<0.000000e+00> : vector<8x384xf32>
    %236 = tpu.matmul %235, %13, %cst_66 {dimension_numbers = #tpu.dot_dimension_numbers<[1], [0], [0], [1], [0, 0, 1, 1], [], []>} : vector<8x128xbf16>, vector<128x384xbf16>, vector<8x384xf32> -> vector<8x384xf32>
    %237 = arith.index_cast %c6_i32 : i32 to index
    %c0_67 = arith.constant 0 : index
    %c0_68 = arith.constant 0 : index
    %238 = vector.load %arg9[%237, %c0_67, %c0_68] : memref<8x8x384xf32, #tpu.memory_space<vmem>>, vector<1x8x384xf32>
    %239 = vector.shape_cast %238 : vector<1x8x384xf32> to vector<8x384xf32>
    %240 = vector.extract_strided_slice %239 {offsets = [0, 0], sizes = [8, 128], strides = [1, 1]} : vector<8x384xf32> to vector<8x128xf32>
    %241 = vector.extract_strided_slice %236 {offsets = [0, 0], sizes = [8, 128], strides = [1, 1]} : vector<8x384xf32> to vector<8x128xf32>
    %242 = arith.addf %240, %241 : vector<8x128xf32>
    %243 = arith.negf %242 : vector<8x128xf32>
    %244 = math.exp %243 : vector<8x128xf32>
    %cst_69 = arith.constant 1.000000e+00 : f32
    %245 = vector.broadcast %cst_69 : f32 to vector<8x128xf32>
    %246 = arith.addf %245, %244 : vector<8x128xf32>
    %247 = arith.divf %245, %246 : vector<8x128xf32>
    %248 = vector.extract_strided_slice %239 {offsets = [0, 128], sizes = [8, 128], strides = [1, 1]} : vector<8x384xf32> to vector<8x128xf32>
    %249 = vector.extract_strided_slice %236 {offsets = [0, 128], sizes = [8, 128], strides = [1, 1]} : vector<8x384xf32> to vector<8x128xf32>
    %250 = arith.addf %248, %249 : vector<8x128xf32>
    %251 = arith.negf %250 : vector<8x128xf32>
    %252 = math.exp %251 : vector<8x128xf32>
    %cst_70 = arith.constant 1.000000e+00 : f32
    %253 = vector.broadcast %cst_70 : f32 to vector<8x128xf32>
    %254 = arith.addf %253, %252 : vector<8x128xf32>
    %255 = arith.divf %253, %254 : vector<8x128xf32>
    %256 = vector.extract_strided_slice %239 {offsets = [0, 256], sizes = [8, 128], strides = [1, 1]} : vector<8x384xf32> to vector<8x128xf32>
    %257 = vector.extract_strided_slice %236 {offsets = [0, 256], sizes = [8, 128], strides = [1, 1]} : vector<8x384xf32> to vector<8x128xf32>
    %258 = arith.addf %257, %17 : vector<8x128xf32>
    %259 = arith.mulf %247, %258 : vector<8x128xf32>
    %260 = arith.addf %256, %259 : vector<8x128xf32>
    %261 = math.tanh %260 : vector<8x128xf32>
    %cst_71 = arith.constant 1.000000e+00 : f32
    %262 = vector.broadcast %cst_71 : f32 to vector<8x128xf32>
    %263 = arith.subf %262, %255 : vector<8x128xf32>
    %264 = arith.mulf %263, %261 : vector<8x128xf32>
    %265 = arith.mulf %255, %230 : vector<8x128xf32>
    %266 = arith.addf %264, %265 : vector<8x128xf32>
    %267 = arith.index_cast %c6_i32 : i32 to index
    %c0_72 = arith.constant 0 : index
    %c0_73 = arith.constant 0 : index
    %268 = vector.load %arg8[%267, %c0_72, %c0_73] : memref<8x8x128xf32, #tpu.memory_space<vmem>>, vector<1x8x128xf32>
    %269 = vector.shape_cast %268 : vector<1x8x128xf32> to vector<8x128xf32>
    %270 = vector.shape_cast %266 : vector<8x128xf32> to vector<1x8x128xf32>
    tpu.vector_store %arg8[%267, %c0_72, %c0_73], %270 {strides = array<i32>} : memref<8x8x128xf32, #tpu.memory_space<vmem>>, vector<1x8x128xf32>,
    %c7_i32 = arith.constant 7 : i32
    %271 = arith.truncf %266 : vector<8x128xf32> to vector<8x128xbf16>
    %cst_74 = arith.constant dense<0.000000e+00> : vector<8x384xf32>
    %272 = tpu.matmul %271, %13, %cst_74 {dimension_numbers = #tpu.dot_dimension_numbers<[1], [0], [0], [1], [0, 0, 1, 1], [], []>} : vector<8x128xbf16>, vector<128x384xbf16>, vector<8x384xf32> -> vector<8x384xf32>
    %273 = arith.index_cast %c7_i32 : i32 to index
    %c0_75 = arith.constant 0 : index
    %c0_76 = arith.constant 0 : index
    %274 = vector.load %arg9[%273, %c0_75, %c0_76] : memref<8x8x384xf32, #tpu.memory_space<vmem>>, vector<1x8x384xf32>
    %275 = vector.shape_cast %274 : vector<1x8x384xf32> to vector<8x384xf32>
    %276 = vector.extract_strided_slice %275 {offsets = [0, 0], sizes = [8, 128], strides = [1, 1]} : vector<8x384xf32> to vector<8x128xf32>
    %277 = vector.extract_strided_slice %272 {offsets = [0, 0], sizes = [8, 128], strides = [1, 1]} : vector<8x384xf32> to vector<8x128xf32>
    %278 = arith.addf %276, %277 : vector<8x128xf32>
    %279 = arith.negf %278 : vector<8x128xf32>
    %280 = math.exp %279 : vector<8x128xf32>
    %cst_77 = arith.constant 1.000000e+00 : f32
    %281 = vector.broadcast %cst_77 : f32 to vector<8x128xf32>
    %282 = arith.addf %281, %280 : vector<8x128xf32>
    %283 = arith.divf %281, %282 : vector<8x128xf32>
    %284 = vector.extract_strided_slice %275 {offsets = [0, 128], sizes = [8, 128], strides = [1, 1]} : vector<8x384xf32> to vector<8x128xf32>
    %285 = vector.extract_strided_slice %272 {offsets = [0, 128], sizes = [8, 128], strides = [1, 1]} : vector<8x384xf32> to vector<8x128xf32>
    %286 = arith.addf %284, %285 : vector<8x128xf32>
    %287 = arith.negf %286 : vector<8x128xf32>
    %288 = math.exp %287 : vector<8x128xf32>
    %cst_78 = arith.constant 1.000000e+00 : f32
    %289 = vector.broadcast %cst_78 : f32 to vector<8x128xf32>
    %290 = arith.addf %289, %288 : vector<8x128xf32>
    %291 = arith.divf %289, %290 : vector<8x128xf32>
    %292 = vector.extract_strided_slice %275 {offsets = [0, 256], sizes = [8, 128], strides = [1, 1]} : vector<8x384xf32> to vector<8x128xf32>
    %293 = vector.extract_strided_slice %272 {offsets = [0, 256], sizes = [8, 128], strides = [1, 1]} : vector<8x384xf32> to vector<8x128xf32>
    %294 = arith.addf %293, %17 : vector<8x128xf32>
    %295 = arith.mulf %283, %294 : vector<8x128xf32>
    %296 = arith.addf %292, %295 : vector<8x128xf32>
    %297 = math.tanh %296 : vector<8x128xf32>
    %cst_79 = arith.constant 1.000000e+00 : f32
    %298 = vector.broadcast %cst_79 : f32 to vector<8x128xf32>
    %299 = arith.subf %298, %291 : vector<8x128xf32>
    %300 = arith.mulf %299, %297 : vector<8x128xf32>
    %301 = arith.mulf %291, %266 : vector<8x128xf32>
    %302 = arith.addf %300, %301 : vector<8x128xf32>
    %303 = arith.index_cast %c7_i32 : i32 to index
    %c0_80 = arith.constant 0 : index
    %c0_81 = arith.constant 0 : index
    %304 = vector.load %arg8[%303, %c0_80, %c0_81] : memref<8x8x128xf32, #tpu.memory_space<vmem>>, vector<1x8x128xf32>
    %305 = vector.shape_cast %304 : vector<1x8x128xf32> to vector<8x128xf32>
    %306 = vector.shape_cast %302 : vector<8x128xf32> to vector<1x8x128xf32>
    tpu.vector_store %arg8[%303, %c0_80, %c0_81], %306 {strides = array<i32>} : memref<8x8x128xf32, #tpu.memory_space<vmem>>, vector<1x8x128xf32>,
    %c8_i32 = arith.constant 8 : i32
    %c0_82 = arith.constant 0 : index
    %c0_83 = arith.constant 0 : index
    %c0_84 = arith.constant 0 : index
    %307 = vector.load %arg8[%c0_82, %c0_83, %c0_84] : memref<8x8x128xf32, #tpu.memory_space<vmem>>, vector<8x8x128xf32>
    %308 = vector.shape_cast %307 : vector<8x8x128xf32> to vector<64x128xf32>
    %309 = arith.truncf %308 : vector<64x128xf32> to vector<64x128xbf16>
    %c1 = arith.constant 1 : index
    %c0_85 = arith.constant 0 : index
    %c0_86 = arith.constant 0 : index
    %310 = vector.load %arg3[%c1, %c0_85, %c0_86] : memref<2x128x384xbf16, #tpu.memory_space<vmem>>, vector<1x128x384xbf16>
    %311 = vector.shape_cast %310 : vector<1x128x384xbf16> to vector<128x384xbf16>
    %cst_87 = arith.constant dense<0.000000e+00> : vector<64x384xf32>
    %312 = tpu.matmul %309, %311, %cst_87 {dimension_numbers = #tpu.dot_dimension_numbers<[1], [0], [0], [1], [0, 0, 1, 1], [], []>} : vector<64x128xbf16>, vector<128x384xbf16>, vector<64x384xf32> -> vector<64x384xf32>
    %313 = vector.shape_cast %312 : vector<64x384xf32> to vector<8x8x384xf32>
    %c1_88 = arith.constant 1 : index
    %c0_89 = arith.constant 0 : index
    %c0_90 = arith.constant 0 : index
    %314 = vector.load %arg5[%c1_88, %c0_89, %c0_90] : memref<2x1x384xf32, #tpu.memory_space<vmem>>, vector<1x1x384xf32>
    %315 = vector.shape_cast %314 : vector<1x1x384xf32> to vector<1x384xf32>
    %316 = vector.shape_cast %315 : vector<1x384xf32> to vector<1x1x384xf32>
    %317 = vector.broadcast %316 : vector<1x1x384xf32> to vector<8x8x384xf32>
    %318 = arith.addf %313, %317 : vector<8x8x384xf32>
    %c0_91 = arith.constant 0 : index
    %c0_92 = arith.constant 0 : index
    %c0_93 = arith.constant 0 : index
    %319 = vector.load %arg9[%c0_91, %c0_92, %c0_93] : memref<8x8x384xf32, #tpu.memory_space<vmem>>, vector<8x8x384xf32>
    tpu.vector_store %arg9[%c0_91, %c0_92, %c0_93], %318 {strides = array<i32>} : memref<8x8x384xf32, #tpu.memory_space<vmem>>, vector<8x8x384xf32>,
    %c1_94 = arith.constant 1 : index
    %c0_95 = arith.constant 0 : index
    %c0_96 = arith.constant 0 : index
    %320 = vector.load %arg4[%c1_94, %c0_95, %c0_96] : memref<2x128x384xbf16, #tpu.memory_space<vmem>>, vector<1x128x384xbf16>
    %321 = vector.shape_cast %320 : vector<1x128x384xbf16> to vector<128x384xbf16>
    %c1_97 = arith.constant 1 : index
    %c0_98 = arith.constant 0 : index
    %c0_99 = arith.constant 0 : index
    %322 = vector.load %arg6[%c1_97, %c0_98, %c0_99] : memref<2x1x128xf32, #tpu.memory_space<vmem>>, vector<1x1x128xf32>
    %323 = vector.shape_cast %322 : vector<1x1x128xf32> to vector<1x128xf32>
    %324 = vector.shape_cast %323 : vector<1x128xf32> to vector<1x128xf32>
    %325 = vector.broadcast %324 : vector<1x128xf32> to vector<8x128xf32>
    %cst_100 = arith.constant 0.000000e+00 : f32
    %326 = vector.broadcast %cst_100 : f32 to vector<8x128xf32>
    %c0_i32_101 = arith.constant 0 : i32
    %327 = arith.truncf %326 : vector<8x128xf32> to vector<8x128xbf16>
    %cst_102 = arith.constant dense<0.000000e+00> : vector<8x384xf32>
    %328 = tpu.matmul %327, %321, %cst_102 {dimension_numbers = #tpu.dot_dimension_numbers<[1], [0], [0], [1], [0, 0, 1, 1], [], []>} : vector<8x128xbf16>, vector<128x384xbf16>, vector<8x384xf32> -> vector<8x384xf32>
    %329 = arith.index_cast %c0_i32_101 : i32 to index
    %c0_103 = arith.constant 0 : index
    %c0_104 = arith.constant 0 : index
    %330 = vector.load %arg9[%329, %c0_103, %c0_104] : memref<8x8x384xf32, #tpu.memory_space<vmem>>, vector<1x8x384xf32>
    %331 = vector.shape_cast %330 : vector<1x8x384xf32> to vector<8x384xf32>
    %332 = vector.extract_strided_slice %331 {offsets = [0, 0], sizes = [8, 128], strides = [1, 1]} : vector<8x384xf32> to vector<8x128xf32>
    %333 = vector.extract_strided_slice %328 {offsets = [0, 0], sizes = [8, 128], strides = [1, 1]} : vector<8x384xf32> to vector<8x128xf32>
    %334 = arith.addf %332, %333 : vector<8x128xf32>
    %335 = arith.negf %334 : vector<8x128xf32>
    %336 = math.exp %335 : vector<8x128xf32>
    %cst_105 = arith.constant 1.000000e+00 : f32
    %337 = vector.broadcast %cst_105 : f32 to vector<8x128xf32>
    %338 = arith.addf %337, %336 : vector<8x128xf32>
    %339 = arith.divf %337, %338 : vector<8x128xf32>
    %340 = vector.extract_strided_slice %331 {offsets = [0, 128], sizes = [8, 128], strides = [1, 1]} : vector<8x384xf32> to vector<8x128xf32>
    %341 = vector.extract_strided_slice %328 {offsets = [0, 128], sizes = [8, 128], strides = [1, 1]} : vector<8x384xf32> to vector<8x128xf32>
    %342 = arith.addf %340, %341 : vector<8x128xf32>
    %343 = arith.negf %342 : vector<8x128xf32>
    %344 = math.exp %343 : vector<8x128xf32>
    %cst_106 = arith.constant 1.000000e+00 : f32
    %345 = vector.broadcast %cst_106 : f32 to vector<8x128xf32>
    %346 = arith.addf %345, %344 : vector<8x128xf32>
    %347 = arith.divf %345, %346 : vector<8x128xf32>
    %348 = vector.extract_strided_slice %331 {offsets = [0, 256], sizes = [8, 128], strides = [1, 1]} : vector<8x384xf32> to vector<8x128xf32>
    %349 = vector.extract_strided_slice %328 {offsets = [0, 256], sizes = [8, 128], strides = [1, 1]} : vector<8x384xf32> to vector<8x128xf32>
    %350 = arith.addf %349, %325 : vector<8x128xf32>
    %351 = arith.mulf %339, %350 : vector<8x128xf32>
    %352 = arith.addf %348, %351 : vector<8x128xf32>
    %353 = math.tanh %352 : vector<8x128xf32>
    %cst_107 = arith.constant 1.000000e+00 : f32
    %354 = vector.broadcast %cst_107 : f32 to vector<8x128xf32>
    %355 = arith.subf %354, %347 : vector<8x128xf32>
    %356 = arith.mulf %355, %353 : vector<8x128xf32>
    %357 = arith.mulf %347, %326 : vector<8x128xf32>
    %358 = arith.addf %356, %357 : vector<8x128xf32>
    %359 = arith.index_cast %c0_i32_101 : i32 to index
    %c0_108 = arith.constant 0 : index
    %c0_109 = arith.constant 0 : index
    %360 = vector.load %arg8[%359, %c0_108, %c0_109] : memref<8x8x128xf32, #tpu.memory_space<vmem>>, vector<1x8x128xf32>
    %361 = vector.shape_cast %360 : vector<1x8x128xf32> to vector<8x128xf32>
    %362 = vector.shape_cast %358 : vector<8x128xf32> to vector<1x8x128xf32>
    tpu.vector_store %arg8[%359, %c0_108, %c0_109], %362 {strides = array<i32>} : memref<8x8x128xf32, #tpu.memory_space<vmem>>, vector<1x8x128xf32>,
    %c1_i32_110 = arith.constant 1 : i32
    %363 = arith.truncf %358 : vector<8x128xf32> to vector<8x128xbf16>
    %cst_111 = arith.constant dense<0.000000e+00> : vector<8x384xf32>
    %364 = tpu.matmul %363, %321, %cst_111 {dimension_numbers = #tpu.dot_dimension_numbers<[1], [0], [0], [1], [0, 0, 1, 1], [], []>} : vector<8x128xbf16>, vector<128x384xbf16>, vector<8x384xf32> -> vector<8x384xf32>
    %365 = arith.index_cast %c1_i32_110 : i32 to index
    %c0_112 = arith.constant 0 : index
    %c0_113 = arith.constant 0 : index
    %366 = vector.load %arg9[%365, %c0_112, %c0_113] : memref<8x8x384xf32, #tpu.memory_space<vmem>>, vector<1x8x384xf32>
    %367 = vector.shape_cast %366 : vector<1x8x384xf32> to vector<8x384xf32>
    %368 = vector.extract_strided_slice %367 {offsets = [0, 0], sizes = [8, 128], strides = [1, 1]} : vector<8x384xf32> to vector<8x128xf32>
    %369 = vector.extract_strided_slice %364 {offsets = [0, 0], sizes = [8, 128], strides = [1, 1]} : vector<8x384xf32> to vector<8x128xf32>
    %370 = arith.addf %368, %369 : vector<8x128xf32>
    %371 = arith.negf %370 : vector<8x128xf32>
    %372 = math.exp %371 : vector<8x128xf32>
    %cst_114 = arith.constant 1.000000e+00 : f32
    %373 = vector.broadcast %cst_114 : f32 to vector<8x128xf32>
    %374 = arith.addf %373, %372 : vector<8x128xf32>
    %375 = arith.divf %373, %374 : vector<8x128xf32>
    %376 = vector.extract_strided_slice %367 {offsets = [0, 128], sizes = [8, 128], strides = [1, 1]} : vector<8x384xf32> to vector<8x128xf32>
    %377 = vector.extract_strided_slice %364 {offsets = [0, 128], sizes = [8, 128], strides = [1, 1]} : vector<8x384xf32> to vector<8x128xf32>
    %378 = arith.addf %376, %377 : vector<8x128xf32>
    %379 = arith.negf %378 : vector<8x128xf32>
    %380 = math.exp %379 : vector<8x128xf32>
    %cst_115 = arith.constant 1.000000e+00 : f32
    %381 = vector.broadcast %cst_115 : f32 to vector<8x128xf32>
    %382 = arith.addf %381, %380 : vector<8x128xf32>
    %383 = arith.divf %381, %382 : vector<8x128xf32>
    %384 = vector.extract_strided_slice %367 {offsets = [0, 256], sizes = [8, 128], strides = [1, 1]} : vector<8x384xf32> to vector<8x128xf32>
    %385 = vector.extract_strided_slice %364 {offsets = [0, 256], sizes = [8, 128], strides = [1, 1]} : vector<8x384xf32> to vector<8x128xf32>
    %386 = arith.addf %385, %325 : vector<8x128xf32>
    %387 = arith.mulf %375, %386 : vector<8x128xf32>
    %388 = arith.addf %384, %387 : vector<8x128xf32>
    %389 = math.tanh %388 : vector<8x128xf32>
    %cst_116 = arith.constant 1.000000e+00 : f32
    %390 = vector.broadcast %cst_116 : f32 to vector<8x128xf32>
    %391 = arith.subf %390, %383 : vector<8x128xf32>
    %392 = arith.mulf %391, %389 : vector<8x128xf32>
    %393 = arith.mulf %383, %358 : vector<8x128xf32>
    %394 = arith.addf %392, %393 : vector<8x128xf32>
    %395 = arith.index_cast %c1_i32_110 : i32 to index
    %c0_117 = arith.constant 0 : index
    %c0_118 = arith.constant 0 : index
    %396 = vector.load %arg8[%395, %c0_117, %c0_118] : memref<8x8x128xf32, #tpu.memory_space<vmem>>, vector<1x8x128xf32>
    %397 = vector.shape_cast %396 : vector<1x8x128xf32> to vector<8x128xf32>
    %398 = vector.shape_cast %394 : vector<8x128xf32> to vector<1x8x128xf32>
    tpu.vector_store %arg8[%395, %c0_117, %c0_118], %398 {strides = array<i32>} : memref<8x8x128xf32, #tpu.memory_space<vmem>>, vector<1x8x128xf32>,
    %c2_i32_119 = arith.constant 2 : i32
    %399 = arith.truncf %394 : vector<8x128xf32> to vector<8x128xbf16>
    %cst_120 = arith.constant dense<0.000000e+00> : vector<8x384xf32>
    %400 = tpu.matmul %399, %321, %cst_120 {dimension_numbers = #tpu.dot_dimension_numbers<[1], [0], [0], [1], [0, 0, 1, 1], [], []>} : vector<8x128xbf16>, vector<128x384xbf16>, vector<8x384xf32> -> vector<8x384xf32>
    %401 = arith.index_cast %c2_i32_119 : i32 to index
    %c0_121 = arith.constant 0 : index
    %c0_122 = arith.constant 0 : index
    %402 = vector.load %arg9[%401, %c0_121, %c0_122] : memref<8x8x384xf32, #tpu.memory_space<vmem>>, vector<1x8x384xf32>
    %403 = vector.shape_cast %402 : vector<1x8x384xf32> to vector<8x384xf32>
    %404 = vector.extract_strided_slice %403 {offsets = [0, 0], sizes = [8, 128], strides = [1, 1]} : vector<8x384xf32> to vector<8x128xf32>
    %405 = vector.extract_strided_slice %400 {offsets = [0, 0], sizes = [8, 128], strides = [1, 1]} : vector<8x384xf32> to vector<8x128xf32>
    %406 = arith.addf %404, %405 : vector<8x128xf32>
    %407 = arith.negf %406 : vector<8x128xf32>
    %408 = math.exp %407 : vector<8x128xf32>
    %cst_123 = arith.constant 1.000000e+00 : f32
    %409 = vector.broadcast %cst_123 : f32 to vector<8x128xf32>
    %410 = arith.addf %409, %408 : vector<8x128xf32>
    %411 = arith.divf %409, %410 : vector<8x128xf32>
    %412 = vector.extract_strided_slice %403 {offsets = [0, 128], sizes = [8, 128], strides = [1, 1]} : vector<8x384xf32> to vector<8x128xf32>
    %413 = vector.extract_strided_slice %400 {offsets = [0, 128], sizes = [8, 128], strides = [1, 1]} : vector<8x384xf32> to vector<8x128xf32>
    %414 = arith.addf %412, %413 : vector<8x128xf32>
    %415 = arith.negf %414 : vector<8x128xf32>
    %416 = math.exp %415 : vector<8x128xf32>
    %cst_124 = arith.constant 1.000000e+00 : f32
    %417 = vector.broadcast %cst_124 : f32 to vector<8x128xf32>
    %418 = arith.addf %417, %416 : vector<8x128xf32>
    %419 = arith.divf %417, %418 : vector<8x128xf32>
    %420 = vector.extract_strided_slice %403 {offsets = [0, 256], sizes = [8, 128], strides = [1, 1]} : vector<8x384xf32> to vector<8x128xf32>
    %421 = vector.extract_strided_slice %400 {offsets = [0, 256], sizes = [8, 128], strides = [1, 1]} : vector<8x384xf32> to vector<8x128xf32>
    %422 = arith.addf %421, %325 : vector<8x128xf32>
    %423 = arith.mulf %411, %422 : vector<8x128xf32>
    %424 = arith.addf %420, %423 : vector<8x128xf32>
    %425 = math.tanh %424 : vector<8x128xf32>
    %cst_125 = arith.constant 1.000000e+00 : f32
    %426 = vector.broadcast %cst_125 : f32 to vector<8x128xf32>
    %427 = arith.subf %426, %419 : vector<8x128xf32>
    %428 = arith.mulf %427, %425 : vector<8x128xf32>
    %429 = arith.mulf %419, %394 : vector<8x128xf32>
    %430 = arith.addf %428, %429 : vector<8x128xf32>
    %431 = arith.index_cast %c2_i32_119 : i32 to index
    %c0_126 = arith.constant 0 : index
    %c0_127 = arith.constant 0 : index
    %432 = vector.load %arg8[%431, %c0_126, %c0_127] : memref<8x8x128xf32, #tpu.memory_space<vmem>>, vector<1x8x128xf32>
    %433 = vector.shape_cast %432 : vector<1x8x128xf32> to vector<8x128xf32>
    %434 = vector.shape_cast %430 : vector<8x128xf32> to vector<1x8x128xf32>
    tpu.vector_store %arg8[%431, %c0_126, %c0_127], %434 {strides = array<i32>} : memref<8x8x128xf32, #tpu.memory_space<vmem>>, vector<1x8x128xf32>,
    %c3_i32_128 = arith.constant 3 : i32
    %435 = arith.truncf %430 : vector<8x128xf32> to vector<8x128xbf16>
    %cst_129 = arith.constant dense<0.000000e+00> : vector<8x384xf32>
    %436 = tpu.matmul %435, %321, %cst_129 {dimension_numbers = #tpu.dot_dimension_numbers<[1], [0], [0], [1], [0, 0, 1, 1], [], []>} : vector<8x128xbf16>, vector<128x384xbf16>, vector<8x384xf32> -> vector<8x384xf32>
    %437 = arith.index_cast %c3_i32_128 : i32 to index
    %c0_130 = arith.constant 0 : index
    %c0_131 = arith.constant 0 : index
    %438 = vector.load %arg9[%437, %c0_130, %c0_131] : memref<8x8x384xf32, #tpu.memory_space<vmem>>, vector<1x8x384xf32>
    %439 = vector.shape_cast %438 : vector<1x8x384xf32> to vector<8x384xf32>
    %440 = vector.extract_strided_slice %439 {offsets = [0, 0], sizes = [8, 128], strides = [1, 1]} : vector<8x384xf32> to vector<8x128xf32>
    %441 = vector.extract_strided_slice %436 {offsets = [0, 0], sizes = [8, 128], strides = [1, 1]} : vector<8x384xf32> to vector<8x128xf32>
    %442 = arith.addf %440, %441 : vector<8x128xf32>
    %443 = arith.negf %442 : vector<8x128xf32>
    %444 = math.exp %443 : vector<8x128xf32>
    %cst_132 = arith.constant 1.000000e+00 : f32
    %445 = vector.broadcast %cst_132 : f32 to vector<8x128xf32>
    %446 = arith.addf %445, %444 : vector<8x128xf32>
    %447 = arith.divf %445, %446 : vector<8x128xf32>
    %448 = vector.extract_strided_slice %439 {offsets = [0, 128], sizes = [8, 128], strides = [1, 1]} : vector<8x384xf32> to vector<8x128xf32>
    %449 = vector.extract_strided_slice %436 {offsets = [0, 128], sizes = [8, 128], strides = [1, 1]} : vector<8x384xf32> to vector<8x128xf32>
    %450 = arith.addf %448, %449 : vector<8x128xf32>
    %451 = arith.negf %450 : vector<8x128xf32>
    %452 = math.exp %451 : vector<8x128xf32>
    %cst_133 = arith.constant 1.000000e+00 : f32
    %453 = vector.broadcast %cst_133 : f32 to vector<8x128xf32>
    %454 = arith.addf %453, %452 : vector<8x128xf32>
    %455 = arith.divf %453, %454 : vector<8x128xf32>
    %456 = vector.extract_strided_slice %439 {offsets = [0, 256], sizes = [8, 128], strides = [1, 1]} : vector<8x384xf32> to vector<8x128xf32>
    %457 = vector.extract_strided_slice %436 {offsets = [0, 256], sizes = [8, 128], strides = [1, 1]} : vector<8x384xf32> to vector<8x128xf32>
    %458 = arith.addf %457, %325 : vector<8x128xf32>
    %459 = arith.mulf %447, %458 : vector<8x128xf32>
    %460 = arith.addf %456, %459 : vector<8x128xf32>
    %461 = math.tanh %460 : vector<8x128xf32>
    %cst_134 = arith.constant 1.000000e+00 : f32
    %462 = vector.broadcast %cst_134 : f32 to vector<8x128xf32>
    %463 = arith.subf %462, %455 : vector<8x128xf32>
    %464 = arith.mulf %463, %461 : vector<8x128xf32>
    %465 = arith.mulf %455, %430 : vector<8x128xf32>
    %466 = arith.addf %464, %465 : vector<8x128xf32>
    %467 = arith.index_cast %c3_i32_128 : i32 to index
    %c0_135 = arith.constant 0 : index
    %c0_136 = arith.constant 0 : index
    %468 = vector.load %arg8[%467, %c0_135, %c0_136] : memref<8x8x128xf32, #tpu.memory_space<vmem>>, vector<1x8x128xf32>
    %469 = vector.shape_cast %468 : vector<1x8x128xf32> to vector<8x128xf32>
    %470 = vector.shape_cast %466 : vector<8x128xf32> to vector<1x8x128xf32>
    tpu.vector_store %arg8[%467, %c0_135, %c0_136], %470 {strides = array<i32>} : memref<8x8x128xf32, #tpu.memory_space<vmem>>, vector<1x8x128xf32>,
    %c4_i32_137 = arith.constant 4 : i32
    %471 = arith.truncf %466 : vector<8x128xf32> to vector<8x128xbf16>
    %cst_138 = arith.constant dense<0.000000e+00> : vector<8x384xf32>
    %472 = tpu.matmul %471, %321, %cst_138 {dimension_numbers = #tpu.dot_dimension_numbers<[1], [0], [0], [1], [0, 0, 1, 1], [], []>} : vector<8x128xbf16>, vector<128x384xbf16>, vector<8x384xf32> -> vector<8x384xf32>
    %473 = arith.index_cast %c4_i32_137 : i32 to index
    %c0_139 = arith.constant 0 : index
    %c0_140 = arith.constant 0 : index
    %474 = vector.load %arg9[%473, %c0_139, %c0_140] : memref<8x8x384xf32, #tpu.memory_space<vmem>>, vector<1x8x384xf32>
    %475 = vector.shape_cast %474 : vector<1x8x384xf32> to vector<8x384xf32>
    %476 = vector.extract_strided_slice %475 {offsets = [0, 0], sizes = [8, 128], strides = [1, 1]} : vector<8x384xf32> to vector<8x128xf32>
    %477 = vector.extract_strided_slice %472 {offsets = [0, 0], sizes = [8, 128], strides = [1, 1]} : vector<8x384xf32> to vector<8x128xf32>
    %478 = arith.addf %476, %477 : vector<8x128xf32>
    %479 = arith.negf %478 : vector<8x128xf32>
    %480 = math.exp %479 : vector<8x128xf32>
    %cst_141 = arith.constant 1.000000e+00 : f32
    %481 = vector.broadcast %cst_141 : f32 to vector<8x128xf32>
    %482 = arith.addf %481, %480 : vector<8x128xf32>
    %483 = arith.divf %481, %482 : vector<8x128xf32>
    %484 = vector.extract_strided_slice %475 {offsets = [0, 128], sizes = [8, 128], strides = [1, 1]} : vector<8x384xf32> to vector<8x128xf32>
    %485 = vector.extract_strided_slice %472 {offsets = [0, 128], sizes = [8, 128], strides = [1, 1]} : vector<8x384xf32> to vector<8x128xf32>
    %486 = arith.addf %484, %485 : vector<8x128xf32>
    %487 = arith.negf %486 : vector<8x128xf32>
    %488 = math.exp %487 : vector<8x128xf32>
    %cst_142 = arith.constant 1.000000e+00 : f32
    %489 = vector.broadcast %cst_142 : f32 to vector<8x128xf32>
    %490 = arith.addf %489, %488 : vector<8x128xf32>
    %491 = arith.divf %489, %490 : vector<8x128xf32>
    %492 = vector.extract_strided_slice %475 {offsets = [0, 256], sizes = [8, 128], strides = [1, 1]} : vector<8x384xf32> to vector<8x128xf32>
    %493 = vector.extract_strided_slice %472 {offsets = [0, 256], sizes = [8, 128], strides = [1, 1]} : vector<8x384xf32> to vector<8x128xf32>
    %494 = arith.addf %493, %325 : vector<8x128xf32>
    %495 = arith.mulf %483, %494 : vector<8x128xf32>
    %496 = arith.addf %492, %495 : vector<8x128xf32>
    %497 = math.tanh %496 : vector<8x128xf32>
    %cst_143 = arith.constant 1.000000e+00 : f32
    %498 = vector.broadcast %cst_143 : f32 to vector<8x128xf32>
    %499 = arith.subf %498, %491 : vector<8x128xf32>
    %500 = arith.mulf %499, %497 : vector<8x128xf32>
    %501 = arith.mulf %491, %466 : vector<8x128xf32>
    %502 = arith.addf %500, %501 : vector<8x128xf32>
    %503 = arith.index_cast %c4_i32_137 : i32 to index
    %c0_144 = arith.constant 0 : index
    %c0_145 = arith.constant 0 : index
    %504 = vector.load %arg8[%503, %c0_144, %c0_145] : memref<8x8x128xf32, #tpu.memory_space<vmem>>, vector<1x8x128xf32>
    %505 = vector.shape_cast %504 : vector<1x8x128xf32> to vector<8x128xf32>
    %506 = vector.shape_cast %502 : vector<8x128xf32> to vector<1x8x128xf32>
    tpu.vector_store %arg8[%503, %c0_144, %c0_145], %506 {strides = array<i32>} : memref<8x8x128xf32, #tpu.memory_space<vmem>>, vector<1x8x128xf32>,
    %c5_i32_146 = arith.constant 5 : i32
    %507 = arith.truncf %502 : vector<8x128xf32> to vector<8x128xbf16>
    %cst_147 = arith.constant dense<0.000000e+00> : vector<8x384xf32>
    %508 = tpu.matmul %507, %321, %cst_147 {dimension_numbers = #tpu.dot_dimension_numbers<[1], [0], [0], [1], [0, 0, 1, 1], [], []>} : vector<8x128xbf16>, vector<128x384xbf16>, vector<8x384xf32> -> vector<8x384xf32>
    %509 = arith.index_cast %c5_i32_146 : i32 to index
    %c0_148 = arith.constant 0 : index
    %c0_149 = arith.constant 0 : index
    %510 = vector.load %arg9[%509, %c0_148, %c0_149] : memref<8x8x384xf32, #tpu.memory_space<vmem>>, vector<1x8x384xf32>
    %511 = vector.shape_cast %510 : vector<1x8x384xf32> to vector<8x384xf32>
    %512 = vector.extract_strided_slice %511 {offsets = [0, 0], sizes = [8, 128], strides = [1, 1]} : vector<8x384xf32> to vector<8x128xf32>
    %513 = vector.extract_strided_slice %508 {offsets = [0, 0], sizes = [8, 128], strides = [1, 1]} : vector<8x384xf32> to vector<8x128xf32>
    %514 = arith.addf %512, %513 : vector<8x128xf32>
    %515 = arith.negf %514 : vector<8x128xf32>
    %516 = math.exp %515 : vector<8x128xf32>
    %cst_150 = arith.constant 1.000000e+00 : f32
    %517 = vector.broadcast %cst_150 : f32 to vector<8x128xf32>
    %518 = arith.addf %517, %516 : vector<8x128xf32>
    %519 = arith.divf %517, %518 : vector<8x128xf32>
    %520 = vector.extract_strided_slice %511 {offsets = [0, 128], sizes = [8, 128], strides = [1, 1]} : vector<8x384xf32> to vector<8x128xf32>
    %521 = vector.extract_strided_slice %508 {offsets = [0, 128], sizes = [8, 128], strides = [1, 1]} : vector<8x384xf32> to vector<8x128xf32>
    %522 = arith.addf %520, %521 : vector<8x128xf32>
    %523 = arith.negf %522 : vector<8x128xf32>
    %524 = math.exp %523 : vector<8x128xf32>
    %cst_151 = arith.constant 1.000000e+00 : f32
    %525 = vector.broadcast %cst_151 : f32 to vector<8x128xf32>
    %526 = arith.addf %525, %524 : vector<8x128xf32>
    %527 = arith.divf %525, %526 : vector<8x128xf32>
    %528 = vector.extract_strided_slice %511 {offsets = [0, 256], sizes = [8, 128], strides = [1, 1]} : vector<8x384xf32> to vector<8x128xf32>
    %529 = vector.extract_strided_slice %508 {offsets = [0, 256], sizes = [8, 128], strides = [1, 1]} : vector<8x384xf32> to vector<8x128xf32>
    %530 = arith.addf %529, %325 : vector<8x128xf32>
    %531 = arith.mulf %519, %530 : vector<8x128xf32>
    %532 = arith.addf %528, %531 : vector<8x128xf32>
    %533 = math.tanh %532 : vector<8x128xf32>
    %cst_152 = arith.constant 1.000000e+00 : f32
    %534 = vector.broadcast %cst_152 : f32 to vector<8x128xf32>
    %535 = arith.subf %534, %527 : vector<8x128xf32>
    %536 = arith.mulf %535, %533 : vector<8x128xf32>
    %537 = arith.mulf %527, %502 : vector<8x128xf32>
    %538 = arith.addf %536, %537 : vector<8x128xf32>
    %539 = arith.index_cast %c5_i32_146 : i32 to index
    %c0_153 = arith.constant 0 : index
    %c0_154 = arith.constant 0 : index
    %540 = vector.load %arg8[%539, %c0_153, %c0_154] : memref<8x8x128xf32, #tpu.memory_space<vmem>>, vector<1x8x128xf32>
    %541 = vector.shape_cast %540 : vector<1x8x128xf32> to vector<8x128xf32>
    %542 = vector.shape_cast %538 : vector<8x128xf32> to vector<1x8x128xf32>
    tpu.vector_store %arg8[%539, %c0_153, %c0_154], %542 {strides = array<i32>} : memref<8x8x128xf32, #tpu.memory_space<vmem>>, vector<1x8x128xf32>,
    %c6_i32_155 = arith.constant 6 : i32
    %543 = arith.truncf %538 : vector<8x128xf32> to vector<8x128xbf16>
    %cst_156 = arith.constant dense<0.000000e+00> : vector<8x384xf32>
    %544 = tpu.matmul %543, %321, %cst_156 {dimension_numbers = #tpu.dot_dimension_numbers<[1], [0], [0], [1], [0, 0, 1, 1], [], []>} : vector<8x128xbf16>, vector<128x384xbf16>, vector<8x384xf32> -> vector<8x384xf32>
    %545 = arith.index_cast %c6_i32_155 : i32 to index
    %c0_157 = arith.constant 0 : index
    %c0_158 = arith.constant 0 : index
    %546 = vector.load %arg9[%545, %c0_157, %c0_158] : memref<8x8x384xf32, #tpu.memory_space<vmem>>, vector<1x8x384xf32>
    %547 = vector.shape_cast %546 : vector<1x8x384xf32> to vector<8x384xf32>
    %548 = vector.extract_strided_slice %547 {offsets = [0, 0], sizes = [8, 128], strides = [1, 1]} : vector<8x384xf32> to vector<8x128xf32>
    %549 = vector.extract_strided_slice %544 {offsets = [0, 0], sizes = [8, 128], strides = [1, 1]} : vector<8x384xf32> to vector<8x128xf32>
    %550 = arith.addf %548, %549 : vector<8x128xf32>
    %551 = arith.negf %550 : vector<8x128xf32>
    %552 = math.exp %551 : vector<8x128xf32>
    %cst_159 = arith.constant 1.000000e+00 : f32
    %553 = vector.broadcast %cst_159 : f32 to vector<8x128xf32>
    %554 = arith.addf %553, %552 : vector<8x128xf32>
    %555 = arith.divf %553, %554 : vector<8x128xf32>
    %556 = vector.extract_strided_slice %547 {offsets = [0, 128], sizes = [8, 128], strides = [1, 1]} : vector<8x384xf32> to vector<8x128xf32>
    %557 = vector.extract_strided_slice %544 {offsets = [0, 128], sizes = [8, 128], strides = [1, 1]} : vector<8x384xf32> to vector<8x128xf32>
    %558 = arith.addf %556, %557 : vector<8x128xf32>
    %559 = arith.negf %558 : vector<8x128xf32>
    %560 = math.exp %559 : vector<8x128xf32>
    %cst_160 = arith.constant 1.000000e+00 : f32
    %561 = vector.broadcast %cst_160 : f32 to vector<8x128xf32>
    %562 = arith.addf %561, %560 : vector<8x128xf32>
    %563 = arith.divf %561, %562 : vector<8x128xf32>
    %564 = vector.extract_strided_slice %547 {offsets = [0, 256], sizes = [8, 128], strides = [1, 1]} : vector<8x384xf32> to vector<8x128xf32>
    %565 = vector.extract_strided_slice %544 {offsets = [0, 256], sizes = [8, 128], strides = [1, 1]} : vector<8x384xf32> to vector<8x128xf32>
    %566 = arith.addf %565, %325 : vector<8x128xf32>
    %567 = arith.mulf %555, %566 : vector<8x128xf32>
    %568 = arith.addf %564, %567 : vector<8x128xf32>
    %569 = math.tanh %568 : vector<8x128xf32>
    %cst_161 = arith.constant 1.000000e+00 : f32
    %570 = vector.broadcast %cst_161 : f32 to vector<8x128xf32>
    %571 = arith.subf %570, %563 : vector<8x128xf32>
    %572 = arith.mulf %571, %569 : vector<8x128xf32>
    %573 = arith.mulf %563, %538 : vector<8x128xf32>
    %574 = arith.addf %572, %573 : vector<8x128xf32>
    %575 = arith.index_cast %c6_i32_155 : i32 to index
    %c0_162 = arith.constant 0 : index
    %c0_163 = arith.constant 0 : index
    %576 = vector.load %arg8[%575, %c0_162, %c0_163] : memref<8x8x128xf32, #tpu.memory_space<vmem>>, vector<1x8x128xf32>
    %577 = vector.shape_cast %576 : vector<1x8x128xf32> to vector<8x128xf32>
    %578 = vector.shape_cast %574 : vector<8x128xf32> to vector<1x8x128xf32>
    tpu.vector_store %arg8[%575, %c0_162, %c0_163], %578 {strides = array<i32>} : memref<8x8x128xf32, #tpu.memory_space<vmem>>, vector<1x8x128xf32>,
    %c7_i32_164 = arith.constant 7 : i32
    %579 = arith.truncf %574 : vector<8x128xf32> to vector<8x128xbf16>
    %cst_165 = arith.constant dense<0.000000e+00> : vector<8x384xf32>
    %580 = tpu.matmul %579, %321, %cst_165 {dimension_numbers = #tpu.dot_dimension_numbers<[1], [0], [0], [1], [0, 0, 1, 1], [], []>} : vector<8x128xbf16>, vector<128x384xbf16>, vector<8x384xf32> -> vector<8x384xf32>
    %581 = arith.index_cast %c7_i32_164 : i32 to index
    %c0_166 = arith.constant 0 : index
    %c0_167 = arith.constant 0 : index
    %582 = vector.load %arg9[%581, %c0_166, %c0_167] : memref<8x8x384xf32, #tpu.memory_space<vmem>>, vector<1x8x384xf32>
    %583 = vector.shape_cast %582 : vector<1x8x384xf32> to vector<8x384xf32>
    %584 = vector.extract_strided_slice %583 {offsets = [0, 0], sizes = [8, 128], strides = [1, 1]} : vector<8x384xf32> to vector<8x128xf32>
    %585 = vector.extract_strided_slice %580 {offsets = [0, 0], sizes = [8, 128], strides = [1, 1]} : vector<8x384xf32> to vector<8x128xf32>
    %586 = arith.addf %584, %585 : vector<8x128xf32>
    %587 = arith.negf %586 : vector<8x128xf32>
    %588 = math.exp %587 : vector<8x128xf32>
    %cst_168 = arith.constant 1.000000e+00 : f32
    %589 = vector.broadcast %cst_168 : f32 to vector<8x128xf32>
    %590 = arith.addf %589, %588 : vector<8x128xf32>
    %591 = arith.divf %589, %590 : vector<8x128xf32>
    %592 = vector.extract_strided_slice %583 {offsets = [0, 128], sizes = [8, 128], strides = [1, 1]} : vector<8x384xf32> to vector<8x128xf32>
    %593 = vector.extract_strided_slice %580 {offsets = [0, 128], sizes = [8, 128], strides = [1, 1]} : vector<8x384xf32> to vector<8x128xf32>
    %594 = arith.addf %592, %593 : vector<8x128xf32>
    %595 = arith.negf %594 : vector<8x128xf32>
    %596 = math.exp %595 : vector<8x128xf32>
    %cst_169 = arith.constant 1.000000e+00 : f32
    %597 = vector.broadcast %cst_169 : f32 to vector<8x128xf32>
    %598 = arith.addf %597, %596 : vector<8x128xf32>
    %599 = arith.divf %597, %598 : vector<8x128xf32>
    %600 = vector.extract_strided_slice %583 {offsets = [0, 256], sizes = [8, 128], strides = [1, 1]} : vector<8x384xf32> to vector<8x128xf32>
    %601 = vector.extract_strided_slice %580 {offsets = [0, 256], sizes = [8, 128], strides = [1, 1]} : vector<8x384xf32> to vector<8x128xf32>
    %602 = arith.addf %601, %325 : vector<8x128xf32>
    %603 = arith.mulf %591, %602 : vector<8x128xf32>
    %604 = arith.addf %600, %603 : vector<8x128xf32>
    %605 = math.tanh %604 : vector<8x128xf32>
    %cst_170 = arith.constant 1.000000e+00 : f32
    %606 = vector.broadcast %cst_170 : f32 to vector<8x128xf32>
    %607 = arith.subf %606, %599 : vector<8x128xf32>
    %608 = arith.mulf %607, %605 : vector<8x128xf32>
    %609 = arith.mulf %599, %574 : vector<8x128xf32>
    %610 = arith.addf %608, %609 : vector<8x128xf32>
    %611 = arith.index_cast %c7_i32_164 : i32 to index
    %c0_171 = arith.constant 0 : index
    %c0_172 = arith.constant 0 : index
    %612 = vector.load %arg8[%611, %c0_171, %c0_172] : memref<8x8x128xf32, #tpu.memory_space<vmem>>, vector<1x8x128xf32>
    %613 = vector.shape_cast %612 : vector<1x8x128xf32> to vector<8x128xf32>
    %614 = vector.shape_cast %610 : vector<8x128xf32> to vector<1x8x128xf32>
    tpu.vector_store %arg8[%611, %c0_171, %c0_172], %614 {strides = array<i32>} : memref<8x8x128xf32, #tpu.memory_space<vmem>>, vector<1x8x128xf32>,
    %c8_i32_173 = arith.constant 8 : i32
    %c0_174 = arith.constant 0 : index
    %c0_175 = arith.constant 0 : index
    %c0_176 = arith.constant 0 : index
    %615 = vector.load %arg8[%c0_174, %c0_175, %c0_176] : memref<8x8x128xf32, #tpu.memory_space<vmem>>, vector<8x8x128xf32>
    %616 = vector.extract_strided_slice %615 {offsets = [7, 0, 0], sizes = [1, 8, 128], strides = [1, 1, 1]} : vector<8x8x128xf32> to vector<1x8x128xf32>
    %617 = vector.shape_cast %616 : vector<1x8x128xf32> to vector<8x128xf32>
    %c0_177 = arith.constant 0 : index
    %c0_178 = arith.constant 0 : index
    %c0_179 = arith.constant 0 : index
    %618 = vector.load %arg2[%c0_177, %c0_178, %c0_179] : memref<8x8x1xf32, #tpu.memory_space<vmem>>, vector<8x8x1xf32>
    %619 = vector.broadcast %618 : vector<8x8x1xf32> to vector<8x8x128xf32>
    %620 = arith.mulf %619, %615 : vector<8x8x128xf32>
    %cst_180 = arith.constant dense<0.000000e+00> : vector<8x128xf32>
    %621 = vector.multi_reduction <add>, %620, %cst_180 [0] : vector<8x8x128xf32> to vector<8x128xf32>
    %622 = arith.addf %617, %621 : vector<8x128xf32>
    %c0_181 = arith.constant 0 : index
    %c0_182 = arith.constant 0 : index
    %623 = vector.load %arg7[%c0_181, %c0_182] : memref<8x128xf32, #tpu.memory_space<vmem>>, vector<8x128xf32>
    tpu.vector_store %arg7[%c0_181, %c0_182], %622 {strides = array<i32>} : memref<8x128xf32, #tpu.memory_space<vmem>>, vector<8x128xf32>,
    return
  }
  func.func @transform_0(%arg0: i32) -> (i32, i32, i32) {
    %c0_i32 = arith.constant 0 : i32
    %c0_i32_0 = arith.constant 0 : i32
    %c0_i32_1 = arith.constant 0 : i32
    return %c0_i32, %arg0, %c0_i32_0 : i32, i32, i32
  }
  func.func @transform_1(%arg0: i32) -> (i32, i32, i32) {
    %c0_i32 = arith.constant 0 : i32
    %c0_i32_0 = arith.constant 0 : i32
    %c0_i32_1 = arith.constant 0 : i32
    return %c0_i32, %arg0, %c0_i32_0 : i32, i32, i32
  }
  func.func @transform_2(%arg0: i32) -> (i32, i32, i32) {
    %c0_i32 = arith.constant 0 : i32
    %c0_i32_0 = arith.constant 0 : i32
    %c0_i32_1 = arith.constant 0 : i32
    %c0_i32_2 = arith.constant 0 : i32
    return %c0_i32, %c0_i32_0, %c0_i32_1 : i32, i32, i32
  }
  func.func @transform_3(%arg0: i32) -> (i32, i32, i32) {
    %c0_i32 = arith.constant 0 : i32
    %c0_i32_0 = arith.constant 0 : i32
    %c0_i32_1 = arith.constant 0 : i32
    %c0_i32_2 = arith.constant 0 : i32
    return %c0_i32, %c0_i32_0, %c0_i32_1 : i32, i32, i32
  }
  func.func @transform_4(%arg0: i32) -> (i32, i32, i32) {
    %c0_i32 = arith.constant 0 : i32
    %c0_i32_0 = arith.constant 0 : i32
    %c0_i32_1 = arith.constant 0 : i32
    %c0_i32_2 = arith.constant 0 : i32
    return %c0_i32, %c0_i32_0, %c0_i32_1 : i32, i32, i32
  }
  func.func @transform_5(%arg0: i32) -> (i32, i32, i32) {
    %c0_i32 = arith.constant 0 : i32
    %c0_i32_0 = arith.constant 0 : i32
    %c0_i32_1 = arith.constant 0 : i32
    %c0_i32_2 = arith.constant 0 : i32
    return %c0_i32, %c0_i32_0, %c0_i32_1 : i32, i32, i32
  }
  func.func @transform_6(%arg0: i32) -> (i32, i32) {
    %c0_i32 = arith.constant 0 : i32
    %c0_i32_0 = arith.constant 0 : i32
    return %arg0, %c0_i32 : i32, i32
  }
}

module attributes {stable_mosaic.version = 11 : i64} {
  func.func @logits_kernel(%arg0: i32, %arg1: i32, %arg2: memref<8x128xbf16, #tpu.memory_space<vmem>>, %arg3: memref<128x128xbf16, #tpu.memory_space<vmem>>, %arg4: memref<1x128xf32, #tpu.memory_space<vmem>>, %arg5: memref<8x128xf32, #tpu.memory_space<vmem>>) attributes {dimension_semantics = [#tpu.dimension_semantics<parallel>, #tpu.dimension_semantics<parallel>], iteration_bounds = array<i64: 1, 1>, scalar_prefetch = 0 : i64, scratch_operands = 0 : i64, tpu.core_type = #tpu.core_type<tc>, window_params = [{transform_indices = @transform_0, window_bounds = array<i64: 8, 128>}, {transform_indices = @transform_1, window_bounds = array<i64: 128, 128>}, {transform_indices = @transform_2, window_bounds = array<i64: 1, 128>}, {transform_indices = @transform_3, window_bounds = array<i64: 8, 128>}]} {
    %c0 = arith.constant 0 : index
    %c0_0 = arith.constant 0 : index
    %0 = vector.load %arg2[%c0, %c0_0] : memref<8x128xbf16, #tpu.memory_space<vmem>>, vector<8x128xbf16>
    %c0_1 = arith.constant 0 : index
    %c0_2 = arith.constant 0 : index
    %1 = vector.load %arg3[%c0_1, %c0_2] : memref<128x128xbf16, #tpu.memory_space<vmem>>, vector<128x128xbf16>
    %cst = arith.constant dense<0.000000e+00> : vector<8x128xf32>
    %2 = tpu.matmul %0, %1, %cst {dimension_numbers = #tpu.dot_dimension_numbers<[1], [0], [0], [1], [0, 0, 1, 1], [], []>} : vector<8x128xbf16>, vector<128x128xbf16>, vector<8x128xf32> -> vector<8x128xf32>
    %c0_3 = arith.constant 0 : index
    %c0_4 = arith.constant 0 : index
    %3 = vector.load %arg4[%c0_3, %c0_4] : memref<1x128xf32, #tpu.memory_space<vmem>>, vector<1x128xf32>
    %4 = vector.broadcast %3 : vector<1x128xf32> to vector<8x128xf32>
    %5 = arith.addf %2, %4 : vector<8x128xf32>
    %6 = math.tanh %5 : vector<8x128xf32>
    %c0_5 = arith.constant 0 : index
    %c0_6 = arith.constant 0 : index
    %7 = vector.load %arg5[%c0_5, %c0_6] : memref<8x128xf32, #tpu.memory_space<vmem>>, vector<8x128xf32>
    tpu.vector_store %arg5[%c0_5, %c0_6], %6 {strides = array<i32>} : memref<8x128xf32, #tpu.memory_space<vmem>>, vector<8x128xf32>,
    return
  }
  func.func @transform_0(%arg0: i32, %arg1: i32) -> (i32, i32) {
    %c0_i32 = arith.constant 0 : i32
    %c0_i32_0 = arith.constant 0 : i32
    return %arg0, %c0_i32 : i32, i32
  }
  func.func @transform_1(%arg0: i32, %arg1: i32) -> (i32, i32) {
    %c0_i32 = arith.constant 0 : i32
    %c0_i32_0 = arith.constant 0 : i32
    return %c0_i32, %arg1 : i32, i32
  }
  func.func @transform_2(%arg0: i32, %arg1: i32) -> (i32, i32) {
    %c0_i32 = arith.constant 0 : i32
    %c0_i32_0 = arith.constant 0 : i32
    return %c0_i32, %arg1 : i32, i32
  }
  func.func @transform_3(%arg0: i32, %arg1: i32) -> (i32, i32) {
    %c0_i32 = arith.constant 0 : i32
    return %arg0, %arg1 : i32, i32
  }
}

</mosaic_0001>

<bundles_post_ra>
// kernel: gru4rec_forward.3
= control target key start
LH: loop header
LB: loop body
LE: loop exit
PB: predicated region body
PF: predicated region fallthrough
CT: control target
= control target key end

     0   :  { %v183_v0 = vmov 0.0   ;;  %vm184_vm0 = vmmov 0   ;;  %s238_s1 = inlined_call_operand.vmem [shape: bf16[128,128], index: 1, kind: input, shape index: {}]   ;;  %s239_s0 = inlined_call_operand.vmem [shape: bf16[8,128], index: 0, kind: input, shape index: {}]   ;;  %s240_s2 = inlined_call_operand.vmem [shape: f32[1,128], index: 2, kind: input, shape index: {}]   ;;  %s241_s3 = inlined_call_operand.vmem [shape: f32[8,128], index: 3, kind: output, shape index: {}]  }
   0x1   :  { %151 = vmatprep.subr.bf16.mxu0 %v183_v0  ;;  %v173_v1 = vld [vmem:[%s238_s1 + $0x38] sm:$0xff]   ;;  %167 = vmatprep.mubr.msk.bf16.mxu0 %vm184_vm0, %v183_v0  ;;  %v174_v2 = vld [vmem:[%s238_s1 + $0x30] sm:$0xff]   ;;  %v175_v3 = vld [vmem:[%s238_s1 + $0x28] sm:$0xff]  }
   0x2   :  { %152 = vmatpush3.bf16.msra.mxu0 %v173_v1  ;;  %v176_v4 = vld [vmem:[%s238_s1 + $0x20] sm:$0xff]   ;;  %v177_v5 = vld [vmem:[%s238_s1 + $0x18] sm:$0xff]   ;;  %v178_v6 = vld [vmem:[%s238_s1 + $0x10] sm:$0xff]  }
   0x3   :  { %153 = vmatprep.subr.bf16.mxu0 %v183_v0  ;;  %v179_v7 = vld [vmem:[%s238_s1 + $0x8] sm:$0xff]   ;;  %v180_v8 = vld [vmem:[%s238_s1] sm:$0xff]  }
   0x4   :  { %v15_v9 = vld [vmem:[%s239_s0] sm:$0xf] }
   0x5   :  { %v133_v10 = vld [vmem:[%s240_s2] ss:$0 sm:$0xff] }
   0x6   :  { %154 = vmatpush3.bf16.msra.mxu0 %v174_v2 }
   0x7   :  { %155 = vmatprep.subr.bf16.mxu0 %v183_v0 }
   0xa   :  { %156 = vmatpush3.bf16.msra.mxu0 %v175_v3 }
   0xb   :  { %157 = vmatprep.subr.bf16.mxu0 %v183_v0 }
   0xe   :  { %158 = vmatpush3.bf16.msra.mxu0 %v176_v4 }
   0xf   :  { %159 = vmatprep.subr.bf16.mxu0 %v183_v0 }
  0x12   :  { %160 = vmatpush3.bf16.msra.mxu0 %v177_v5 }
  0x13   :  { %161 = vmatprep.subr.bf16.mxu0 %v183_v0 }
  0x16   :  { %162 = vmatpush3.bf16.msra.mxu0 %v178_v6 }
  0x17   :  { %163 = vmatprep.subr.bf16.mxu0 %v183_v0 }
  0x1a   :  { %164 = vmatpush3.bf16.msra.mxu0 %v179_v7 }
  0x1b   :  { %165 = vmatprep.subr.bf16.mxu0 %v183_v0 }
  0x1e   :  { %166 = vmatpush3.bf16.msra.mxu0 %v180_v8 }
  0x21   :  { %168 = vmatmul.mubr.bf16.vlgmr.msra.gmra.mxu0 %v15_v9 }
  0xe1   :  { %v121_v11 = vpop.f32.mrf.mxu0 }
  0xe2   :  { %v122_v12 = vadd.f32 %v133_v10, %v121_v11 }
  0xe3   :  { %v169_v13 = vpop.f32.mrf.mxu0 }
  0xe4   :  { %181 = vtanh.f32 %v122_v12 }
  0xe5   :  { %v124_v14 = vpop.f32.mrf.mxu0 }
  0xe7   :  { %v170_v15 = vpop.f32.mrf.mxu0 }
  0xf1   :  { %v182_v16 = vpop.eup %181 }
  0xf2   :  { %128 = vst [vmem:[%s241_s3] sm:$0xff] %v182_v16 }

// kernel: gru4rec_forward.2
= control target key start
LH: loop header
LB: loop body
LE: loop exit
PB: predicated region body
PF: predicated region fallthrough
CT: control target
= control target key end

     0   :  { %v5500_v1 = vmov 0   ;;  %v5502_v38 = vmov 0.0   ;;  %vm4031_vm0 = vmmov 0   ;;  %v356_v54 = vlaneseq  ;;  %s5490_s2 = inlined_call_operand.vmem [shape: bf16[2,128,384], index: 2, kind: input, shape index: {}]   ;;  %s5491_s0 = inlined_call_operand.vmem [shape: bf16[8,8,128], index: 0, kind: input, shape index: {}]   ;;  %s5492_s3 = inlined_call_operand.vmem [shape: bf16[2,128,384], index: 3, kind: input, shape index: {}]   ;;  %s5493_s4 = inlined_call_operand.vmem [shape: f32[2,1,384], index: 4, kind: input, shape index: {}]   ;;  %s5494_s5 = inlined_call_operand.vmem [shape: f32[2,1,128], index: 5, kind: input, shape index: {}]   ;;  %s5495_s1 = inlined_call_operand.vmem [shape: f32[8,8,1], index: 1, kind: input, shape index: {}]   ;;  %s5496_s6 = inlined_call_operand.vmem [shape: f32[8,128], index: 6, kind: output, shape index: {}]  }
   0x1   :  { %v3690_v0 = vld [vmem:[%s5490_s2 + $0xac] ss:$12 sps:$4 sm:$0xff]   ;;  %248 = vmatprep.mubr.bf16.mxu0 %v5500_v1  ;;  %3688 = vset.pattern.permute.xlu0 %v5500_v1  ;;  %v3692_v2 = vld [vmem:[%s5490_s2 + $0xa8] ss:$12 sps:$4 sm:$0xff]   ;;  %v3695_v4 = vld [vmem:[%s5490_s2 + $0x90] ss:$12 sps:$4 sm:$0xff]  }
   0x2   :  { %3689 = vset.pattern.permute.xlu1 %v5500_v1  ;;  %216 = vmatprep.subr.bf16.mxu0 %v3690_v0  ;;  %v3693_v3 = vld [vmem:[%s5490_s2 + $0x94] ss:$12 sps:$4 sm:$0xff]   ;;  %v3696_v5 = vld [vmem:[%s5490_s2 + $0x7c] ss:$12 sps:$4 sm:$0xff]   ;;  %v3698_v6 = vld [vmem:[%s5490_s2 + $0x78] ss:$12 sps:$4 sm:$0xff]  }
   0x3   :  { %217 = vmatpush1.bf16.msra.mxu0 %v3692_v2  ;;  %v3699_v7 = vld [vmem:[%s5490_s2 + $0x64] ss:$12 sps:$4 sm:$0xff]   ;;  %v3701_v9 = vld [vmem:[%s5490_s2 + $0x60] ss:$12 sps:$4 sm:$0xff]   ;;  %v3704_v13 = vld [vmem:[%s5490_s2 + $0x48] ss:$12 sps:$4 sm:$0xff]  }
   0x4   :  { %218 = vmatprep.subr.bf16.mxu0 %v3693_v3  ;;  %v3711_v8 = vld [vmem:[%s5490_s2 + $0xb0] ss:$12 sps:$4 sm:$0xff]   ;;  %v3702_v10 = vld [vmem:[%s5490_s2 + $0x4c] ss:$12 sps:$4 sm:$0xff]   ;;  %v3716_v12 = vld [vmem:[%s5491_s0] sm:$0xff]   ;;  %v4351_v55 = vshrl.u32 %v356_v54, 7 }
   0x5   :  { %3317 = vmatprep.subr.bf16.mxu1 %v3711_v8  ;;  %v3715_v11 = vld [vmem:[%s5490_s2 + $0x98] ss:$12 sps:$4 sm:$0xff]   ;;  %v3720_v14 = vld [vmem:[%s5490_s2 + $0x80] ss:$12 sps:$4 sm:$0xff]   ;;  %3333 = vmatprep.mubr.bf16.mxu1 %v3716_v12  ;;  %v3724_v16 = vld [vmem:[%s5490_s2 + $0x68] ss:$12 sps:$4 sm:$0xff]  }
   0x6   :  { %3318 = vmatpush3.bf16.msra.mxu1 %v3711_v8  ;;  %v3705_v15 = vld [vmem:[%s5490_s2 + $0x34] ss:$12 sps:$4 sm:$0xff]   ;;  %v3707_v17 = vld [vmem:[%s5490_s2 + $0x30] ss:$12 sps:$4 sm:$0xff]   ;;  %v3710_v20 = vld [vmem:[%s5490_s2 + $0x18] ss:$12 sps:$4 sm:$0xff]  }
   0x7   :  { %219 = vmatpush1.bf16.msra.mxu0 %v3695_v4  ;;  %3319 = vmatprep.subr.bf16.mxu1 %v3715_v11  ;;  %v3708_v18 = vld [vmem:[%s5490_s2 + $0x1c] ss:$12 sps:$4 sm:$0xff]   ;;  %v3712_v21 = vld [vmem:[%s5490_s2 + $0x4] ss:$12 sps:$4 sm:$0xff]   ;;  %v3714_v23 = vld [vmem:[%s5490_s2] ss:$12 sps:$4 sm:$0xff]  }
   0x8   :  { %220 = vmatprep.subr.bf16.mxu0 %v3696_v5  ;;  %v3729_v19 = vld [vmem:[%s5490_s2 + $0x50] ss:$12 sps:$4 sm:$0xff]   ;;  %v3733_v22 = vld [vmem:[%s5490_s2 + $0x38] ss:$12 sps:$4 sm:$0xff]   ;;  %v3738_v25 = vld [vmem:[%s5490_s2 + $0x20] ss:$12 sps:$4 sm:$0xff]  }
   0x9   :  { %v4142_v24 = vld [vmem:[%s5492_s3 + $0xac] ss:$12 sps:$4 sm:$0xff]   ;;  %v4150_v26 = vld [vmem:[%s5492_s3 + $0xa8] ss:$12 sps:$4 sm:$0xff]   ;;  %v4165_v29 = vld [vmem:[%s5492_s3 + $0x90] ss:$12 sps:$4 sm:$0xff]  }
   0xa   :  { %3320 = vmatpush3.bf16.msra.mxu1 %v3715_v11  ;;  %v4156_v27 = vld [vmem:[%s5492_s3 + $0x94] ss:$12 sps:$4 sm:$0xff]   ;;  %v4172_v30 = vld [vmem:[%s5492_s3 + $0x7c] ss:$12 sps:$4 sm:$0xff]   ;;  %v4181_v32 = vld [vmem:[%s5492_s3 + $0x78] ss:$12 sps:$4 sm:$0xff]  }
   0xb   :  { %221 = vmatpush1.bf16.msra.mxu0 %v3698_v6  ;;  %3321 = vmatprep.subr.bf16.mxu1 %v3720_v14  ;;  %v3742_v28 = vld [vmem:[%s5490_s2 + $0x8] ss:$12 sps:$4 sm:$0xff]   ;;  %v4187_v33 = vld [vmem:[%s5492_s3 + $0x64] ss:$12 sps:$4 sm:$0xff]   ;;  %v4192_v34 = vld [vmem:[%s5492_s3 + $0x60] ss:$12 sps:$4 sm:$0xff]  }
   0xc   :  { %222 = vmatprep.subr.bf16.mxu0 %v3699_v7  ;;  %v3725_v31 = vld [vmem:[%s5491_s0 + $0x8] sm:$0xff]   ;;  %v3734_v35 = vld [vmem:[%s5491_s0 + $0x10] sm:$0xff]   ;;  %v4213_v39 = vld [vmem:[%s5492_s3 + $0x98] ss:$12 sps:$4 sm:$0xff]   ;;  %5506 = vst [vmem:[#allocation4_spill] sm:$0xff] %v4351_v55  ;;  %v5499_v56 = vsub.s32 0, %v4351_v55 }
   0xd   :  { %v4200_v36 = vld [vmem:[%s5492_s3 + $0xb0] ss:$12 sps:$4 sm:$0xff]   ;;  %v4205_v37 = vld [vmem:[%s5492_s3 + $0x4c] ss:$12 sps:$4 sm:$0xff]   ;;  %v4219_v40 = vld [vmem:[%s5492_s3 + $0x48] ss:$12 sps:$4 sm:$0xff]  }
   0xe   :  { %3322 = vmatpush3.bf16.msra.mxu1 %v3720_v14  ;;  %v4225_v41 = vld [vmem:[%s5492_s3 + $0x34] ss:$12 sps:$4 sm:$0xff]   ;;  %v3743_v43 = vld [vmem:[%s5491_s0 + $0x18] sm:$0xff]   ;;  %v4269_v48 = vld [vmem:[%s5492_s3 + $0x4] ss:$12 sps:$4 sm:$0xff]   ;;  %v5498_v59 = vsub.s32 1, %v4351_v55 }
   0xf   :  { %223 = vmatpush1.bf16.msra.mxu0 %v3701_v9  ;;  %3323 = vmatprep.subr.bf16.mxu1 %v3724_v16  ;;  %v4232_v42 = vld [vmem:[%s5492_s3 + $0x80] ss:$12 sps:$4 sm:$0xff]   ;;  %v4241_v44 = vld [vmem:[%s5492_s3 + $0x30] ss:$12 sps:$4 sm:$0xff]   ;;  %v4255_v46 = vld [vmem:[%s5492_s3 + $0x68] ss:$12 sps:$4 sm:$0xff]  }
  0x10   :  { %224 = vmatprep.subr.bf16.mxu0 %v3702_v10  ;;  %v4247_v45 = vld [vmem:[%s5492_s3 + $0x1c] ss:$12 sps:$4 sm:$0xff]   ;;  %v4261_v47 = vld [vmem:[%s5492_s3 + $0x18] ss:$12 sps:$4 sm:$0xff]   ;;  %v4282_v50 = vld [vmem:[%s5492_s3] ss:$12 sps:$4 sm:$0xff]  }
  0x11   :  { %v4276_v49 = vld [vmem:[%s5492_s3 + $0x50] ss:$12 sps:$4 sm:$0xff]   ;;  %v4291_v51 = vld [vmem:[%s5492_s3 + $0x38] ss:$12 sps:$4 sm:$0xff]   ;;  %v4302_v52 = vld [vmem:[%s5492_s3 + $0x20] ss:$12 sps:$4 sm:$0xff]  }
  0x12   :  { %3324 = vmatpush3.bf16.msra.mxu1 %v3724_v16  ;;  %v4313_v53 = vld [vmem:[%s5492_s3 + $0x8] ss:$12 sps:$4 sm:$0xff]   ;;  %v354_v58 = vld [vmem:[%s5493_s4] sm:$0x7]  ;;  %v5497_v62 = vsub.s32 2, %v4351_v55 }
  0x13   :  { %225 = vmatpush1.bf16.msra.mxu0 %v3704_v13  ;;  %3325 = vmatprep.subr.bf16.mxu1 %v3729_v19  ;;  %v359_v61 = vrot.slane %v354_v58, %v5499_v56  ;;  %v363_v0 = vrot.slane %v354_v58, %v5498_v59 }
  0x14   :  { %226 = vmatprep.subr.bf16.mxu0 %v3705_v15  ;;  %v4369_v5 = vrot.slane %v354_v58, %v5497_v62 }
  0x16   :  { %3326 = vmatpush3.bf16.msra.mxu1 %v3729_v19 }
  0x17   :  { %227 = vmatpush1.bf16.msra.mxu0 %v3707_v17  ;;  %3327 = vmatprep.subr.bf16.mxu1 %v3733_v22 }
  0x18   :  { %228 = vmatprep.subr.bf16.mxu0 %v3708_v18 }
  0x1a   :  { %3328 = vmatpush3.bf16.msra.mxu1 %v3733_v22 }
  0x1b   :  { %229 = vmatpush1.bf16.msra.mxu0 %v3710_v20  ;;  %3329 = vmatprep.subr.bf16.mxu1 %v3738_v25 }
  0x1c   :  { %230 = vmatprep.subr.bf16.mxu0 %v3712_v21 }
  0x1e   :  { %3330 = vmatpush3.bf16.msra.mxu1 %v3738_v25 }
  0x1f   :  { %231 = vmatpush1.bf16.msra.mxu0 %v3714_v23  ;;  %3331 = vmatprep.subr.bf16.mxu1 %v3742_v28 }
  0x20   :  { %586 = vmatprep.subr.bf16.mxu0 %v4142_v24 }
  0x22   :  { %249 = vmatmul.mubr.bf16.vlgmr.msra.gmra.mxu0 %v3716_v12  ;;  %3332 = vmatpush3.bf16.msra.mxu1 %v3742_v28 }
  0x23   :  { %587 = vmatpush1.bf16.msra.mxu0 %v4150_v26  ;;  %258 = vmatprep.mubr.bf16.mxu0 %v5500_v1 }
  0x24   :  { %588 = vmatprep.subr.bf16.mxu0 %v4156_v27  ;;  %3341 = vmatprep.subr.bf16.mxu1 %v5502_v38 }
  0x25   :  { %3334 = vmatmul.mubr.bf16.vlgmr.msra.gmra.mxu1 %v3725_v31 }
  0x26   :  { %3342 = vmatpush3.bf16.msra.mxu1 %v4200_v36  ;;  %3337 = vmatprep.mubr.bf16.mxu1 %v3734_v35 }
  0x27   :  { %589 = vmatpush1.bf16.msra.mxu0 %v4165_v29  ;;  %3343 = vmatprep.subr.bf16.mxu1 %v5502_v38 }
  0x28   :  { %590 = vmatprep.subr.bf16.mxu0 %v4172_v30 }
  0x2a   :  { %259 = vmatmul.mubr.bf16.gmra.mxu0 %v3725_v31  ;;  %3344 = vmatpush3.bf16.msra.mxu1 %v4213_v39 }
  0x2b   :  { %591 = vmatpush1.bf16.msra.mxu0 %v4181_v32  ;;  %268 = vmatprep.mubr.bf16.mxu0 %v5500_v1 }
  0x2c   :  { %592 = vmatprep.subr.bf16.mxu0 %v4187_v33  ;;  %3345 = vmatprep.subr.bf16.mxu1 %v5502_v38 }
  0x2d   :  { %3338 = vmatmul.mubr.bf16.gmra.mxu1 %v3743_v43 }
  0x2e   :  { %3346 = vmatpush3.bf16.msra.mxu1 %v4232_v42  ;;  %3357 = vmatprep.mubr.msk.bf16.mxu1 %vm4031_vm0, %v5502_v38 }
  0x2f   :  { %593 = vmatpush1.bf16.msra.mxu0 %v4192_v34  ;;  %3347 = vmatprep.subr.bf16.mxu1 %v5502_v38 }
  0x30   :  { %594 = vmatprep.subr.bf16.mxu0 %v4205_v37 }
  0x32   :  { %269 = vmatmul.mubr.bf16.gmra.mxu0 %v3734_v35  ;;  %3348 = vmatpush3.bf16.msra.mxu1 %v4255_v46 }
  0x33   :  { %595 = vmatpush1.bf16.msra.mxu0 %v4219_v40  ;;  %278 = vmatprep.mubr.bf16.mxu0 %v5500_v1 }
  0x34   :  { %596 = vmatprep.subr.bf16.mxu0 %v4225_v41  ;;  %3349 = vmatprep.subr.bf16.mxu1 %v5502_v38 }
  0x36   :  { %3350 = vmatpush3.bf16.msra.mxu1 %v4276_v49 }
  0x37   :  { %597 = vmatpush1.bf16.msra.mxu0 %v4241_v44  ;;  %3351 = vmatprep.subr.bf16.mxu1 %v5502_v38 }
  0x38   :  { %598 = vmatprep.subr.bf16.mxu0 %v4247_v45 }
  0x3a   :  { %279 = vmatmul.mubr.bf16.gmra.mxu0 %v3743_v43  ;;  %3352 = vmatpush3.bf16.msra.mxu1 %v4291_v51 }
  0x3b   :  { %599 = vmatpush1.bf16.msra.mxu0 %v4261_v47  ;;  %618 = vmatprep.mubr.bf16.mxu0 %v5500_v1 }
  0x3c   :  { %600 = vmatprep.subr.bf16.mxu0 %v4269_v48  ;;  %3353 = vmatprep.subr.bf16.mxu1 %v5502_v38 }
  0x3e   :  { %3354 = vmatpush3.bf16.msra.mxu1 %v4302_v52 }
  0x3f   :  { %601 = vmatpush1.bf16.msra.mxu0 %v4282_v50  ;;  %3355 = vmatprep.subr.bf16.mxu1 %v5502_v38 }
  0x40   :  { %694 = vmatprep.subr.bf16.mxu0 %v4142_v24 }
  0x42   :  { %619 = vmatmul.mubr.bf16.vlgmr.msra.gmra.mxu0 %v5500_v1  ;;  %3356 = vmatpush3.bf16.msra.mxu1 %v4313_v53 }
  0x43   :  { %695 = vmatpush1.bf16.msra.mxu0 %v4150_v26  ;;  %726 = vmatprep.mubr.bf16.mxu0 %v5500_v1 }
  0x44   :  { %696 = vmatprep.subr.bf16.mxu0 %v4156_v27  ;;  %3361 = vmatprep.subr.bf16.mxu1 %v5502_v38 }
  0x45   :  { %3358 = vmatmul.mubr.bf16.vlgmr.msra.gmra.mxu1 %v5500_v1 }
  0x46   :  { %3362 = vmatpush3.bf16.msra.mxu1 %v4200_v36  ;;  %3377 = vmatprep.mubr.msk.bf16.mxu1 %vm4031_vm0, %v5502_v38 }
  0x47   :  { %697 = vmatpush1.bf16.msra.mxu0 %v4165_v29  ;;  %3363 = vmatprep.subr.bf16.mxu1 %v5502_v38 }
  0x48   :  { %698 = vmatprep.subr.bf16.mxu0 %v4172_v30 }
  0x4a   :  { %3364 = vmatpush3.bf16.msra.mxu1 %v4213_v39 }
  0x4b   :  { %699 = vmatpush1.bf16.msra.mxu0 %v4181_v32  ;;  %3365 = vmatprep.subr.bf16.mxu1 %v5502_v38 }
  0x4c   :  { %700 = vmatprep.subr.bf16.mxu0 %v4187_v33 }
  0x4e   :  { %3366 = vmatpush3.bf16.msra.mxu1 %v4232_v42 }
  0x4f   :  { %701 = vmatpush1.bf16.msra.mxu0 %v4192_v34  ;;  %3367 = vmatprep.subr.bf16.mxu1 %v5502_v38 }
  0x50   :  { %702 = vmatprep.subr.bf16.mxu0 %v4205_v37 }
  0x52   :  { %3368 = vmatpush3.bf16.msra.mxu1 %v4255_v46 }
  0x53   :  { %703 = vmatpush1.bf16.msra.mxu0 %v4219_v40  ;;  %3369 = vmatprep.subr.bf16.mxu1 %v5502_v38 }
  0x54   :  { %704 = vmatprep.subr.bf16.mxu0 %v4225_v41 }
  0x56   :  { %3370 = vmatpush3.bf16.msra.mxu1 %v4276_v49 }
  0x57   :  { %705 = vmatpush1.bf16.msra.mxu0 %v4241_v44  ;;  %3371 = vmatprep.subr.bf16.mxu1 %v5502_v38 }
  0x58   :  { %706 = vmatprep.subr.bf16.mxu0 %v4247_v45 }
  0x5a   :  { %3372 = vmatpush3.bf16.msra.mxu1 %v4291_v51 }
  0x5b   :  { %707 = vmatpush1.bf16.msra.mxu0 %v4261_v47  ;;  %3373 = vmatprep.subr.bf16.mxu1 %v5502_v38 }
  0x5c   :  { %708 = vmatprep.subr.bf16.mxu0 %v4269_v48 }
  0x5e   :  { %3374 = vmatpush3.bf16.msra.mxu1 %v4302_v52 }
  0x5f   :  { %709 = vmatpush1.bf16.msra.mxu0 %v4282_v50  ;;  %3375 = vmatprep.subr.bf16.mxu1 %v5502_v38 }
  0x60   :  { %804 = vmatprep.subr.bf16.mxu0 %v4142_v24 }
  0x62   :  { %3376 = vmatpush3.bf16.msra.mxu1 %v4313_v53 }
  0x63   :  { %3381 = vmatprep.subr.bf16.mxu1 %v5502_v38 }
  0xe2   :  { %v250_v57 = vpop.f32.mrf.mxu0 }
  0xe4   :  { %v252_v60 = vpop.f32.mrf.mxu0 }
  0xe5   :  { %v3335_v9 = vpop.f32.mrf.mxu1 }
  0xe6   :  { %v254_v63 = vpop.f32.mrf.mxu0  ;;  %v4376_v11 = vadd.f32 %v3335_v9, %v4369_v5 }
  0xe7   :  { %v4363_v2 = vadd.f32 %v359_v61, %v254_v63  ;;  %v323_v13 = vpop.f32.mrf.mxu1 }
  0xe8   :  { %v256_v3 = vpop.f32.mrf.mxu0 }
  0xe9   :  { %v4365_v4 = vadd.f32 %v363_v0, %v256_v3  ;;  %v3336_v16 = vpop.f32.mrf.mxu1 }
  0xea   :  { %v260_v6 = vpop.f32.mrf.mxu0  ;;  %v4383_v18 = vadd.f32 %v3336_v16, %v4369_v5 }
  0xeb   :  { %v4371_v7 = vadd.f32 %v359_v61, %v260_v6  ;;  %v326_v20 = vpop.f32.mrf.mxu1 }
  0xec   :  { %v262_v8 = vpop.f32.mrf.mxu0  ;;  %v4388_v22 = vadd.f32 %v4369_v5, %v326_v20 }
  0xed   :  { %v4373_v10 = vadd.f32 %v363_v0, %v262_v8  ;;  %v3339_v25 = vpop.f32.mrf.mxu1 }
  0xee   :  { %v264_v12 = vpop.f32.mrf.mxu0  ;;  %v4393_v31 = vadd.f32 %v3339_v25, %v4369_v5 }
  0xef   :  { %v4378_v14 = vadd.f32 %v359_v61, %v264_v12  ;;  %v339_v43 = vpop.f32.mrf.mxu1 }
  0xf0   :  { %v266_v15 = vpop.f32.mrf.mxu0  ;;  %5507 = vst [vmem:[#allocation5_spill] sm:$0xff] %v4393_v31  ;;  %v4398_v58 = vadd.f32 %v4369_v5, %v339_v43  ;;  %v371_v43 = vadd.f32 %v359_v61, %v250_v57 }
  0xf1   :  { %v4380_v17 = vadd.f32 %v363_v0, %v266_v15  ;;  %v3340_v3 = vpop.f32.mrf.mxu1 }
  0xf2   :  { %v270_v19 = vpop.f32.mrf.mxu0  ;;  %v4403_v8 = vadd.f32 %v3340_v3, %v4369_v5 }
  0xf3   :  { %v4385_v21 = vadd.f32 %v359_v61, %v270_v19  ;;  %v342_v12 = vpop.f32.mrf.mxu1 }
  0xf4   :  { %v272_v23 = vpop.f32.mrf.mxu0  ;;  %5508 = vst [vmem:[#allocation6_spill] sm:$0xff] %v4403_v8  ;;  %v4408_v16 = vadd.f32 %v4369_v5, %v342_v12 }
  0xf5   :  { %v4390_v28 = vadd.f32 %v363_v0, %v272_v23 }
  0xf6   :  { %v274_v35 = vpop.f32.mrf.mxu0 }
  0xf7   :  { %v4395_v54 = vadd.f32 %v359_v61, %v274_v35 }
  0xf8   :  { %v276_v63 = vpop.f32.mrf.mxu0 }
  0xf9   :  { %v4400_v6 = vadd.f32 %v363_v0, %v276_v63 }
  0xfa   :  { %v280_v9 = vpop.f32.mrf.mxu0 }
  0xfb   :  { %v4405_v15 = vadd.f32 %v359_v61, %v280_v9  ;;  %v372_v9 = vadd.f32 %v363_v0, %v252_v60 }
  0xfc   :  { %v282_v19 = vpop.f32.mrf.mxu0 }
  0xfd   :  { %v4410_v20 = vadd.f32 %v363_v0, %v282_v19 }
  0xfe   :  { %v284_v23 = vpop.f32.mrf.mxu0 }
  0xff   :  { %5509 = vst [vmem:[#allocation7_spill] sm:$0xff] %v4410_v20  ;;  %v4412_v25 = vadd.f32 %v359_v61, %v284_v23  ;;  %v4419_v61 = vld [vmem:[%s5494_s5] ss:$0 sm:$0xff] }
 0x100   :  { %v286_v35 = vpop.f32.mrf.mxu0 }
 0x101   :  { %5510 = vst [vmem:[#allocation8_spill] sm:$0xff] %v4412_v25  ;;  %v4414_v63 = vadd.f32 %v363_v0, %v286_v35 }
 0x102   :  { %v620_v62 = vpop.f32.mrf.mxu0 }
 0x103   :  { %v670_v3 = vadd.f32 %v620_v62, %v371_v43 }
 0x104   :  { %v622_v59 = vpop.f32.mrf.mxu0 }
 0x105   :  { %v3002_v56 = vmul.f32 -1.442695, %v670_v3  ;;  %v677_v12 = vadd.f32 %v622_v59, %v372_v9  ;;  %v661_v55 = vpop.f32.mrf.mxu1  ;;  %v373_v59 = vadd.f32 %v4369_v5, %v323_v13  ;;  %v5512_v5 = vmov 0  }
 0x106   :  { %v624_v1 = vpop.f32.mrf.mxu0 }
 0x107   :  { %3822 = vpow2.f32 %v3002_v56  ;;  %v3003_v8 = vmul.f32 -1.442695, %v677_v12  ;;  %v3359_v19 = vpop.f32.mrf.mxu1  ;;  %v684_v56 = vadd.f32 %v4419_v61, %v661_v55  ;;  %v5511_v55 = vmov 0.0  }
 0x108   :  { %v625_v38 = vpop.f32.mrf.mxu0 }
 0x109   :  { %v664_v31 = vpop.f32.mrf.mxu1  ;;  %3824 = vpow2.f32 %v3003_v8 }
 0x10b   :  { %v3360_v23 = vpop.f32.mrf.mxu1 }
 0x114   :  { %v3823_v25 = vpop.eup %3822 }
 0x115   :  { %v674_v20 = vadd.f32 1.0, %v3823_v25 }
 0x116   :  { %v3825_v57 = vpop.eup %3824 }
 0x117   :  { %3826 = vrcp.f32 %v674_v20  ;;  %v681_v1 = vadd.f32 1.0, %v3825_v57 }
 0x119   :  { %3828 = vrcp.f32 %v681_v1 }
 0x124   :  { %v3827_v38 = vpop.eup %3826 }
 0x125   :  { %v685_v60 = vmul.f32 %v3827_v38, %v684_v56 }
 0x126   :  { %v3829_v0 = vpop.eup %3828 }
 0x127   :  { %v686_v62 = vadd.f32 %v685_v60, %v373_v59  ;;  %v688_v31 = vsub.f32 1.0, %v3829_v0  ;;  %v690_v25 = vmul.f32 0.0, %v3829_v0 }
 0x129   :  { %3830 = vtanh.f32 %v686_v62 }
 0x136   :  { %v3831_v8 = vpop.eup %3830 }
 0x137   :  { %v689_v20 = vmul.f32 %v3831_v8, %v688_v31 }
 0x139   :  { %v4423_v35 = vadd.f32 %v690_v25, %v689_v20 }
 0x13b   :  { %v693_v43 = vpack.c.bf16 %v4423_v35, %v4423_v35 }
 0x13d   :  { %727 = vmatmul.mubr.bf16.vlgmr.msra.gmra.mxu0 %v693_v43  ;;  %3378 = vmatmul.mubr.bf16.vlgmr.msra.gmra.mxu1 %v693_v43 }
 0x13e   :  { %805 = vmatpush1.bf16.msra.mxu0 %v4150_v26  ;;  %3382 = vmatpush3.bf16.msra.mxu1 %v4200_v36 }
 0x13f   :  { %806 = vmatprep.subr.bf16.mxu0 %v4156_v27  ;;  %3383 = vmatprep.subr.bf16.mxu1 %v5511_v55 }
 0x140   :  { %836 = vmatprep.mubr.bf16.mxu0 %v5512_v5  ;;  %3397 = vmatprep.mubr.msk.bf16.mxu1 %vm4031_vm0, %v5511_v55 }
 0x142   :  { %807 = vmatpush1.bf16.msra.mxu0 %v4165_v29  ;;  %3384 = vmatpush3.bf16.msra.mxu1 %v4213_v39 }
 0x143   :  { %808 = vmatprep.subr.bf16.mxu0 %v4172_v30  ;;  %3385 = vmatprep.subr.bf16.mxu1 %v5511_v55 }
 0x146   :  { %809 = vmatpush1.bf16.msra.mxu0 %v4181_v32  ;;  %3386 = vmatpush3.bf16.msra.mxu1 %v4232_v42 }
 0x147   :  { %810 = vmatprep.subr.bf16.mxu0 %v4187_v33  ;;  %3387 = vmatprep.subr.bf16.mxu1 %v5511_v55 }
 0x14a   :  { %811 = vmatpush1.bf16.msra.mxu0 %v4192_v34  ;;  %3388 = vmatpush3.bf16.msra.mxu1 %v4255_v46 }
 0x14b   :  { %812 = vmatprep.subr.bf16.mxu0 %v4205_v37  ;;  %3389 = vmatprep.subr.bf16.mxu1 %v5511_v55 }
 0x14e   :  { %813 = vmatpush1.bf16.msra.mxu0 %v4219_v40  ;;  %3390 = vmatpush3.bf16.msra.mxu1 %v4276_v49 }
 0x14f   :  { %814 = vmatprep.subr.bf16.mxu0 %v4225_v41  ;;  %3391 = vmatprep.subr.bf16.mxu1 %v5511_v55 }
 0x152   :  { %815 = vmatpush1.bf16.msra.mxu0 %v4241_v44  ;;  %3392 = vmatpush3.bf16.msra.mxu1 %v4291_v51 }
 0x153   :  { %816 = vmatprep.subr.bf16.mxu0 %v4247_v45  ;;  %3393 = vmatprep.subr.bf16.mxu1 %v5511_v55 }
 0x156   :  { %817 = vmatpush1.bf16.msra.mxu0 %v4261_v47  ;;  %3394 = vmatpush3.bf16.msra.mxu1 %v4302_v52 }
 0x157   :  { %818 = vmatprep.subr.bf16.mxu0 %v4269_v48  ;;  %3395 = vmatprep.subr.bf16.mxu1 %v5511_v55 }
 0x15a   :  { %819 = vmatpush1.bf16.msra.mxu0 %v4282_v50  ;;  %3396 = vmatpush3.bf16.msra.mxu1 %v4313_v53 }
 0x15b   :  { %914 = vmatprep.subr.bf16.mxu0 %v4142_v24  ;;  %3401 = vmatprep.subr.bf16.mxu1 %v5511_v55 }
 0x1fd   :  { %v728_v13 = vpop.f32.mrf.mxu0  ;;  %v769_v3 = vpop.f32.mrf.mxu1 }
 0x1fe   :  { %v779_v9 = vadd.f32 %v728_v13, %v4363_v2  ;;  %v793_v20 = vadd.f32 %v4419_v61, %v769_v3 }
 0x1ff   :  { %v730_v12 = vpop.f32.mrf.mxu0  ;;  %v3379_v19 = vpop.f32.mrf.mxu1 }
 0x200   :  { %v3004_v23 = vmul.f32 -1.442695, %v779_v9  ;;  %v786_v59 = vadd.f32 %v730_v12, %v4365_v4 }
 0x201   :  { %v732_v57 = vpop.f32.mrf.mxu0  ;;  %v772_v1 = vpop.f32.mrf.mxu1 }
 0x202   :  { %3832 = vpow2.f32 %v3004_v23  ;;  %v3005_v60 = vmul.f32 -1.442695, %v786_v59 }
 0x203   :  { %v733_v56 = vpop.f32.mrf.mxu0  ;;  %v3380_v38 = vpop.f32.mrf.mxu1 }
 0x204   :  { %3834 = vpow2.f32 %v3005_v60 }
 0x20f   :  { %v3833_v62 = vpop.eup %3832 }
 0x210   :  { %v783_v0 = vadd.f32 1.0, %v3833_v62 }
 0x211   :  { %v3835_v31 = vpop.eup %3834 }
 0x212   :  { %3836 = vrcp.f32 %v783_v0  ;;  %v790_v8 = vadd.f32 1.0, %v3835_v31 }
 0x214   :  { %3838 = vrcp.f32 %v790_v8 }
 0x21f   :  { %v3837_v2 = vpop.eup %3836 }
 0x220   :  { %v794_v25 = vmul.f32 %v3837_v2, %v793_v20 }
 0x221   :  { %v3839_v13 = vpop.eup %3838 }
 0x222   :  { %v795_v43 = vadd.f32 %v794_v25, %v4388_v22  ;;  %v797_v9 = vsub.f32 1.0, %v3839_v13  ;;  %v799_v4 = vmul.f32 %v3839_v13, %v4423_v35 }
 0x224   :  { %3840 = vtanh.f32 %v795_v43 }
 0x231   :  { %v3841_v19 = vpop.eup %3840 }
 0x232   :  { %v798_v23 = vmul.f32 %v3841_v19, %v797_v9 }
 0x234   :  { %v4467_v12 = vadd.f32 %v799_v4, %v798_v23 }
 0x236   :  { %v803_v57 = vpack.c.bf16 %v4467_v12, %v4467_v12 }
 0x238   :  { %837 = vmatmul.mubr.bf16.vlgmr.msra.gmra.mxu0 %v803_v57  ;;  %3398 = vmatmul.mubr.bf16.vlgmr.msra.gmra.mxu1 %v803_v57 }
 0x239   :  { %915 = vmatpush1.bf16.msra.mxu0 %v4150_v26  ;;  %3402 = vmatpush3.bf16.msra.mxu1 %v4200_v36 }
 0x23a   :  { %916 = vmatprep.subr.bf16.mxu0 %v4156_v27  ;;  %3403 = vmatprep.subr.bf16.mxu1 %v5511_v55 }
 0x23b   :  { %946 = vmatprep.mubr.bf16.mxu0 %v5512_v5  ;;  %3417 = vmatprep.mubr.msk.bf16.mxu1 %vm4031_vm0, %v5511_v55 }
 0x23d   :  { %917 = vmatpush1.bf16.msra.mxu0 %v4165_v29  ;;  %3404 = vmatpush3.bf16.msra.mxu1 %v4213_v39 }
 0x23e   :  { %918 = vmatprep.subr.bf16.mxu0 %v4172_v30  ;;  %3405 = vmatprep.subr.bf16.mxu1 %v5511_v55 }
 0x241   :  { %919 = vmatpush1.bf16.msra.mxu0 %v4181_v32  ;;  %3406 = vmatpush3.bf16.msra.mxu1 %v4232_v42 }
 0x242   :  { %920 = vmatprep.subr.bf16.mxu0 %v4187_v33  ;;  %3407 = vmatprep.subr.bf16.mxu1 %v5511_v55 }
 0x245   :  { %921 = vmatpush1.bf16.msra.mxu0 %v4192_v34  ;;  %3408 = vmatpush3.bf16.msra.mxu1 %v4255_v46 }
 0x246   :  { %922 = vmatprep.subr.bf16.mxu0 %v4205_v37  ;;  %3409 = vmatprep.subr.bf16.mxu1 %v5511_v55 }
 0x249   :  { %923 = vmatpush1.bf16.msra.mxu0 %v4219_v40  ;;  %3410 = vmatpush3.bf16.msra.mxu1 %v4276_v49 }
 0x24a   :  { %924 = vmatprep.subr.bf16.mxu0 %v4225_v41  ;;  %3411 = vmatprep.subr.bf16.mxu1 %v5511_v55 }
 0x24d   :  { %925 = vmatpush1.bf16.msra.mxu0 %v4241_v44  ;;  %3412 = vmatpush3.bf16.msra.mxu1 %v4291_v51 }
 0x24e   :  { %926 = vmatprep.subr.bf16.mxu0 %v4247_v45  ;;  %3413 = vmatprep.subr.bf16.mxu1 %v5511_v55 }
 0x251   :  { %927 = vmatpush1.bf16.msra.mxu0 %v4261_v47  ;;  %3414 = vmatpush3.bf16.msra.mxu1 %v4302_v52 }
 0x252   :  { %928 = vmatprep.subr.bf16.mxu0 %v4269_v48  ;;  %3415 = vmatprep.subr.bf16.mxu1 %v5511_v55 }
 0x255   :  { %929 = vmatpush1.bf16.msra.mxu0 %v4282_v50  ;;  %3416 = vmatpush3.bf16.msra.mxu1 %v4313_v53 }
 0x256   :  { %1024 = vmatprep.subr.bf16.mxu0 %v4142_v24  ;;  %3421 = vmatprep.subr.bf16.mxu1 %v5511_v55 }
 0x2f8   :  { %v838_v22 = vpop.f32.mrf.mxu0  ;;  %v879_v3 = vpop.f32.mrf.mxu1 }
 0x2f9   :  { %v889_v1 = vadd.f32 %v838_v22, %v4371_v7  ;;  %v903_v9 = vadd.f32 %v4419_v61, %v879_v3 }
 0x2fa   :  { %v840_v56 = vpop.f32.mrf.mxu0  ;;  %v3399_v38 = vpop.f32.mrf.mxu1 }
 0x2fb   :  { %v3006_v59 = vmul.f32 -1.442695, %v889_v1  ;;  %v896_v8 = vadd.f32 %v840_v56, %v4373_v10 }
 0x2fc   :  { %v842_v60 = vpop.f32.mrf.mxu0  ;;  %v882_v62 = vpop.f32.mrf.mxu1 }
 0x2fd   :  { %3842 = vpow2.f32 %v3006_v59  ;;  %v3007_v20 = vmul.f32 -1.442695, %v896_v8 }
 0x2fe   :  { %v843_v0 = vpop.f32.mrf.mxu0  ;;  %v3400_v31 = vpop.f32.mrf.mxu1 }
 0x2ff   :  { %3844 = vpow2.f32 %v3007_v20 }
 0x30a   :  { %v3843_v2 = vpop.eup %3842 }
 0x30b   :  { %v893_v25 = vadd.f32 1.0, %v3843_v2 }
 0x30c   :  { %v3845_v43 = vpop.eup %3844 }
 0x30d   :  { %3846 = vrcp.f32 %v893_v25  ;;  %v900_v13 = vadd.f32 1.0, %v3845_v43 }
 0x30f   :  { %3848 = vrcp.f32 %v900_v13 }
 0x31a   :  { %v3847_v7 = vpop.eup %3846 }
 0x31b   :  { %v904_v19 = vmul.f32 %v3847_v7, %v903_v9 }
 0x31c   :  { %v3849_v4 = vpop.eup %3848 }
 0x31d   :  { %v905_v23 = vadd.f32 %v904_v19, %v4376_v11  ;;  %v907_v57 = vsub.f32 1.0, %v3849_v4  ;;  %v909_v10 = vmul.f32 %v3849_v4, %v4467_v12 }
 0x31f   :  { %3850 = vtanh.f32 %v905_v23 }
 0x32c   :  { %v3851_v22 = vpop.eup %3850 }
 0x32d   :  { %v908_v1 = vmul.f32 %v3851_v22, %v907_v57 }
 0x32f   :  { %v4511_v56 = vadd.f32 %v909_v10, %v908_v1 }
 0x331   :  { %v913_v38 = vpack.c.bf16 %v4511_v56, %v4511_v56 }
 0x333   :  { %947 = vmatmul.mubr.bf16.vlgmr.msra.gmra.mxu0 %v913_v38  ;;  %3418 = vmatmul.mubr.bf16.vlgmr.msra.gmra.mxu1 %v913_v38 }
 0x334   :  { %1025 = vmatpush1.bf16.msra.mxu0 %v4150_v26  ;;  %3422 = vmatpush3.bf16.msra.mxu1 %v4200_v36 }
 0x335   :  { %1026 = vmatprep.subr.bf16.mxu0 %v4156_v27  ;;  %3423 = vmatprep.subr.bf16.mxu1 %v5511_v55 }
 0x336   :  { %1056 = vmatprep.mubr.bf16.mxu0 %v5512_v5  ;;  %3437 = vmatprep.mubr.msk.bf16.mxu1 %vm4031_vm0, %v5511_v55 }
 0x338   :  { %1027 = vmatpush1.bf16.msra.mxu0 %v4165_v29  ;;  %3424 = vmatpush3.bf16.msra.mxu1 %v4213_v39 }
 0x339   :  { %1028 = vmatprep.subr.bf16.mxu0 %v4172_v30  ;;  %3425 = vmatprep.subr.bf16.mxu1 %v5511_v55 }
 0x33c   :  { %1029 = vmatpush1.bf16.msra.mxu0 %v4181_v32  ;;  %3426 = vmatpush3.bf16.msra.mxu1 %v4232_v42 }
 0x33d   :  { %1030 = vmatprep.subr.bf16.mxu0 %v4187_v33  ;;  %3427 = vmatprep.subr.bf16.mxu1 %v5511_v55 }
 0x340   :  { %1031 = vmatpush1.bf16.msra.mxu0 %v4192_v34  ;;  %3428 = vmatpush3.bf16.msra.mxu1 %v4255_v46 }
 0x341   :  { %1032 = vmatprep.subr.bf16.mxu0 %v4205_v37  ;;  %3429 = vmatprep.subr.bf16.mxu1 %v5511_v55 }
 0x344   :  { %1033 = vmatpush1.bf16.msra.mxu0 %v4219_v40  ;;  %3430 = vmatpush3.bf16.msra.mxu1 %v4276_v49 }
 0x345   :  { %1034 = vmatprep.subr.bf16.mxu0 %v4225_v41  ;;  %3431 = vmatprep.subr.bf16.mxu1 %v5511_v55 }
 0x348   :  { %1035 = vmatpush1.bf16.msra.mxu0 %v4241_v44  ;;  %3432 = vmatpush3.bf16.msra.mxu1 %v4291_v51 }
 0x349   :  { %1036 = vmatprep.subr.bf16.mxu0 %v4247_v45  ;;  %3433 = vmatprep.subr.bf16.mxu1 %v5511_v55 }
 0x34c   :  { %1037 = vmatpush1.bf16.msra.mxu0 %v4261_v47  ;;  %3434 = vmatpush3.bf16.msra.mxu1 %v4302_v52 }
 0x34d   :  { %1038 = vmatprep.subr.bf16.mxu0 %v4269_v48  ;;  %3435 = vmatprep.subr.bf16.mxu1 %v5511_v55 }
 0x350   :  { %1039 = vmatpush1.bf16.msra.mxu0 %v4282_v50  ;;  %3436 = vmatpush3.bf16.msra.mxu1 %v4313_v53 }
 0x351   :  { %1134 = vmatprep.subr.bf16.mxu0 %v4142_v24  ;;  %3441 = vmatprep.subr.bf16.mxu1 %v5511_v55 }
 0x3f3   :  { %v948_v11 = vpop.f32.mrf.mxu0  ;;  %v989_v3 = vpop.f32.mrf.mxu1 }
 0x3f4   :  { %v999_v59 = vadd.f32 %v948_v11, %v4378_v14  ;;  %v1013_v19 = vadd.f32 %v4419_v61, %v989_v3 }
 0x3f5   :  { %v950_v60 = vpop.f32.mrf.mxu0  ;;  %v3419_v62 = vpop.f32.mrf.mxu1 }
 0x3f6   :  { %v3008_v0 = vmul.f32 -1.442695, %v999_v59  ;;  %v1006_v25 = vadd.f32 %v950_v60, %v4380_v17 }
 0x3f7   :  { %v952_v31 = vpop.f32.mrf.mxu0  ;;  %v992_v8 = vpop.f32.mrf.mxu1 }
 0x3f8   :  { %3852 = vpow2.f32 %v3008_v0  ;;  %v3009_v43 = vmul.f32 -1.442695, %v1006_v25 }
 0x3f9   :  { %v953_v20 = vpop.f32.mrf.mxu0  ;;  %v3420_v2 = vpop.f32.mrf.mxu1 }
 0x3fa   :  { %3854 = vpow2.f32 %v3009_v43 }
 0x405   :  { %v3853_v13 = vpop.eup %3852 }
 0x406   :  { %v1003_v24 = vadd.f32 1.0, %v3853_v13 }
 0x407   :  { %v3855_v9 = vpop.eup %3854 }
 0x408   :  { %3856 = vrcp.f32 %v1003_v24  ;;  %v1010_v7 = vadd.f32 1.0, %v3855_v9  ;;  %v4611_v9 = vld [vmem:[%s5492_s3 + $0xa8] ss:$12 sps:$4 sm:$0xff]  }
 0x40a   :  { %3858 = vrcp.f32 %v1010_v7  ;;  %v4623_v7 = vld [vmem:[%s5492_s3 + $0x94] ss:$12 sps:$4 sm:$0xff]  }
 0x415   :  { %v3857_v14 = vpop.eup %3856 }
 0x416   :  { %v1014_v23 = vmul.f32 %v3857_v14, %v1013_v19  ;;  %v4633_v19 = vld [vmem:[%s5492_s3 + $0x90] ss:$12 sps:$4 sm:$0xff]   ;;  %v4639_v14 = vld [vmem:[%s5492_s3 + $0x98] ss:$12 sps:$4 sm:$0xff]  }
 0x417   :  { %v3859_v57 = vpop.eup %3858 }
 0x418   :  { %v1015_v4 = vadd.f32 %v1014_v23, %v4383_v18  ;;  %v1017_v22 = vsub.f32 1.0, %v3859_v57  ;;  %v1019_v17 = vmul.f32 %v3859_v57, %v4511_v56  ;;  %v4645_v23 = vld [vmem:[%s5492_s3 + $0x7c] ss:$12 sps:$4 sm:$0xff]   ;;  %v4659_v57 = vld [vmem:[%s5492_s3 + $0x64] ss:$12 sps:$4 sm:$0xff]  }
 0x41a   :  { %3860 = vtanh.f32 %v1015_v4  ;;  %v4652_v4 = vld [vmem:[%s5492_s3 + $0x78] ss:$12 sps:$4 sm:$0xff]  }
 0x427   :  { %v3861_v1 = vpop.eup %3860 }
 0x428   :  { %v1018_v10 = vmul.f32 %v3861_v1, %v1017_v22  ;;  %v4666_v22 = vld [vmem:[%s5492_s3 + $0x60] ss:$12 sps:$4 sm:$0xff]   ;;  %v4680_v1 = vld [vmem:[%s5492_s3 + $0x48] ss:$12 sps:$4 sm:$0xff]  }
 0x42a   :  { %v4555_v38 = vadd.f32 %v1019_v17, %v1018_v10 }
 0x42c   :  { %v1023_v11 = vpack.c.bf16 %v4555_v38, %v4555_v38 }
 0x42e   :  { %1057 = vmatmul.mubr.bf16.vlgmr.msra.gmra.mxu0 %v1023_v11  ;;  %3438 = vmatmul.mubr.bf16.vlgmr.msra.gmra.mxu1 %v1023_v11 }
 0x42f   :  { %1135 = vmatpush1.bf16.msra.mxu0 %v4150_v26  ;;  %3442 = vmatpush3.bf16.msra.mxu1 %v4200_v36  ;;  %v4595_v26 = vld [vmem:[%s5492_s3 + $0xac] ss:$12 sps:$4 sm:$0xff]  }
 0x430   :  { %1136 = vmatprep.subr.bf16.mxu0 %v4156_v27  ;;  %3443 = vmatprep.subr.bf16.mxu1 %v5511_v55 }
 0x431   :  { %1166 = vmatprep.mubr.bf16.mxu0 %v5512_v5  ;;  %3457 = vmatprep.mubr.msk.bf16.mxu1 %vm4031_vm0, %v5511_v55 }
 0x433   :  { %1137 = vmatpush1.bf16.msra.mxu0 %v4165_v29  ;;  %3444 = vmatpush3.bf16.msra.mxu1 %v4213_v39 }
 0x434   :  { %1138 = vmatprep.subr.bf16.mxu0 %v4172_v30  ;;  %3445 = vmatprep.subr.bf16.mxu1 %v5511_v55 }
 0x437   :  { %1139 = vmatpush1.bf16.msra.mxu0 %v4181_v32  ;;  %3446 = vmatpush3.bf16.msra.mxu1 %v4232_v42 }
 0x438   :  { %1140 = vmatprep.subr.bf16.mxu0 %v4187_v33  ;;  %3447 = vmatprep.subr.bf16.mxu1 %v5511_v55 }
 0x43b   :  { %1141 = vmatpush1.bf16.msra.mxu0 %v4192_v34  ;;  %3448 = vmatpush3.bf16.msra.mxu1 %v4255_v46 }
 0x43c   :  { %1142 = vmatprep.subr.bf16.mxu0 %v4205_v37  ;;  %3449 = vmatprep.subr.bf16.mxu1 %v5511_v55 }
 0x43f   :  { %1143 = vmatpush1.bf16.msra.mxu0 %v4219_v40  ;;  %3450 = vmatpush3.bf16.msra.mxu1 %v4276_v49 }
 0x440   :  { %1144 = vmatprep.subr.bf16.mxu0 %v4225_v41  ;;  %3451 = vmatprep.subr.bf16.mxu1 %v5511_v55 }
 0x443   :  { %1145 = vmatpush1.bf16.msra.mxu0 %v4241_v44  ;;  %3452 = vmatpush3.bf16.msra.mxu1 %v4291_v51 }
 0x444   :  { %1146 = vmatprep.subr.bf16.mxu0 %v4247_v45  ;;  %3453 = vmatprep.subr.bf16.mxu1 %v5511_v55 }
 0x447   :  { %1147 = vmatpush1.bf16.msra.mxu0 %v4261_v47  ;;  %3454 = vmatpush3.bf16.msra.mxu1 %v4302_v52 }
 0x448   :  { %1148 = vmatprep.subr.bf16.mxu0 %v4269_v48  ;;  %3455 = vmatprep.subr.bf16.mxu1 %v5511_v55 }
 0x44b   :  { %1149 = vmatpush1.bf16.msra.mxu0 %v4282_v50  ;;  %3456 = vmatpush3.bf16.msra.mxu1 %v4313_v53 }
 0x44c   :  { %1244 = vmatprep.subr.bf16.mxu0 %v4595_v26  ;;  %3461 = vmatprep.subr.bf16.mxu1 %v5511_v55 }
 0x4ee   :  { %v1058_v27 = vpop.f32.mrf.mxu0  ;;  %v1099_v29 = vpop.f32.mrf.mxu1 }
 0x4ef   :  { %v1109_v30 = vadd.f32 %v1058_v27, %v4385_v21  ;;  %v1123_v0 = vadd.f32 %v4419_v61, %v1099_v29 }
 0x4f0   :  { %v1060_v32 = vpop.f32.mrf.mxu0  ;;  %v3439_v33 = vpop.f32.mrf.mxu1 }
 0x4f1   :  { %v3010_v34 = vmul.f32 -1.442695, %v1109_v30  ;;  %v1116_v41 = vadd.f32 %v1060_v32, %v4390_v28 }
 0x4f2   :  { %v1062_v36 = vpop.f32.mrf.mxu0  ;;  %v1102_v37 = vpop.f32.mrf.mxu1 }
 0x4f3   :  { %3862 = vpow2.f32 %v3010_v34  ;;  %v3011_v18 = vmul.f32 -1.442695, %v1116_v41 }
 0x4f4   :  { %v1063_v39 = vpop.f32.mrf.mxu0  ;;  %v3440_v40 = vpop.f32.mrf.mxu1 }
 0x4f5   :  { %3864 = vpow2.f32 %v3011_v18 }
 0x500   :  { %v3863_v3 = vpop.eup %3862 }
 0x501   :  { %v1113_v59 = vadd.f32 1.0, %v3863_v3 }
 0x502   :  { %v3865_v60 = vpop.eup %3864 }
 0x503   :  { %3866 = vrcp.f32 %v1113_v59  ;;  %v1120_v62 = vadd.f32 1.0, %v3865_v60  ;;  %v3996_v60 = vld [vmem:[%s5492_s3 + $0x68] ss:$12 sps:$4 sm:$0xff]  }
 0x505   :  { %3868 = vrcp.f32 %v1120_v62  ;;  %v3997_v62 = vld [vmem:[%s5492_s3 + $0x50] ss:$12 sps:$4 sm:$0xff]  }
 0x510   :  { %v3867_v21 = vpop.eup %3866 }
 0x511   :  { %v1124_v31 = vmul.f32 %v3867_v21, %v1123_v0  ;;  %v3998_v0 = vld [vmem:[%s5492_s3 + $0x30] ss:$12 sps:$4 sm:$0xff]   ;;  %v3999_v21 = vld [vmem:[%s5492_s3 + $0x38] ss:$12 sps:$4 sm:$0xff]  }
 0x512   :  { %v3869_v20 = vpop.eup %3868 }
 0x513   :  { %v1125_v8 = vadd.f32 %v1124_v31, %v4398_v58  ;;  %v1127_v2 = vsub.f32 1.0, %v3869_v20  ;;  %v1129_v28 = vmul.f32 %v3869_v20, %v4555_v38  ;;  %v4617_v58 = vld [vmem:[%s5492_s3 + $0xb0] ss:$12 sps:$4 sm:$0xff]  }
 0x514   :  { %v4000_v31 = vld [vmem:[%s5492_s3 + $0x1c] ss:$12 sps:$4 sm:$0xff]   ;;  %v4002_v20 = vld [vmem:[%s5492_s3 + $0x4] ss:$12 sps:$4 sm:$0xff]  }
 0x515   :  { %3870 = vtanh.f32 %v1125_v8  ;;  %v4001_v8 = vld [vmem:[%s5492_s3 + $0x18] ss:$12 sps:$4 sm:$0xff]  }
 0x522   :  { %v3871_v25 = vpop.eup %3870 }
 0x523   :  { %v1128_v43 = vmul.f32 %v3871_v25, %v1127_v2  ;;  %v4003_v2 = vld [vmem:[%s5492_s3] ss:$12 sps:$4 sm:$0xff]  }
 0x524   :  { %v3760_v25 = vld [vmem:[%s5490_s2 + $0x16c] ss:$12 sps:$4 sm:$0xff]  }
 0x525   :  { %v4604_v13 = vadd.f32 %v1129_v28, %v1128_v43 }
 0x527   :  { %v1133_v24 = vpack.c.bf16 %v4604_v13, %v4604_v13 }
 0x529   :  { %1167 = vmatmul.mubr.bf16.vlgmr.msra.gmra.mxu0 %v1133_v24  ;;  %3458 = vmatmul.mubr.bf16.vlgmr.msra.gmra.mxu1 %v1133_v24 }
 0x52a   :  { %1245 = vmatpush1.bf16.msra.mxu0 %v4611_v9  ;;  %3462 = vmatpush3.bf16.msra.mxu1 %v4617_v58 }
 0x52b   :  { %1246 = vmatprep.subr.bf16.mxu0 %v4623_v7  ;;  %3463 = vmatprep.subr.bf16.mxu1 %v5511_v55 }
 0x52c   :  { %1276 = vmatprep.mubr.bf16.mxu0 %v5512_v5  ;;  %3477 = vmatprep.mubr.msk.bf16.mxu1 %vm4031_vm0, %v5511_v55 }
 0x52e   :  { %1247 = vmatpush1.bf16.msra.mxu0 %v4633_v19  ;;  %3464 = vmatpush3.bf16.msra.mxu1 %v4639_v14 }
 0x52f   :  { %1248 = vmatprep.subr.bf16.mxu0 %v4645_v23  ;;  %3465 = vmatprep.subr.bf16.mxu1 %v5511_v55 }
 0x532   :  { %1249 = vmatpush1.bf16.msra.mxu0 %v4652_v4  ;;  %3466 = vmatpush3.bf16.msra.mxu1 %v4232_v42  ;;  %v4673_v42 = vld [vmem:[%s5492_s3 + $0x4c] ss:$12 sps:$4 sm:$0xff]  }
 0x533   :  { %1250 = vmatprep.subr.bf16.mxu0 %v4659_v57  ;;  %3467 = vmatprep.subr.bf16.mxu1 %v5511_v55 }
 0x536   :  { %1251 = vmatpush1.bf16.msra.mxu0 %v4666_v22  ;;  %3468 = vmatpush3.bf16.msra.mxu1 %v4255_v46  ;;  %v4687_v46 = vld [vmem:[%s5492_s3 + $0x34] ss:$12 sps:$4 sm:$0xff]  }
 0x537   :  { %1252 = vmatprep.subr.bf16.mxu0 %v4673_v42  ;;  %3469 = vmatprep.subr.bf16.mxu1 %v5511_v55 }
 0x53a   :  { %1253 = vmatpush1.bf16.msra.mxu0 %v4680_v1  ;;  %3470 = vmatpush3.bf16.msra.mxu1 %v4276_v49 }
 0x53b   :  { %1254 = vmatprep.subr.bf16.mxu0 %v4687_v46  ;;  %3471 = vmatprep.subr.bf16.mxu1 %v5511_v55 }
 0x53e   :  { %1255 = vmatpush1.bf16.msra.mxu0 %v4241_v44  ;;  %3472 = vmatpush3.bf16.msra.mxu1 %v4291_v51 }
 0x53f   :  { %1256 = vmatprep.subr.bf16.mxu0 %v4247_v45  ;;  %3473 = vmatprep.subr.bf16.mxu1 %v5511_v55 }
 0x542   :  { %1257 = vmatpush1.bf16.msra.mxu0 %v4261_v47  ;;  %3474 = vmatpush3.bf16.msra.mxu1 %v4302_v52 }
 0x543   :  { %1258 = vmatprep.subr.bf16.mxu0 %v4269_v48  ;;  %3475 = vmatprep.subr.bf16.mxu1 %v5511_v55 }
 0x546   :  { %1259 = vmatpush1.bf16.msra.mxu0 %v4282_v50  ;;  %3476 = vmatpush3.bf16.msra.mxu1 %v4313_v53 }
 0x547   :  { %1354 = vmatprep.subr.bf16.mxu0 %v4595_v26  ;;  %3481 = vmatprep.subr.bf16.mxu1 %v5511_v55 }
 0x5e9   :  { %v1168_v44 = vpop.f32.mrf.mxu0  ;;  %v1209_v45 = vpop.f32.mrf.mxu1 }
 0x5ea   :  { %v1219_v49 = vadd.f32 %v1168_v44, %v4395_v54  ;;  %v1233_v34 = vadd.f32 %v4419_v61, %v1209_v45 }
 0x5eb   :  { %v1170_v51 = vpop.f32.mrf.mxu0  ;;  %v3459_v47 = vpop.f32.mrf.mxu1 }
 0x5ec   :  { %v3012_v10 = vmul.f32 -1.442695, %v1219_v49  ;;  %v1226_v50 = vadd.f32 %v1170_v51, %v4400_v6  ;;  %v5514_v51 = vld [vmem:[#allocation5_spill] sm:$0xff] }
 0x5ed   :  { %v1172_v17 = vpop.f32.mrf.mxu0  ;;  %v1212_v11 = vpop.f32.mrf.mxu1 }
 0x5ee   :  { %3872 = vpow2.f32 %v3012_v10  ;;  %v3013_v29 = vmul.f32 -1.442695, %v1226_v50 }
 0x5ef   :  { %v1173_v48 = vpop.f32.mrf.mxu0  ;;  %v3460_v27 = vpop.f32.mrf.mxu1 }
 0x5f0   :  { %3874 = vpow2.f32 %v3013_v29  ;;  %v3758_v29 = vld [vmem:[%s5490_s2 + $0x168] ss:$12 sps:$4 sm:$0xff]  }
 0x5fb   :  { %v3873_v30 = vpop.eup %3872 }
 0x5fc   :  { %v1223_v26 = vadd.f32 1.0, %v3873_v30  ;;  %v3764_v30 = vld [vmem:[%s5490_s2 + $0x154] ss:$12 sps:$4 sm:$0xff]  }
 0x5fd   :  { %v3875_v32 = vpop.eup %3874 }
 0x5fe   :  { %3876 = vrcp.f32 %v1223_v26  ;;  %v1230_v33 = vadd.f32 1.0, %v3875_v32  ;;  %v3765_v26 = vld [vmem:[%s5490_s2 + $0x158] ss:$12 sps:$4 sm:$0xff]   ;;  %v1471_v32 = vpack.c.bf16 %v4467_v12, %v4423_v35 }
 0x5ff   :  { %v3766_v35 = vld [vmem:[%s5490_s2 + $0x138] ss:$12 sps:$4 sm:$0xff]  }
 0x600   :  { %3878 = vrcp.f32 %v1230_v33  ;;  %v3762_v33 = vld [vmem:[%s5490_s2 + $0x150] ss:$12 sps:$4 sm:$0xff]  }
 0x601   :  { %v3772_v12 = vld [vmem:[%s5490_s2 + $0x124] ss:$12 sps:$4 sm:$0xff]  }
 0x60b   :  { %v3877_v54 = vpop.eup %3876 }
 0x60c   :  { %v1234_v36 = vmul.f32 %v3877_v54, %v1233_v34  ;;  %v3768_v34 = vld [vmem:[%s5490_s2 + $0x13c] ss:$12 sps:$4 sm:$0xff]   ;;  %v3769_v54 = vld [vmem:[%s5490_s2 + $0x140] ss:$12 sps:$4 sm:$0xff]  }
 0x60d   :  { %v3879_v39 = vpop.eup %3878 }
 0x60e   :  { %v1235_v37 = vadd.f32 %v1234_v36, %v4408_v16  ;;  %v1237_v40 = vsub.f32 1.0, %v3879_v39  ;;  %v1239_v6 = vmul.f32 %v3879_v39, %v4604_v13  ;;  %v3995_v16 = vld [vmem:[%s5492_s3 + $0x80] ss:$12 sps:$4 sm:$0xff]   ;;  %v3773_v36 = vld [vmem:[%s5490_s2 + $0x128] ss:$12 sps:$4 sm:$0xff]  }
 0x60f   :  { %v3776_v39 = vld [vmem:[%s5490_s2 + $0x10c] ss:$12 sps:$4 sm:$0xff]  }
 0x610   :  { %3880 = vtanh.f32 %v1235_v37  ;;  %v3770_v37 = vld [vmem:[%s5490_s2 + $0x120] ss:$12 sps:$4 sm:$0xff]  }
 0x61d   :  { %v3881_v41 = vpop.eup %3880 }
 0x61e   :  { %v1238_v18 = vmul.f32 %v3881_v41, %v1237_v40  ;;  %v3777_v40 = vld [vmem:[%s5490_s2 + $0x110] ss:$12 sps:$4 sm:$0xff]   ;;  %v3774_v41 = vld [vmem:[%s5490_s2 + $0x108] ss:$12 sps:$4 sm:$0xff]  }
 0x620   :  { %v4708_v3 = vadd.f32 %v1239_v6, %v1238_v18  ;;  %v3780_v18 = vld [vmem:[%s5490_s2 + $0xf4] ss:$12 sps:$4 sm:$0xff]   ;;  %v3781_v6 = vld [vmem:[%s5490_s2 + $0xf8] ss:$12 sps:$4 sm:$0xff]  }
 0x622   :  { %v1243_v59 = vpack.c.bf16 %v4708_v3, %v4708_v3 }
 0x624   :  { %1277 = vmatmul.mubr.bf16.vlgmr.msra.gmra.mxu0 %v1243_v59  ;;  %3478 = vmatmul.mubr.bf16.vlgmr.msra.gmra.mxu1 %v1243_v59  ;;  %v3778_v59 = vld [vmem:[%s5490_s2 + $0xf0] ss:$12 sps:$4 sm:$0xff]  }
 0x625   :  { %1355 = vmatpush1.bf16.msra.mxu0 %v4611_v9  ;;  %3482 = vmatpush3.bf16.msra.mxu1 %v4617_v58 }
 0x626   :  { %1356 = vmatprep.subr.bf16.mxu0 %v4623_v7  ;;  %3483 = vmatprep.subr.bf16.mxu1 %v5511_v55 }
 0x627   :  { %1386 = vmatprep.mubr.bf16.mxu0 %v5512_v5  ;;  %3497 = vmatprep.mubr.msk.bf16.mxu1 %vm4031_vm0, %v5511_v55 }
 0x629   :  { %1357 = vmatpush1.bf16.msra.mxu0 %v4633_v19  ;;  %3484 = vmatpush3.bf16.msra.mxu1 %v4639_v14 }
 0x62a   :  { %1358 = vmatprep.subr.bf16.mxu0 %v4645_v23  ;;  %3485 = vmatprep.subr.bf16.mxu1 %v5511_v55 }
 0x62d   :  { %1359 = vmatpush1.bf16.msra.mxu0 %v4652_v4  ;;  %3486 = vmatpush3.bf16.msra.mxu1 %v3995_v16  ;;  %v5513_v4 = vld [vmem:[#allocation7_spill] sm:$0xff] }
 0x62e   :  { %1360 = vmatprep.subr.bf16.mxu0 %v4659_v57  ;;  %3487 = vmatprep.subr.bf16.mxu1 %v5511_v55  ;;  %v3784_v16 = vld [vmem:[%s5490_s2 + $0xdc] ss:$12 sps:$4 sm:$0xff]  }
 0x631   :  { %1361 = vmatpush1.bf16.msra.mxu0 %v4666_v22  ;;  %3488 = vmatpush3.bf16.msra.mxu1 %v3996_v60  ;;  %v3785_v60 = vld [vmem:[%s5490_s2 + $0xe0] ss:$12 sps:$4 sm:$0xff]  }
 0x632   :  { %1362 = vmatprep.subr.bf16.mxu0 %v4673_v42  ;;  %3489 = vmatprep.subr.bf16.mxu1 %v5511_v55 }
 0x635   :  { %1363 = vmatpush1.bf16.msra.mxu0 %v4680_v1  ;;  %3490 = vmatpush3.bf16.msra.mxu1 %v3997_v62  ;;  %v3782_v62 = vld [vmem:[%s5490_s2 + $0xd8] ss:$12 sps:$4 sm:$0xff]  }
 0x636   :  { %1364 = vmatprep.subr.bf16.mxu0 %v4687_v46  ;;  %3491 = vmatprep.subr.bf16.mxu1 %v5511_v55 }
 0x639   :  { %1365 = vmatpush1.bf16.msra.mxu0 %v3998_v0  ;;  %3492 = vmatpush3.bf16.msra.mxu1 %v3999_v21  ;;  %v3788_v0 = vld [vmem:[%s5490_s2 + $0xc4] ss:$12 sps:$4 sm:$0xff]   ;;  %v3789_v21 = vld [vmem:[%s5490_s2 + $0xc8] ss:$12 sps:$4 sm:$0xff]  }
 0x63a   :  { %1366 = vmatprep.subr.bf16.mxu0 %v4000_v31  ;;  %3493 = vmatprep.subr.bf16.mxu1 %v5511_v55  ;;  %v3786_v31 = vld [vmem:[%s5490_s2 + $0xc0] ss:$12 sps:$4 sm:$0xff]  }
 0x63d   :  { %1367 = vmatpush1.bf16.msra.mxu0 %v4001_v8  ;;  %3494 = vmatpush3.bf16.msra.mxu1 %v4302_v52  ;;  %v3761_v52 = vld [vmem:[%s5490_s2 + $0x170] ss:$12 sps:$4 sm:$0xff]   ;;  %v1472_v8 = vpack.c.bf16 %v4555_v38, %v4511_v56  ;;  %v4858_v56 = vld [vmem:[%s5492_s3 + $0x16c] ss:$12 sps:$4 sm:$0xff]   ;;  %v4863_v38 = vld [vmem:[%s5492_s3 + $0x168] ss:$12 sps:$4 sm:$0xff]  }
 0x63e   :  { %1368 = vmatprep.subr.bf16.mxu0 %v4002_v20  ;;  %3495 = vmatprep.subr.bf16.mxu1 %v5511_v55  ;;  %v1473_v20 = vpack.c.bf16 %v4708_v3, %v4604_v13  ;;  %v4870_v13 = vld [vmem:[%s5492_s3 + $0x154] ss:$12 sps:$4 sm:$0xff]  }
 0x641   :  { %1369 = vmatpush1.bf16.msra.mxu0 %v4003_v2  ;;  %3496 = vmatpush3.bf16.msra.mxu1 %v4313_v53  ;;  %v4882_v2 = vld [vmem:[%s5492_s3 + $0x13c] ss:$12 sps:$4 sm:$0xff]  }
 0x642   :  { %1636 = vmatprep.subr.bf16.mxu0 %v3760_v25  ;;  %3501 = vmatprep.subr.bf16.mxu1 %v3761_v52  ;;  %v4887_v25 = vld [vmem:[%s5492_s3 + $0x138] ss:$12 sps:$4 sm:$0xff]  }
 0x6e4   :  { %v1278_v43 = vpop.f32.mrf.mxu0  ;;  %v1319_v28 = vpop.f32.mrf.mxu1 }
 0x6e5   :  { %v1329_v24 = vadd.f32 %v1278_v43, %v4405_v15  ;;  %v1343_v45 = vadd.f32 %v4419_v61, %v1319_v28  ;;  %v4899_v43 = vld [vmem:[%s5492_s3 + $0x120] ss:$12 sps:$4 sm:$0xff]  }
 0x6e6   :  { %v1280_v9 = vpop.f32.mrf.mxu0  ;;  %v3479_v58 = vpop.f32.mrf.mxu1  ;;  %v4906_v28 = vld [vmem:[%s5492_s3 + $0x10c] ss:$12 sps:$4 sm:$0xff]  }
 0x6e7   :  { %v3014_v7 = vmul.f32 -1.442695, %v1329_v24  ;;  %v1336_v57 = vadd.f32 %v1280_v9, %v5513_v4  ;;  %v4911_v24 = vld [vmem:[%s5492_s3 + $0x108] ss:$12 sps:$4 sm:$0xff]   ;;  %v4923_v58 = vld [vmem:[%s5492_s3 + $0xf0] ss:$12 sps:$4 sm:$0xff]  }
 0x6e8   :  { %v1282_v19 = vpop.f32.mrf.mxu0  ;;  %v1322_v14 = vpop.f32.mrf.mxu1  ;;  %v4918_v9 = vld [vmem:[%s5492_s3 + $0xf4] ss:$12 sps:$4 sm:$0xff]   ;;  %v4961_v4 = vld [vmem:[%s5492_s3 + $0x158] ss:$12 sps:$4 sm:$0xff]  }
 0x6e9   :  { %3882 = vpow2.f32 %v3014_v7  ;;  %v3015_v22 = vmul.f32 -1.442695, %v1336_v57  ;;  %v4930_v7 = vld [vmem:[%s5492_s3 + $0xdc] ss:$12 sps:$4 sm:$0xff]   ;;  %v4935_v19 = vld [vmem:[%s5492_s3 + $0xd8] ss:$12 sps:$4 sm:$0xff]  }
 0x6ea   :  { %v1283_v53 = vpop.f32.mrf.mxu0  ;;  %v3480_v23 = vpop.f32.mrf.mxu1  ;;  %v4940_v14 = vld [vmem:[%s5492_s3 + $0xc4] ss:$12 sps:$4 sm:$0xff]   ;;  %v4968_v57 = vld [vmem:[%s5492_s3 + $0x140] ss:$12 sps:$4 sm:$0xff]  }
 0x6eb   :  { %3884 = vpow2.f32 %v3015_v22  ;;  %v4945_v53 = vld [vmem:[%s5492_s3 + $0x170] ss:$12 sps:$4 sm:$0xff]   ;;  %v4953_v23 = vld [vmem:[%s5492_s3 + $0xc0] ss:$12 sps:$4 sm:$0xff]  }
 0x6ec   :  { %v2880_v22 = vld [vmem:[%s5495_s1] sm:$0xff] }
 0x6ed   :  { %2890 = vperm.xlu0 %3688, %v2880_v22  }
 0x6f6   :  { %v3883_v42 = vpop.eup %3882 }
 0x6f7   :  { %v1333_v1 = vadd.f32 1.0, %v3883_v42  ;;  %v4978_v42 = vld [vmem:[%s5492_s3 + $0x128] ss:$12 sps:$4 sm:$0xff]  }
 0x6f8   :  { %v3885_v46 = vpop.eup %3884 }
 0x6f9   :  { %3886 = vrcp.f32 %v1333_v1  ;;  %v1340_v44 = vadd.f32 1.0, %v3885_v46  ;;  %v4985_v1 = vld [vmem:[%s5492_s3 + $0x110] ss:$12 sps:$4 sm:$0xff]   ;;  %v4992_v46 = vld [vmem:[%s5492_s3 + $0xf8] ss:$12 sps:$4 sm:$0xff]  }
 0x6fb   :  { %3888 = vrcp.f32 %v1340_v44  ;;  %v4999_v44 = vld [vmem:[%s5492_s3 + $0xe0] ss:$12 sps:$4 sm:$0xff]  }
 0x706   :  { %v3887_v15 = vpop.eup %3886 }
 0x707   :  { %v1344_v49 = vmul.f32 %v3887_v15, %v1343_v45  ;;  %v5006_v45 = vld [vmem:[%s5492_s3 + $0xc8] ss:$12 sps:$4 sm:$0xff]  }
 0x708   :  { %v3889_v10 = vpop.eup %3888 }
 0x709   :  { %v1345_v47 = vadd.f32 %v1344_v49, %v5514_v51  ;;  %v1347_v17 = vsub.f32 1.0, %v3889_v10  ;;  %v1349_v27 = vmul.f32 %v3889_v10, %v4708_v3  ;;  %v4875_v3 = vld [vmem:[%s5492_s3 + $0x150] ss:$12 sps:$4 sm:$0xff]   ;;  %v5515_v51 = vld [vmem:[#allocation8_spill] sm:$0xff] }
 0x70b   :  { %3890 = vtanh.f32 %v1345_v47 }
 0x718   :  { %v3891_v11 = vpop.eup %3890 }
 0x719   :  { %v1348_v48 = vmul.f32 %v3891_v11, %v1347_v17 }
 0x71b   :  { %v4774_v50 = vadd.f32 %v1349_v27, %v1348_v48 }
 0x71d   :  { %v1353_v61 = vpack.c.bf16 %v4774_v50, %v4774_v50 }
 0x71f   :  { %1387 = vmatmul.mubr.bf16.vlgmr.msra.gmra.mxu0 %v1353_v61  ;;  %3498 = vmatmul.mubr.bf16.vlgmr.msra.gmra.mxu1 %v1353_v61 }
 0x720   :  { %1637 = vmatpush1.bf16.msra.mxu0 %v3758_v29  ;;  %3502 = vmatpush3.bf16.msra.mxu1 %v3761_v52  ;;  %v4894_v52 = vld [vmem:[%s5492_s3 + $0x124] ss:$12 sps:$4 sm:$0xff]  }
 0x721   :  { %3517 = vmatprep.mubr.bf16.mxu1 %v1471_v32  ;;  %1638 = vmatprep.subr.bf16.mxu0 %v3764_v30 }
 0x722   :  { %3503 = vmatprep.subr.bf16.mxu1 %v3765_v26  ;;  %1668 = vmatprep.mubr.bf16.mxu0 %v5512_v5 }
 0x724   :  { %1639 = vmatpush1.bf16.msra.mxu0 %v3762_v33  ;;  %3504 = vmatpush3.bf16.msra.mxu1 %v3765_v26 }
 0x725   :  { %1640 = vmatprep.subr.bf16.mxu0 %v3768_v34  ;;  %3505 = vmatprep.subr.bf16.mxu1 %v3769_v54 }
 0x728   :  { %1641 = vmatpush1.bf16.msra.mxu0 %v3766_v35  ;;  %3506 = vmatpush3.bf16.msra.mxu1 %v3769_v54  ;;  %v4004_v35 = vld [vmem:[%s5494_s5] ss:$0 sm:$0xff] }
 0x729   :  { %1642 = vmatprep.subr.bf16.mxu0 %v3772_v12  ;;  %3507 = vmatprep.subr.bf16.mxu1 %v3773_v36 }
 0x72c   :  { %1643 = vmatpush1.bf16.msra.mxu0 %v3770_v37  ;;  %3508 = vmatpush3.bf16.msra.mxu1 %v3773_v36 }
 0x72d   :  { %1644 = vmatprep.subr.bf16.mxu0 %v3776_v39  ;;  %3509 = vmatprep.subr.bf16.mxu1 %v3777_v40  ;;  %v5516_v39 = vld [vmem:[#allocation6_spill] sm:$0xff] }
 0x730   :  { %1645 = vmatpush1.bf16.msra.mxu0 %v3774_v41  ;;  %3510 = vmatpush3.bf16.msra.mxu1 %v3777_v40 }
 0x731   :  { %1646 = vmatprep.subr.bf16.mxu0 %v3780_v18  ;;  %3511 = vmatprep.subr.bf16.mxu1 %v3781_v6 }
 0x734   :  { %1647 = vmatpush1.bf16.msra.mxu0 %v3778_v59  ;;  %3512 = vmatpush3.bf16.msra.mxu1 %v3781_v6 }
 0x735   :  { %1648 = vmatprep.subr.bf16.mxu0 %v3784_v16  ;;  %3513 = vmatprep.subr.bf16.mxu1 %v3785_v60 }
 0x738   :  { %1649 = vmatpush1.bf16.msra.mxu0 %v3782_v62  ;;  %3514 = vmatpush3.bf16.msra.mxu1 %v3785_v60 }
 0x739   :  { %1650 = vmatprep.subr.bf16.mxu0 %v3788_v0  ;;  %3515 = vmatprep.subr.bf16.mxu1 %v3789_v21 }
 0x73c   :  { %1651 = vmatpush1.bf16.msra.mxu0 %v3786_v31  ;;  %3516 = vmatpush3.bf16.msra.mxu1 %v3789_v21 }
 0x73d   :  { %3525 = vmatprep.subr.bf16.mxu1 %v5511_v55  ;;  %2009 = vmatprep.subr.bf16.mxu0 %v4858_v56 }
 0x73f   :  { %1669 = vmatmul.mubr.bf16.vlgmr.msra.gmra.mxu0 %v1471_v32  ;;  %3518 = vmatmul.mubr.bf16.vlgmr.msra.gmra.mxu1 %v1472_v8 }
 0x740   :  { %3521 = vmatprep.mubr.bf16.mxu1 %v1473_v20  ;;  %1678 = vmatprep.mubr.bf16.mxu0 %v5512_v5 }
 0x741   :  { %2010 = vmatpush1.bf16.msra.mxu0 %v4863_v38  ;;  %3526 = vmatpush3.bf16.msra.mxu1 %v4945_v53 }
 0x742   :  { %2011 = vmatprep.subr.bf16.mxu0 %v4870_v13  ;;  %3527 = vmatprep.subr.bf16.mxu1 %v5511_v55 }
 0x745   :  { %2012 = vmatpush1.bf16.msra.mxu0 %v4875_v3  ;;  %3528 = vmatpush3.bf16.msra.mxu1 %v4961_v4 }
 0x746   :  { %2013 = vmatprep.subr.bf16.mxu0 %v4882_v2  ;;  %3529 = vmatprep.subr.bf16.mxu1 %v5511_v55 }
 0x747   :  { %1679 = vmatmul.mubr.bf16.gmra.mxu0 %v1472_v8 }
 0x748   :  { %1688 = vmatprep.mubr.bf16.mxu0 %v5512_v5 }
 0x749   :  { %2014 = vmatpush1.bf16.msra.mxu0 %v4887_v25  ;;  %3530 = vmatpush3.bf16.msra.mxu1 %v4968_v57 }
 0x74a   :  { %2015 = vmatprep.subr.bf16.mxu0 %v4894_v52  ;;  %3531 = vmatprep.subr.bf16.mxu1 %v5511_v55 }
 0x74d   :  { %2016 = vmatpush1.bf16.msra.mxu0 %v4899_v43  ;;  %3532 = vmatpush3.bf16.msra.mxu1 %v4978_v42 }
 0x74e   :  { %2017 = vmatprep.subr.bf16.mxu0 %v4906_v28  ;;  %3533 = vmatprep.subr.bf16.mxu1 %v5511_v55 }
 0x74f   :  { %1689 = vmatmul.mubr.bf16.gmra.mxu0 %v1473_v20 }
 0x750   :  { %1698 = vmatprep.mubr.bf16.mxu0 %v5512_v5 }
 0x751   :  { %2018 = vmatpush1.bf16.msra.mxu0 %v4911_v24  ;;  %3534 = vmatpush3.bf16.msra.mxu1 %v4985_v1 }
 0x752   :  { %2019 = vmatprep.subr.bf16.mxu0 %v4918_v9  ;;  %3535 = vmatprep.subr.bf16.mxu1 %v5511_v55 }
 0x755   :  { %2020 = vmatpush1.bf16.msra.mxu0 %v4923_v58  ;;  %3536 = vmatpush3.bf16.msra.mxu1 %v4992_v46 }
 0x756   :  { %2021 = vmatprep.subr.bf16.mxu0 %v4930_v7  ;;  %3537 = vmatprep.subr.bf16.mxu1 %v5511_v55 }
 0x759   :  { %2022 = vmatpush1.bf16.msra.mxu0 %v4935_v19  ;;  %3538 = vmatpush3.bf16.msra.mxu1 %v4999_v44 }
 0x75a   :  { %2023 = vmatprep.subr.bf16.mxu0 %v4940_v14  ;;  %3539 = vmatprep.subr.bf16.mxu1 %v5511_v55 }
 0x75d   :  { %2024 = vmatpush1.bf16.msra.mxu0 %v4953_v23  ;;  %3540 = vmatpush3.bf16.msra.mxu1 %v5006_v45 }
 0x75e   :  { %2117 = vmatprep.subr.bf16.mxu0 %v4858_v56  ;;  %3545 = vmatprep.subr.bf16.mxu1 %v5511_v55 }
 0x7df   :  { %v1388_v15 = vpop.f32.mrf.mxu0  ;;  %v1429_v49 = vpop.f32.mrf.mxu1 }
 0x7e0   :  { %v1439_v47 = vadd.f32 %v1388_v15, %v5515_v51  ;;  %v1453_v12 = vadd.f32 %v4004_v35, %v1429_v49 }
 0x7e1   :  { %v1390_v10 = vpop.f32.mrf.mxu0  ;;  %v3499_v17 = vpop.f32.mrf.mxu1 }
 0x7e2   :  { %v3016_v11 = vmul.f32 -1.442695, %v1439_v47  ;;  %v1446_v30 = vadd.f32 %v1390_v10, %v4414_v63 }
 0x7e3   :  { %v1392_v48 = vpop.f32.mrf.mxu0  ;;  %v1432_v27 = vpop.f32.mrf.mxu1 }
 0x7e4   :  { %3892 = vpow2.f32 %v3016_v11  ;;  %v3017_v26 = vmul.f32 -1.442695, %v1446_v30 }
 0x7e5   :  { %v1393_v29 = vpop.f32.mrf.mxu0  ;;  %v3500_v61 = vpop.f32.mrf.mxu1 }
 0x7e6   :  { %3894 = vpow2.f32 %v3017_v26  ;;  %v3074_v29 = vld [vmem:[%s5493_s4 + $0x3] sm:$0x7] }
 0x7f1   :  { %v3893_v32 = vpop.eup %3892 }
 0x7f2   :  { %v1443_v33 = vadd.f32 1.0, %v3893_v32 }
 0x7f3   :  { %v3895_v34 = vpop.eup %3894 }
 0x7f4   :  { %3896 = vrcp.f32 %v1443_v33  ;;  %v1450_v54 = vadd.f32 1.0, %v3895_v34  ;;  %v5520_v33 = vld [vmem:[#allocation4_spill] sm:$0xff] }
 0x7f5   :  { %v5521_v34 = vsub.s32 0, %v5520_v33 }
 0x7f6   :  { %3898 = vrcp.f32 %v1450_v54 }
 0x7f7   :  { %v5101_v54 = vrot.slane %v3074_v29, %v5521_v34 }
 0x7ff   :  { %v1670_v62 = vpop.f32.mrf.mxu0  ;;  %v5074_v49 = vpop.f32.mrf.mxu1 }
 0x801   :  { %v3897_v36 = vpop.eup %3896  ;;  %v1672_v0 = vpop.f32.mrf.mxu0 }
 0x802   :  { %v1454_v37 = vmul.f32 %v3897_v36, %v1453_v12  ;;  %v1743_v47 = vpop.f32.mrf.mxu1 }
 0x803   :  { %v3899_v41 = vpop.eup %3898  ;;  %v5062_v21 = vpop.f32.mrf.mxu0 }
 0x804   :  { %v1455_v40 = vadd.f32 %v1454_v37, %v5516_v39  ;;  %v1457_v63 = vsub.f32 1.0, %v3899_v41  ;;  %v1459_v59 = vmul.f32 %v3899_v41, %v4774_v50  ;;  %v5080_v17 = vpop.f32.mrf.mxu1  ;;  %v1792_v39 = vadd.f32 %v5101_v54, %v1670_v62 }
 0x805   :  { %v5064_v31 = vpop.f32.mrf.mxu0 }
 0x806   :  { %3900 = vtanh.f32 %v1455_v40  ;;  %v5084_v48 = vpop.f32.mrf.mxu1 }
 0x807   :  { %v5066_v8 = vpop.f32.mrf.mxu0 }
 0x809   :  { %v5068_v20 = vpop.f32.mrf.mxu0 }
 0x80b   :  { %v5070_v22 = vpop.f32.mrf.mxu0 }
 0x80d   :  { %v5072_v15 = vpop.f32.mrf.mxu0 }
 0x80f   :  { %v5076_v51 = vpop.f32.mrf.mxu0 }
 0x811   :  { %v5078_v10 = vpop.f32.mrf.mxu0 }
 0x813   :  { %v3901_v18 = vpop.eup %3900  ;;  %v5082_v11 = vpop.f32.mrf.mxu0 }
 0x814   :  { %v1458_v6 = vmul.f32 %v3901_v18, %v1457_v63  ;;  %v5526_v63 = vsub.s32 1, %v5520_v33 }
 0x815   :  { %v5086_v27 = vpop.f32.mrf.mxu0 }
 0x816   :  { %v1460_v16 = vadd.f32 %v1459_v59, %v1458_v6  ;;  %v5114_v18 = vrot.slane %v3074_v29, %v5526_v63 }
 0x818   :  { %v1474_v60 = vpack.c.bf16 %v1460_v16, %v4774_v50  ;;  %v2881_v50 = vld [vmem:[%s5495_s1 + $0x8] sm:$0xff] }
 0x819   :  { %2895 = vperm.xlu0 %3688, %v2881_v50  }
 0x81a   :  { %1699 = vmatmul.mubr.bf16.gmra.mxu0 %v1474_v60  ;;  %3522 = vmatmul.mubr.bf16.gmra.mxu1 %v1474_v60 }
 0x81b   :  { %2041 = vmatprep.mubr.bf16.mxu0 %v5512_v5  ;;  %3541 = vmatprep.mubr.msk.bf16.mxu1 %vm4031_vm0, %v5511_v55 }
 0x822   :  { %2042 = vmatmul.mubr.bf16.vlgmr.msra.gmra.mxu0 %v5512_v5  ;;  %3542 = vmatmul.mubr.bf16.vlgmr.msra.gmra.mxu1 %v5512_v5 }
 0x823   :  { %2118 = vmatpush1.bf16.msra.mxu0 %v4863_v38  ;;  %3546 = vmatpush3.bf16.msra.mxu1 %v4945_v53 }
 0x824   :  { %2119 = vmatprep.subr.bf16.mxu0 %v4870_v13  ;;  %3547 = vmatprep.subr.bf16.mxu1 %v5511_v55 }
 0x825   :  { %2149 = vmatprep.mubr.bf16.mxu0 %v5512_v5  ;;  %3561 = vmatprep.mubr.msk.bf16.mxu1 %vm4031_vm0, %v5511_v55 }
 0x827   :  { %2120 = vmatpush1.bf16.msra.mxu0 %v4875_v3  ;;  %3548 = vmatpush3.bf16.msra.mxu1 %v4961_v4 }
 0x828   :  { %2121 = vmatprep.subr.bf16.mxu0 %v4882_v2  ;;  %3549 = vmatprep.subr.bf16.mxu1 %v5511_v55 }
 0x82b   :  { %2122 = vmatpush1.bf16.msra.mxu0 %v4887_v25  ;;  %3550 = vmatpush3.bf16.msra.mxu1 %v4968_v57 }
 0x82c   :  { %2123 = vmatprep.subr.bf16.mxu0 %v4894_v52  ;;  %3551 = vmatprep.subr.bf16.mxu1 %v5511_v55 }
 0x82f   :  { %2124 = vmatpush1.bf16.msra.mxu0 %v4899_v43  ;;  %3552 = vmatpush3.bf16.msra.mxu1 %v4978_v42 }
 0x830   :  { %2125 = vmatprep.subr.bf16.mxu0 %v4906_v28  ;;  %3553 = vmatprep.subr.bf16.mxu1 %v5511_v55 }
 0x833   :  { %2126 = vmatpush1.bf16.msra.mxu0 %v4911_v24  ;;  %3554 = vmatpush3.bf16.msra.mxu1 %v4985_v1 }
 0x834   :  { %2127 = vmatprep.subr.bf16.mxu0 %v4918_v9  ;;  %3555 = vmatprep.subr.bf16.mxu1 %v5511_v55 }
 0x837   :  { %2128 = vmatpush1.bf16.msra.mxu0 %v4923_v58  ;;  %3556 = vmatpush3.bf16.msra.mxu1 %v4992_v46 }
 0x838   :  { %2129 = vmatprep.subr.bf16.mxu0 %v4930_v7  ;;  %3557 = vmatprep.subr.bf16.mxu1 %v5511_v55 }
 0x83b   :  { %2130 = vmatpush1.bf16.msra.mxu0 %v4935_v19  ;;  %3558 = vmatpush3.bf16.msra.mxu1 %v4999_v44 }
 0x83c   :  { %2131 = vmatprep.subr.bf16.mxu0 %v4940_v14  ;;  %3559 = vmatprep.subr.bf16.mxu1 %v5511_v55 }
 0x83f   :  { %2132 = vmatpush1.bf16.msra.mxu0 %v4953_v23  ;;  %3560 = vmatpush3.bf16.msra.mxu1 %v5006_v45 }
 0x840   :  { %2225 = vmatprep.subr.bf16.mxu0 %v4858_v56  ;;  %3565 = vmatprep.subr.bf16.mxu1 %v5511_v55 }
 0x8da   :  { %v5091_v61 = vpop.f32.mrf.mxu0  ;;  %v5093_v30 = vpop.f32.mrf.mxu1 }
 0x8db   :  { %5517 = vst [vmem:[#allocation7_spill] sm:$0xff] %v5091_v61  ;;  %5518 = vst [vmem:[#allocation5_spill] sm:$0xff] %v5093_v30 }
 0x8dc   :  { %v5095_v26 = vpop.f32.mrf.mxu0  ;;  %v5097_v32 = vpop.f32.mrf.mxu1 }
 0x8dd   :  { %5519 = vst [vmem:[#allocation8_spill] sm:$0xff] %v5095_v26 }
 0x8de   :  { %v5103_v35 = vpop.f32.mrf.mxu0  ;;  %v5105_v12 = vpop.f32.mrf.mxu1 }
 0x8df   :  { %5522 = vst [vmem:[#allocation6_spill] sm:$0xff] %v5103_v35  ;;  %5523 = vst [vmem:[#allocation4_spill] sm:$0xff] %v5105_v12  ;;  %v1793_v12 = vadd.f32 %v5114_v18, %v1672_v0  ;;  %v5527_v0 = vsub.s32 2, %v5520_v33 }
 0x8e0   :  { %v5107_v36 = vpop.f32.mrf.mxu0  ;;  %v5109_v37 = vpop.f32.mrf.mxu1 }
 0x8e1   :  { %5524 = vst [vmem:[#allocation9_spill] sm:$0xff] %v5107_v36  ;;  %5525 = vst [vmem:[#allocation10_spill] sm:$0xff] %v5109_v37 }
 0x8e2   :  { %v2043_v40 = vpop.f32.mrf.mxu0  ;;  %v2084_v41 = vpop.f32.mrf.mxu1 }
 0x8e3   :  { %v2093_v6 = vadd.f32 %v2043_v40, %v1792_v39  ;;  %v5120_v39 = vld [vmem:[%s5494_s5 + $0x1] ss:$0 sm:$0xff] }
 0x8e4   :  { %v2045_v59 = vpop.f32.mrf.mxu0  ;;  %v3543_v16 = vpop.f32.mrf.mxu1  ;;  %v2107_v63 = vadd.f32 %v5120_v39, %v2084_v41 }
 0x8e5   :  { %v3133_v60 = vmul.f32 -1.442695, %v2093_v6  ;;  %v2100_v30 = vadd.f32 %v2045_v59, %v1793_v12  ;;  %v5125_v6 = vrot.slane %v3074_v29, %v5527_v0  ;;  %v1795_v29 = vadd.f32 %v5101_v54, %v5062_v21 }
 0x8e6   :  { %v2047_v50 = vpop.f32.mrf.mxu0  ;;  %v2087_v34 = vpop.f32.mrf.mxu1 }
 0x8e7   :  { %3902 = vpow2.f32 %v3133_v60  ;;  %v3134_v26 = vmul.f32 -1.442695, %v2100_v30  ;;  %v1794_v30 = vadd.f32 %v5125_v6, %v1743_v47  ;;  %v2882_v47 = vld [vmem:[%s5495_s1 + $0x10] sm:$0xff] }
 0x8e8   :  { %v2048_v36 = vpop.f32.mrf.mxu0  ;;  %v3544_v35 = vpop.f32.mrf.mxu1  ;;  %2900 = vperm.xlu1 %3689, %v2882_v47  }
 0x8e9   :  { %3904 = vpow2.f32 %v3134_v26 }
 0x8f4   :  { %v3903_v62 = vpop.eup %3902 }
 0x8f5   :  { %v2097_v61 = vadd.f32 1.0, %v3903_v62 }
 0x8f6   :  { %v3905_v37 = vpop.eup %3904 }
 0x8f7   :  { %3906 = vrcp.f32 %v2097_v61  ;;  %v2104_v40 = vadd.f32 1.0, %v3905_v37 }
 0x8f9   :  { %3908 = vrcp.f32 %v2104_v40 }
 0x904   :  { %v3907_v35 = vpop.eup %3906 }
 0x905   :  { %v2108_v26 = vmul.f32 %v3907_v35, %v2107_v63 }
 0x906   :  { %v3909_v61 = vpop.eup %3908 }
 0x907   :  { %v2109_v12 = vadd.f32 %v2108_v26, %v1794_v30  ;;  %v2111_v36 = vsub.f32 1.0, %v3909_v61  ;;  %v2113_v60 = vmul.f32 0.0, %v3909_v61  ;;  %v1796_v30 = vadd.f32 %v5114_v18, %v5064_v31 }
 0x909   :  { %3910 = vtanh.f32 %v2109_v12 }
 0x916   :  { %v3911_v59 = vpop.eup %3910 }
 0x917   :  { %v2112_v16 = vmul.f32 %v3911_v59, %v2111_v36 }
 0x919   :  { %v5128_v50 = vadd.f32 %v2113_v60, %v2112_v16 }
 0x91b   :  { %v2116_v37 = vpack.c.bf16 %v5128_v50, %v5128_v50 }
 0x91d   :  { %2150 = vmatmul.mubr.bf16.vlgmr.msra.gmra.mxu0 %v2116_v37  ;;  %3562 = vmatmul.mubr.bf16.vlgmr.msra.gmra.mxu1 %v2116_v37 }
 0x91e   :  { %2226 = vmatpush1.bf16.msra.mxu0 %v4863_v38  ;;  %3566 = vmatpush3.bf16.msra.mxu1 %v4945_v53 }
 0x91f   :  { %2227 = vmatprep.subr.bf16.mxu0 %v4870_v13  ;;  %3567 = vmatprep.subr.bf16.mxu1 %v5511_v55 }
 0x920   :  { %2257 = vmatprep.mubr.bf16.mxu0 %v5512_v5  ;;  %3581 = vmatprep.mubr.msk.bf16.mxu1 %vm4031_vm0, %v5511_v55 }
 0x922   :  { %2228 = vmatpush1.bf16.msra.mxu0 %v4875_v3  ;;  %3568 = vmatpush3.bf16.msra.mxu1 %v4961_v4 }
 0x923   :  { %2229 = vmatprep.subr.bf16.mxu0 %v4882_v2  ;;  %3569 = vmatprep.subr.bf16.mxu1 %v5511_v55 }
 0x926   :  { %2230 = vmatpush1.bf16.msra.mxu0 %v4887_v25  ;;  %3570 = vmatpush3.bf16.msra.mxu1 %v4968_v57 }
 0x927   :  { %2231 = vmatprep.subr.bf16.mxu0 %v4894_v52  ;;  %3571 = vmatprep.subr.bf16.mxu1 %v5511_v55 }
 0x92a   :  { %2232 = vmatpush1.bf16.msra.mxu0 %v4899_v43  ;;  %3572 = vmatpush3.bf16.msra.mxu1 %v4978_v42 }
 0x92b   :  { %2233 = vmatprep.subr.bf16.mxu0 %v4906_v28  ;;  %3573 = vmatprep.subr.bf16.mxu1 %v5511_v55 }
 0x92e   :  { %2234 = vmatpush1.bf16.msra.mxu0 %v4911_v24  ;;  %3574 = vmatpush3.bf16.msra.mxu1 %v4985_v1 }
 0x92f   :  { %2235 = vmatprep.subr.bf16.mxu0 %v4918_v9  ;;  %3575 = vmatprep.subr.bf16.mxu1 %v5511_v55 }
 0x932   :  { %2236 = vmatpush1.bf16.msra.mxu0 %v4923_v58  ;;  %3576 = vmatpush3.bf16.msra.mxu1 %v4992_v46 }
 0x933   :  { %2237 = vmatprep.subr.bf16.mxu0 %v4930_v7  ;;  %3577 = vmatprep.subr.bf16.mxu1 %v5511_v55 }
 0x936   :  { %2238 = vmatpush1.bf16.msra.mxu0 %v4935_v19  ;;  %3578 = vmatpush3.bf16.msra.mxu1 %v4999_v44 }
 0x937   :  { %2239 = vmatprep.subr.bf16.mxu0 %v4940_v14  ;;  %3579 = vmatprep.subr.bf16.mxu1 %v5511_v55 }
 0x93a   :  { %2240 = vmatpush1.bf16.msra.mxu0 %v4953_v23  ;;  %3580 = vmatpush3.bf16.msra.mxu1 %v5006_v45 }
 0x93b   :  { %2333 = vmatprep.subr.bf16.mxu0 %v4858_v56  ;;  %3585 = vmatprep.subr.bf16.mxu1 %v5511_v55 }
 0x9dd   :  { %v2151_v33 = vpop.f32.mrf.mxu0  ;;  %v2192_v41 = vpop.f32.mrf.mxu1 }
 0x9de   :  { %v2201_v34 = vadd.f32 %v2151_v33, %v1795_v29  ;;  %v2215_v37 = vadd.f32 %v5120_v39, %v2192_v41  ;;  %v1797_v29 = vadd.f32 %v5125_v6, %v5084_v48  ;;  %v2883_v48 = vld [vmem:[%s5495_s1 + $0x18] sm:$0xff]  ;;  %v1798_v41 = vadd.f32 %v5101_v54, %v5066_v8 }
 0x9df   :  { %v2153_v62 = vpop.f32.mrf.mxu0  ;;  %v3563_v40 = vpop.f32.mrf.mxu1  ;;  %2905 = vperm.xlu1 %3689, %v2883_v48  }
 0x9e0   :  { %v3135_v63 = vmul.f32 -1.442695, %v2201_v34  ;;  %v2208_v61 = vadd.f32 %v2153_v62, %v1796_v30 }
 0x9e1   :  { %v2155_v0 = vpop.f32.mrf.mxu0  ;;  %v2195_v35 = vpop.f32.mrf.mxu1 }
 0x9e2   :  { %3912 = vpow2.f32 %v3135_v63  ;;  %v3136_v36 = vmul.f32 -1.442695, %v2208_v61 }
 0x9e3   :  { %v2156_v26 = vpop.f32.mrf.mxu0  ;;  %v3564_v12 = vpop.f32.mrf.mxu1 }
 0x9e4   :  { %3914 = vpow2.f32 %v3136_v36 }
 0x9ef   :  { %v3913_v59 = vpop.eup %3912 }
 0x9f0   :  { %v2205_v16 = vadd.f32 1.0, %v3913_v59 }
 0x9f1   :  { %v3915_v21 = vpop.eup %3914 }
 0x9f2   :  { %3916 = vrcp.f32 %v2205_v16  ;;  %v2212_v60 = vadd.f32 1.0, %v3915_v21 }
 0x9f4   :  { %3918 = vrcp.f32 %v2212_v60 }
 0x9ff   :  { %v3917_v47 = vpop.eup %3916 }
 0xa00   :  { %v2216_v33 = vmul.f32 %v3917_v47, %v2215_v37  ;;  %v1799_v37 = vadd.f32 %v5114_v18, %v5068_v20 }
 0xa01   :  { %v3919_v34 = vpop.eup %3918 }
 0xa02   :  { %v2217_v31 = vadd.f32 %v2216_v33, %v1797_v29  ;;  %v2219_v40 = vsub.f32 1.0, %v3919_v34  ;;  %v2221_v0 = vmul.f32 %v3919_v34, %v5128_v50 }
 0xa04   :  { %3920 = vtanh.f32 %v2217_v31 }
 0xa11   :  { %v3921_v62 = vpop.eup %3920 }
 0xa12   :  { %v2220_v63 = vmul.f32 %v3921_v62, %v2219_v40 }
 0xa14   :  { %v5178_v35 = vadd.f32 %v2221_v0, %v2220_v63 }
 0xa16   :  { %v2224_v30 = vpack.c.bf16 %v5178_v35, %v5178_v35 }
 0xa18   :  { %2258 = vmatmul.mubr.bf16.vlgmr.msra.gmra.mxu0 %v2224_v30  ;;  %3582 = vmatmul.mubr.bf16.vlgmr.msra.gmra.mxu1 %v2224_v30  ;;  %v1800_v30 = vadd.f32 %v5074_v49, %v5125_v6  ;;  %v2884_v49 = vld [vmem:[%s5495_s1 + $0x20] sm:$0xff] }
 0xa19   :  { %2334 = vmatpush1.bf16.msra.mxu0 %v4863_v38  ;;  %3586 = vmatpush3.bf16.msra.mxu1 %v4945_v53 }
 0xa1a   :  { %2335 = vmatprep.subr.bf16.mxu0 %v4870_v13  ;;  %3587 = vmatprep.subr.bf16.mxu1 %v5511_v55 }
 0xa1b   :  { %2365 = vmatprep.mubr.bf16.mxu0 %v5512_v5  ;;  %3601 = vmatprep.mubr.msk.bf16.mxu1 %vm4031_vm0, %v5511_v55 }
 0xa1c   :  { %2910 = vperm.xlu0 %3688, %v2884_v49  }
 0xa1d   :  { %2336 = vmatpush1.bf16.msra.mxu0 %v4875_v3  ;;  %3588 = vmatpush3.bf16.msra.mxu1 %v4961_v4 }
 0xa1e   :  { %2337 = vmatprep.subr.bf16.mxu0 %v4882_v2  ;;  %3589 = vmatprep.subr.bf16.mxu1 %v5511_v55 }
 0xa21   :  { %2338 = vmatpush1.bf16.msra.mxu0 %v4887_v25  ;;  %3590 = vmatpush3.bf16.msra.mxu1 %v4968_v57 }
 0xa22   :  { %2339 = vmatprep.subr.bf16.mxu0 %v4894_v52  ;;  %3591 = vmatprep.subr.bf16.mxu1 %v5511_v55 }
 0xa25   :  { %2340 = vmatpush1.bf16.msra.mxu0 %v4899_v43  ;;  %3592 = vmatpush3.bf16.msra.mxu1 %v4978_v42 }
 0xa26   :  { %2341 = vmatprep.subr.bf16.mxu0 %v4906_v28  ;;  %3593 = vmatprep.subr.bf16.mxu1 %v5511_v55 }
 0xa29   :  { %2342 = vmatpush1.bf16.msra.mxu0 %v4911_v24  ;;  %3594 = vmatpush3.bf16.msra.mxu1 %v4985_v1 }
 0xa2a   :  { %2343 = vmatprep.subr.bf16.mxu0 %v4918_v9  ;;  %3595 = vmatprep.subr.bf16.mxu1 %v5511_v55 }
 0xa2d   :  { %2344 = vmatpush1.bf16.msra.mxu0 %v4923_v58  ;;  %3596 = vmatpush3.bf16.msra.mxu1 %v4992_v46 }
 0xa2e   :  { %2345 = vmatprep.subr.bf16.mxu0 %v4930_v7  ;;  %3597 = vmatprep.subr.bf16.mxu1 %v5511_v55 }
 0xa31   :  { %2346 = vmatpush1.bf16.msra.mxu0 %v4935_v19  ;;  %3598 = vmatpush3.bf16.msra.mxu1 %v4999_v44 }
 0xa32   :  { %2347 = vmatprep.subr.bf16.mxu0 %v4940_v14  ;;  %3599 = vmatprep.subr.bf16.mxu1 %v5511_v55 }
 0xa35   :  { %2348 = vmatpush1.bf16.msra.mxu0 %v4953_v23  ;;  %3600 = vmatpush3.bf16.msra.mxu1 %v5006_v45 }
 0xa36   :  { %2441 = vmatprep.subr.bf16.mxu0 %v4858_v56  ;;  %3605 = vmatprep.subr.bf16.mxu1 %v5511_v55 }
 0xad8   :  { %v2259_v26 = vpop.f32.mrf.mxu0  ;;  %v2300_v12 = vpop.f32.mrf.mxu1 }
 0xad9   :  { %v2309_v61 = vadd.f32 %v2259_v26, %v1798_v41  ;;  %v2323_v63 = vadd.f32 %v5120_v39, %v2300_v12  ;;  %v1801_v12 = vadd.f32 %v5101_v54, %v5070_v22 }
 0xada   :  { %v2261_v36 = vpop.f32.mrf.mxu0  ;;  %v3583_v59 = vpop.f32.mrf.mxu1 }
 0xadb   :  { %v3137_v16 = vmul.f32 -1.442695, %v2309_v61  ;;  %v2316_v33 = vadd.f32 %v2261_v36, %v1799_v37 }
 0xadc   :  { %v2263_v21 = vpop.f32.mrf.mxu0  ;;  %v2303_v60 = vpop.f32.mrf.mxu1 }
 0xadd   :  { %3922 = vpow2.f32 %v3137_v16  ;;  %v3138_v31 = vmul.f32 -1.442695, %v2316_v33 }
 0xade   :  { %v2264_v47 = vpop.f32.mrf.mxu0  ;;  %v3584_v29 = vpop.f32.mrf.mxu1 }
 0xadf   :  { %3924 = vpow2.f32 %v3138_v31 }
 0xaea   :  { %v3923_v34 = vpop.eup %3922 }
 0xaeb   :  { %v2313_v40 = vadd.f32 1.0, %v3923_v34 }
 0xaec   :  { %v3925_v8 = vpop.eup %3924 }
 0xaed   :  { %3926 = vrcp.f32 %v2313_v40  ;;  %v2320_v62 = vadd.f32 1.0, %v3925_v8  ;;  %v1802_v8 = vadd.f32 %v5114_v18, %v5072_v15 }
 0xaef   :  { %3928 = vrcp.f32 %v2320_v62 }
 0xafa   :  { %v3927_v0 = vpop.eup %3926 }
 0xafb   :  { %v2324_v48 = vmul.f32 %v3927_v0, %v2323_v63 }
 0xafc   :  { %v3929_v41 = vpop.eup %3928 }
 0xafd   :  { %v2325_v20 = vadd.f32 %v2324_v48, %v1800_v30  ;;  %v2327_v26 = vsub.f32 1.0, %v3929_v41  ;;  %v2329_v59 = vmul.f32 %v3929_v41, %v5178_v35 }
 0xaff   :  { %3930 = vtanh.f32 %v2325_v20 }
 0xb0c   :  { %v3931_v61 = vpop.eup %3930 }
 0xb0d   :  { %v2328_v36 = vmul.f32 %v3931_v61, %v2327_v26 }
 0xb0f   :  { %v5228_v16 = vadd.f32 %v2329_v59, %v2328_v36  ;;  %v1803_v36 = vadd.f32 %v5080_v17, %v5125_v6  ;;  %v2885_v17 = vld [vmem:[%s5495_s1 + $0x28] sm:$0xff] }
 0xb10   :  { %2915 = vperm.xlu1 %3689, %v2885_v17  }
 0xb11   :  { %v2332_v21 = vpack.c.bf16 %v5228_v16, %v5228_v16 }
 0xb13   :  { %2366 = vmatmul.mubr.bf16.vlgmr.msra.gmra.mxu0 %v2332_v21  ;;  %3602 = vmatmul.mubr.bf16.vlgmr.msra.gmra.mxu1 %v2332_v21 }
 0xb14   :  { %2442 = vmatpush1.bf16.msra.mxu0 %v4863_v38  ;;  %3606 = vmatpush3.bf16.msra.mxu1 %v4945_v53 }
 0xb15   :  { %2443 = vmatprep.subr.bf16.mxu0 %v4870_v13  ;;  %3607 = vmatprep.subr.bf16.mxu1 %v5511_v55 }
 0xb16   :  { %2473 = vmatprep.mubr.bf16.mxu0 %v5512_v5  ;;  %3621 = vmatprep.mubr.msk.bf16.mxu1 %vm4031_vm0, %v5511_v55 }
 0xb18   :  { %2444 = vmatpush1.bf16.msra.mxu0 %v4875_v3  ;;  %3608 = vmatpush3.bf16.msra.mxu1 %v4961_v4 }
 0xb19   :  { %2445 = vmatprep.subr.bf16.mxu0 %v4882_v2  ;;  %3609 = vmatprep.subr.bf16.mxu1 %v5511_v55 }
 0xb1c   :  { %2446 = vmatpush1.bf16.msra.mxu0 %v4887_v25  ;;  %3610 = vmatpush3.bf16.msra.mxu1 %v4968_v57 }
 0xb1d   :  { %2447 = vmatprep.subr.bf16.mxu0 %v4894_v52  ;;  %3611 = vmatprep.subr.bf16.mxu1 %v5511_v55 }
 0xb20   :  { %2448 = vmatpush1.bf16.msra.mxu0 %v4899_v43  ;;  %3612 = vmatpush3.bf16.msra.mxu1 %v4978_v42 }
 0xb21   :  { %2449 = vmatprep.subr.bf16.mxu0 %v4906_v28  ;;  %3613 = vmatprep.subr.bf16.mxu1 %v5511_v55 }
 0xb24   :  { %2450 = vmatpush1.bf16.msra.mxu0 %v4911_v24  ;;  %3614 = vmatpush3.bf16.msra.mxu1 %v4985_v1 }
 0xb25   :  { %2451 = vmatprep.subr.bf16.mxu0 %v4918_v9  ;;  %3615 = vmatprep.subr.bf16.mxu1 %v5511_v55 }
 0xb28   :  { %2452 = vmatpush1.bf16.msra.mxu0 %v4923_v58  ;;  %3616 = vmatpush3.bf16.msra.mxu1 %v4992_v46 }
 0xb29   :  { %2453 = vmatprep.subr.bf16.mxu0 %v4930_v7  ;;  %3617 = vmatprep.subr.bf16.mxu1 %v5511_v55 }
 0xb2c   :  { %2454 = vmatpush1.bf16.msra.mxu0 %v4935_v19  ;;  %3618 = vmatpush3.bf16.msra.mxu1 %v4999_v44 }
 0xb2d   :  { %2455 = vmatprep.subr.bf16.mxu0 %v4940_v14  ;;  %3619 = vmatprep.subr.bf16.mxu1 %v5511_v55 }
 0xb30   :  { %2456 = vmatpush1.bf16.msra.mxu0 %v4953_v23  ;;  %3620 = vmatpush3.bf16.msra.mxu1 %v5006_v45 }
 0xb31   :  { %2549 = vmatprep.subr.bf16.mxu0 %v4858_v56  ;;  %3625 = vmatprep.subr.bf16.mxu1 %v5511_v55 }
 0xbd3   :  { %v2367_v60 = vpop.f32.mrf.mxu0  ;;  %v2408_v37 = vpop.f32.mrf.mxu1 }
 0xbd4   :  { %v2417_v47 = vadd.f32 %v2367_v60, %v1801_v12  ;;  %v2431_v26 = vadd.f32 %v5120_v39, %v2408_v37  ;;  %v1804_v37 = vadd.f32 %v5101_v54, %v5076_v51 }
 0xbd5   :  { %v2369_v29 = vpop.f32.mrf.mxu0  ;;  %v3603_v33 = vpop.f32.mrf.mxu1 }
 0xbd6   :  { %v3139_v31 = vmul.f32 -1.442695, %v2417_v47  ;;  %v2424_v0 = vadd.f32 %v2369_v29, %v1802_v8 }
 0xbd7   :  { %v2371_v34 = vpop.f32.mrf.mxu0  ;;  %v2411_v40 = vpop.f32.mrf.mxu1 }
 0xbd8   :  { %3932 = vpow2.f32 %v3139_v31  ;;  %v3140_v30 = vmul.f32 -1.442695, %v2424_v0 }
 0xbd9   :  { %v2372_v62 = vpop.f32.mrf.mxu0  ;;  %v3604_v63 = vpop.f32.mrf.mxu1 }
 0xbda   :  { %3934 = vpow2.f32 %v3140_v30 }
 0xbe5   :  { %v3933_v48 = vpop.eup %3932 }
 0xbe6   :  { %v2421_v20 = vadd.f32 1.0, %v3933_v48 }
 0xbe7   :  { %v3935_v22 = vpop.eup %3934 }
 0xbe8   :  { %3936 = vrcp.f32 %v2421_v20  ;;  %v2428_v41 = vadd.f32 1.0, %v3935_v22 }
 0xbea   :  { %3938 = vrcp.f32 %v2428_v41 }
 0xbf5   :  { %v3937_v61 = vpop.eup %3936 }
 0xbf6   :  { %v2432_v59 = vmul.f32 %v3937_v61, %v2431_v26 }
 0xbf7   :  { %v3939_v21 = vpop.eup %3938 }
 0xbf8   :  { %v2433_v15 = vadd.f32 %v2432_v59, %v1803_v36  ;;  %v2435_v49 = vsub.f32 1.0, %v3939_v21  ;;  %v2437_v47 = vmul.f32 %v3939_v21, %v5228_v16  ;;  %v1806_v21 = vadd.f32 %v5125_v6, %v5097_v32 }
 0xbfa   :  { %3940 = vtanh.f32 %v2433_v15 }
 0xc07   :  { %v3941_v12 = vpop.eup %3940 }
 0xc08   :  { %v2436_v60 = vmul.f32 %v3941_v12, %v2435_v49 }
 0xc0a   :  { %v5278_v29 = vadd.f32 %v2437_v47, %v2436_v60 }
 0xc0c   :  { %v2440_v33 = vpack.c.bf16 %v5278_v29, %v5278_v29 }
 0xc0e   :  { %2474 = vmatmul.mubr.bf16.vlgmr.msra.gmra.mxu0 %v2440_v33  ;;  %3622 = vmatmul.mubr.bf16.vlgmr.msra.gmra.mxu1 %v2440_v33 }
 0xc0f   :  { %2550 = vmatpush1.bf16.msra.mxu0 %v4863_v38  ;;  %3626 = vmatpush3.bf16.msra.mxu1 %v4945_v53 }
 0xc10   :  { %2551 = vmatprep.subr.bf16.mxu0 %v4870_v13  ;;  %3627 = vmatprep.subr.bf16.mxu1 %v5511_v55 }
 0xc11   :  { %2581 = vmatprep.mubr.bf16.mxu0 %v5512_v5  ;;  %3641 = vmatprep.mubr.msk.bf16.mxu1 %vm4031_vm0, %v5511_v55 }
 0xc13   :  { %2552 = vmatpush1.bf16.msra.mxu0 %v4875_v3  ;;  %3628 = vmatpush3.bf16.msra.mxu1 %v4961_v4 }
 0xc14   :  { %2553 = vmatprep.subr.bf16.mxu0 %v4882_v2  ;;  %3629 = vmatprep.subr.bf16.mxu1 %v5511_v55 }
 0xc17   :  { %2554 = vmatpush1.bf16.msra.mxu0 %v4887_v25  ;;  %3630 = vmatpush3.bf16.msra.mxu1 %v4968_v57 }
 0xc18   :  { %2555 = vmatprep.subr.bf16.mxu0 %v4894_v52  ;;  %3631 = vmatprep.subr.bf16.mxu1 %v5511_v55 }
 0xc1b   :  { %2556 = vmatpush1.bf16.msra.mxu0 %v4899_v43  ;;  %3632 = vmatpush3.bf16.msra.mxu1 %v4978_v42 }
 0xc1c   :  { %2557 = vmatprep.subr.bf16.mxu0 %v4906_v28  ;;  %3633 = vmatprep.subr.bf16.mxu1 %v5511_v55 }
 0xc1f   :  { %2558 = vmatpush1.bf16.msra.mxu0 %v4911_v24  ;;  %3634 = vmatpush3.bf16.msra.mxu1 %v4985_v1 }
 0xc20   :  { %2559 = vmatprep.subr.bf16.mxu0 %v4918_v9  ;;  %3635 = vmatprep.subr.bf16.mxu1 %v5511_v55 }
 0xc23   :  { %2560 = vmatpush1.bf16.msra.mxu0 %v4923_v58  ;;  %3636 = vmatpush3.bf16.msra.mxu1 %v4992_v46 }
 0xc24   :  { %2561 = vmatprep.subr.bf16.mxu0 %v4930_v7  ;;  %3637 = vmatprep.subr.bf16.mxu1 %v5511_v55 }
 0xc27   :  { %2562 = vmatpush1.bf16.msra.mxu0 %v4935_v19  ;;  %3638 = vmatpush3.bf16.msra.mxu1 %v4999_v44 }
 0xc28   :  { %2563 = vmatprep.subr.bf16.mxu0 %v4940_v14  ;;  %3639 = vmatprep.subr.bf16.mxu1 %v5511_v55 }
 0xc2b   :  { %2564 = vmatpush1.bf16.msra.mxu0 %v4953_v23  ;;  %3640 = vmatpush3.bf16.msra.mxu1 %v5006_v45 }
 0xc2c   :  { %2657 = vmatprep.subr.bf16.mxu0 %v4858_v56  ;;  %3645 = vmatprep.subr.bf16.mxu1 %v5511_v55  ;;  %v1805_v56 = vadd.f32 %v5114_v18, %v5078_v10 }
 0xcce   :  { %v2475_v31 = vpop.f32.mrf.mxu0  ;;  %v2516_v34 = vpop.f32.mrf.mxu1 }
 0xccf   :  { %v2525_v40 = vadd.f32 %v2475_v31, %v1804_v37  ;;  %v2539_v59 = vadd.f32 %v5120_v39, %v2516_v34 }
 0xcd0   :  { %v2477_v8 = vpop.f32.mrf.mxu0  ;;  %v3623_v62 = vpop.f32.mrf.mxu1 }
 0xcd1   :  { %v3141_v63 = vmul.f32 -1.442695, %v2525_v40  ;;  %v2532_v22 = vadd.f32 %v2477_v8, %v1805_v56  ;;  %v4006_v56 = vld [vmem:[%s5492_s3 + $0x168] ss:$12 sps:$4 sm:$0xff]  }
 0xcd2   :  { %v2479_v0 = vpop.f32.mrf.mxu0  ;;  %v2519_v30 = vpop.f32.mrf.mxu1 }
 0xcd3   :  { %3942 = vpow2.f32 %v3141_v63  ;;  %v3142_v41 = vmul.f32 -1.442695, %v2532_v22  ;;  %v4009_v22 = vld [vmem:[%s5492_s3 + $0x150] ss:$12 sps:$4 sm:$0xff]  }
 0xcd4   :  { %v2480_v48 = vpop.f32.mrf.mxu0  ;;  %v3624_v20 = vpop.f32.mrf.mxu1 }
 0xcd5   :  { %3944 = vpow2.f32 %v3142_v41  ;;  %v4007_v48 = vld [vmem:[%s5492_s3 + $0x170] ss:$12 sps:$4 sm:$0xff]   ;;  %v4008_v20 = vld [vmem:[%s5492_s3 + $0x154] ss:$12 sps:$4 sm:$0xff]   ;;  %v4010_v41 = vld [vmem:[%s5492_s3 + $0x158] ss:$12 sps:$4 sm:$0xff]  }
 0xce0   :  { %v3943_v26 = vpop.eup %3942 }
 0xce1   :  { %v2529_v61 = vadd.f32 1.0, %v3943_v26  ;;  %v4011_v26 = vld [vmem:[%s5492_s3 + $0x13c] ss:$12 sps:$4 sm:$0xff]  }
 0xce2   :  { %v3945_v51 = vpop.eup %3944 }
 0xce3   :  { %3946 = vrcp.f32 %v2529_v61  ;;  %v2536_v36 = vadd.f32 1.0, %v3945_v51  ;;  %v4013_v61 = vld [vmem:[%s5492_s3 + $0x140] ss:$12 sps:$4 sm:$0xff]   ;;  %v4014_v51 = vld [vmem:[%s5492_s3 + $0x124] ss:$12 sps:$4 sm:$0xff]  }
 0xce5   :  { %3948 = vrcp.f32 %v2536_v36  ;;  %v4015_v36 = vld [vmem:[%s5492_s3 + $0x120] ss:$12 sps:$4 sm:$0xff]  }
 0xcf0   :  { %v3947_v15 = vpop.eup %3946 }
 0xcf1   :  { %v2540_v49 = vmul.f32 %v3947_v15, %v2539_v59  ;;  %v4016_v59 = vld [vmem:[%s5492_s3 + $0x128] ss:$12 sps:$4 sm:$0xff]   ;;  %v4017_v15 = vld [vmem:[%s5492_s3 + $0x10c] ss:$12 sps:$4 sm:$0xff]  }
 0xcf2   :  { %v3949_v12 = vpop.eup %3948 }
 0xcf3   :  { %v2541_v10 = vadd.f32 %v2540_v49, %v1806_v21  ;;  %v2543_v60 = vsub.f32 1.0, %v3949_v12  ;;  %v2545_v17 = vmul.f32 %v3949_v12, %v5278_v29  ;;  %v4018_v21 = vld [vmem:[%s5492_s3 + $0x108] ss:$12 sps:$4 sm:$0xff]   ;;  %v4019_v49 = vld [vmem:[%s5492_s3 + $0x110] ss:$12 sps:$4 sm:$0xff]  }
 0xcf4   :  { %v4021_v12 = vld [vmem:[%s5492_s3 + $0xf0] ss:$12 sps:$4 sm:$0xff]  }
 0xcf5   :  { %3950 = vtanh.f32 %v2541_v10  ;;  %v4020_v10 = vld [vmem:[%s5492_s3 + $0xf4] ss:$12 sps:$4 sm:$0xff]  }
 0xd02   :  { %v3951_v47 = vpop.eup %3950 }
 0xd03   :  { %v2544_v33 = vmul.f32 %v3951_v47, %v2543_v60  ;;  %v4022_v60 = vld [vmem:[%s5492_s3 + $0xf8] ss:$12 sps:$4 sm:$0xff]   ;;  %v4023_v47 = vld [vmem:[%s5492_s3 + $0xdc] ss:$12 sps:$4 sm:$0xff]  }
 0xd05   :  { %v5328_v37 = vadd.f32 %v2545_v17, %v2544_v33  ;;  %v4024_v33 = vld [vmem:[%s5492_s3 + $0xd8] ss:$12 sps:$4 sm:$0xff]   ;;  %v4025_v17 = vld [vmem:[%s5492_s3 + $0xe0] ss:$12 sps:$4 sm:$0xff]  }
 0xd07   :  { %v2548_v31 = vpack.c.bf16 %v5328_v37, %v5328_v37 }
 0xd09   :  { %2582 = vmatmul.mubr.bf16.vlgmr.msra.gmra.mxu0 %v2548_v31  ;;  %3642 = vmatmul.mubr.bf16.vlgmr.msra.gmra.mxu1 %v2548_v31  ;;  %v4026_v31 = vld [vmem:[%s5492_s3 + $0xc4] ss:$12 sps:$4 sm:$0xff]  }
 0xd0a   :  { %2658 = vmatpush1.bf16.msra.mxu0 %v4863_v38  ;;  %3646 = vmatpush3.bf16.msra.mxu1 %v4945_v53  ;;  %v4005_v38 = vld [vmem:[%s5492_s3 + $0x16c] ss:$12 sps:$4 sm:$0xff]  }
 0xd0b   :  { %2659 = vmatprep.subr.bf16.mxu0 %v4870_v13  ;;  %3647 = vmatprep.subr.bf16.mxu1 %v5511_v55  ;;  %v2886_v13 = vld [vmem:[%s5495_s1 + $0x30] sm:$0xff] }
 0xd0c   :  { %2689 = vmatprep.mubr.bf16.mxu0 %v5512_v5  ;;  %3661 = vmatprep.mubr.msk.bf16.mxu1 %vm4031_vm0, %v5511_v55 }
 0xd0d   :  { %2920 = vperm.xlu0 %3688, %v2886_v13   ;;  %v4028_v13 = vld [vmem:[%s5492_s3 + $0xc8] ss:$12 sps:$4 sm:$0xff]  }
 0xd0e   :  { %2660 = vmatpush1.bf16.msra.mxu0 %v4875_v3  ;;  %3648 = vmatpush3.bf16.msra.mxu1 %v4961_v4  ;;  %v1807_v3 = vadd.f32 %v5101_v54, %v5082_v11 }
 0xd0f   :  { %2661 = vmatprep.subr.bf16.mxu0 %v4882_v2  ;;  %3649 = vmatprep.subr.bf16.mxu1 %v5511_v55 }
 0xd12   :  { %2662 = vmatpush1.bf16.msra.mxu0 %v4887_v25  ;;  %3650 = vmatpush3.bf16.msra.mxu1 %v4968_v57 }
 0xd13   :  { %2663 = vmatprep.subr.bf16.mxu0 %v4894_v52  ;;  %3651 = vmatprep.subr.bf16.mxu1 %v5511_v55 }
 0xd16   :  { %2664 = vmatpush1.bf16.msra.mxu0 %v4899_v43  ;;  %3652 = vmatpush3.bf16.msra.mxu1 %v4978_v42 }
 0xd17   :  { %2665 = vmatprep.subr.bf16.mxu0 %v4906_v28  ;;  %3653 = vmatprep.subr.bf16.mxu1 %v5511_v55 }
 0xd1a   :  { %2666 = vmatpush1.bf16.msra.mxu0 %v4911_v24  ;;  %3654 = vmatpush3.bf16.msra.mxu1 %v4985_v1 }
 0xd1b   :  { %2667 = vmatprep.subr.bf16.mxu0 %v4918_v9  ;;  %3655 = vmatprep.subr.bf16.mxu1 %v5511_v55 }
 0xd1e   :  { %2668 = vmatpush1.bf16.msra.mxu0 %v4923_v58  ;;  %3656 = vmatpush3.bf16.msra.mxu1 %v4992_v46 }
 0xd1f   :  { %2669 = vmatprep.subr.bf16.mxu0 %v4930_v7  ;;  %3657 = vmatprep.subr.bf16.mxu1 %v5511_v55  ;;  %v1808_v7 = vadd.f32 %v5114_v18, %v5086_v27 }
 0xd22   :  { %2670 = vmatpush1.bf16.msra.mxu0 %v4935_v19  ;;  %3658 = vmatpush3.bf16.msra.mxu1 %v4999_v44 }
 0xd23   :  { %2671 = vmatprep.subr.bf16.mxu0 %v4940_v14  ;;  %3659 = vmatprep.subr.bf16.mxu1 %v5511_v55 }
 0xd26   :  { %2672 = vmatpush1.bf16.msra.mxu0 %v4953_v23  ;;  %3660 = vmatpush3.bf16.msra.mxu1 %v5006_v45  ;;  %v5528_v45 = vld [vmem:[#allocation10_spill] sm:$0xff] }
 0xd27   :  { %2765 = vmatprep.subr.bf16.mxu0 %v4005_v38  ;;  %3665 = vmatprep.subr.bf16.mxu1 %v5511_v55  ;;  %v1809_v11 = vadd.f32 %v5125_v6, %v5528_v45  ;;  %v4027_v38 = vld [vmem:[%s5492_s3 + $0xc0] ss:$12 sps:$4 sm:$0xff]  }
 0xdc9   :  { %v2583_v2 = vpop.f32.mrf.mxu0  ;;  %v2624_v25 = vpop.f32.mrf.mxu1 }
 0xdca   :  { %v2633_v52 = vadd.f32 %v2583_v2, %v1807_v3  ;;  %v2647_v46 = vadd.f32 %v5120_v39, %v2624_v25  ;;  %v2887_v3 = vld [vmem:[%s5495_s1 + $0x38] sm:$0xff] }
 0xdcb   :  { %v2585_v43 = vpop.f32.mrf.mxu0  ;;  %v3643_v28 = vpop.f32.mrf.mxu1  ;;  %2925 = vperm.xlu1 %3689, %v2887_v3   ;;  %v5529_v2 = vld [vmem:[#allocation7_spill] sm:$0xff] }
 0xdcc   :  { %v3143_v24 = vmul.f32 -1.442695, %v2633_v52  ;;  %v2640_v53 = vadd.f32 %v2585_v43, %v1808_v7  ;;  %v1810_v25 = vadd.f32 %v5101_v54, %v5529_v2  ;;  %v5534_v2 = vld [vmem:[#allocation4_spill] sm:$0xff] }
 0xdcd   :  { %v2587_v9 = vpop.f32.mrf.mxu0  ;;  %v2627_v58 = vpop.f32.mrf.mxu1 }
 0xdce   :  { %3952 = vpow2.f32 %v3143_v24  ;;  %v3144_v23 = vmul.f32 -1.442695, %v2640_v53 }
 0xdcf   :  { %v2588_v19 = vpop.f32.mrf.mxu0  ;;  %v3644_v14 = vpop.f32.mrf.mxu1 }
 0xdd0   :  { %3954 = vpow2.f32 %v3144_v23  ;;  %v5530_v19 = vld [vmem:[#allocation8_spill] sm:$0xff] }
 0xdd1   :  { %v1811_v14 = vadd.f32 %v5114_v18, %v5530_v19 }
 0xddb   :  { %v3953_v4 = vpop.eup %3952 }
 0xddc   :  { %v2637_v57 = vadd.f32 1.0, %v3953_v4 }
 0xddd   :  { %v3955_v42 = vpop.eup %3954 }
 0xdde   :  { %3956 = vrcp.f32 %v2637_v57  ;;  %v2644_v1 = vadd.f32 1.0, %v3955_v42 }
 0xde0   :  { %3958 = vrcp.f32 %v2644_v1 }
 0xdeb   :  { %v3957_v44 = vpop.eup %3956 }
 0xdec   :  { %v2648_v32 = vmul.f32 %v3957_v44, %v2647_v46 }
 0xded   :  { %v3959_v34 = vpop.eup %3958 }
 0xdee   :  { %v2649_v27 = vadd.f32 %v2648_v32, %v1809_v11  ;;  %v2651_v40 = vsub.f32 1.0, %v3959_v34  ;;  %v2653_v63 = vmul.f32 %v3959_v34, %v5328_v37  ;;  %v5531_v32 = vld [vmem:[#allocation5_spill] sm:$0xff] }
 0xdf0   :  { %3960 = vtanh.f32 %v2649_v27  ;;  %v1812_v27 = vadd.f32 %v5531_v32, %v5125_v6 }
 0xdfd   :  { %v3961_v8 = vpop.eup %3960 }
 0xdfe   :  { %v2652_v62 = vmul.f32 %v3961_v8, %v2651_v40 }
 0xe00   :  { %v5380_v0 = vadd.f32 %v2653_v63, %v2652_v62 }
 0xe02   :  { %v2656_v30 = vpack.c.bf16 %v5380_v0, %v5380_v0 }
 0xe04   :  { %2690 = vmatmul.mubr.bf16.vlgmr.msra.gmra.mxu0 %v2656_v30  ;;  %3662 = vmatmul.mubr.bf16.vlgmr.msra.gmra.mxu1 %v2656_v30 }
 0xe05   :  { %2766 = vmatpush1.bf16.msra.mxu0 %v4006_v56  ;;  %3666 = vmatpush3.bf16.msra.mxu1 %v4007_v48 }
 0xe06   :  { %2767 = vmatprep.subr.bf16.mxu0 %v4008_v20  ;;  %3667 = vmatprep.subr.bf16.mxu1 %v5511_v55 }
 0xe07   :  { %2797 = vmatprep.mubr.bf16.mxu0 %v5512_v5  ;;  %3681 = vmatprep.mubr.msk.bf16.mxu1 %vm4031_vm0, %v5511_v55  ;;  %v4012_v5 = vld [vmem:[%s5492_s3 + $0x138] ss:$12 sps:$4 sm:$0xff]  }
 0xe09   :  { %2768 = vmatpush1.bf16.msra.mxu0 %v4009_v22  ;;  %3668 = vmatpush3.bf16.msra.mxu1 %v4010_v41  ;;  %v5532_v22 = vld [vmem:[#allocation6_spill] sm:$0xff] }
 0xe0a   :  { %2769 = vmatprep.subr.bf16.mxu0 %v4011_v26  ;;  %3669 = vmatprep.subr.bf16.mxu1 %v5511_v55  ;;  %v1813_v41 = vadd.f32 %v5101_v54, %v5532_v22 }
 0xe0d   :  { %2770 = vmatpush1.bf16.msra.mxu0 %v4012_v5  ;;  %3670 = vmatpush3.bf16.msra.mxu1 %v4013_v61 }
 0xe0e   :  { %2771 = vmatprep.subr.bf16.mxu0 %v4014_v51  ;;  %3671 = vmatprep.subr.bf16.mxu1 %v5511_v55 }
 0xe11   :  { %2772 = vmatpush1.bf16.msra.mxu0 %v4015_v36  ;;  %3672 = vmatpush3.bf16.msra.mxu1 %v4016_v59 }
 0xe12   :  { %2773 = vmatprep.subr.bf16.mxu0 %v4017_v15  ;;  %3673 = vmatprep.subr.bf16.mxu1 %v5511_v55 }
 0xe15   :  { %2774 = vmatpush1.bf16.msra.mxu0 %v4018_v21  ;;  %3674 = vmatpush3.bf16.msra.mxu1 %v4019_v49  ;;  %v5533_v49 = vld [vmem:[#allocation9_spill] sm:$0xff] }
 0xe16   :  { %2775 = vmatprep.subr.bf16.mxu0 %v4020_v10  ;;  %3675 = vmatprep.subr.bf16.mxu1 %v5511_v55  ;;  %v1814_v10 = vadd.f32 %v5114_v18, %v5533_v49  ;;  %v2891_v18 = vpop.permute.xlu0 %2890 }
 0xe19   :  { %2776 = vmatpush1.bf16.msra.mxu0 %v4021_v12  ;;  %3676 = vmatpush3.bf16.msra.mxu1 %v4022_v60 }
 0xe1a   :  { %2777 = vmatprep.subr.bf16.mxu0 %v4023_v47  ;;  %3677 = vmatprep.subr.bf16.mxu1 %v5511_v55 }
 0xe1d   :  { %2778 = vmatpush1.bf16.msra.mxu0 %v4024_v33  ;;  %3678 = vmatpush3.bf16.msra.mxu1 %v4025_v17 }
 0xe1e   :  { %2779 = vmatprep.subr.bf16.mxu0 %v4026_v31  ;;  %3679 = vmatprep.subr.bf16.mxu1 %v5511_v55 }
 0xe21   :  { %2780 = vmatpush1.bf16.msra.mxu0 %v4027_v38  ;;  %3680 = vmatpush3.bf16.msra.mxu1 %v4028_v13 }
 0xec4   :  { %v2691_v52 = vpop.f32.mrf.mxu0  ;;  %v2732_v55 = vpop.f32.mrf.mxu1 }
 0xec5   :  { %v2741_v43 = vadd.f32 %v2691_v52, %v1810_v25  ;;  %v2755_v45 = vadd.f32 %v5120_v39, %v2732_v55  ;;  %v1815_v25 = vadd.f32 %v5534_v2, %v5125_v6 }
 0xec6   :  { %v2693_v28 = vpop.f32.mrf.mxu0  ;;  %v3663_v24 = vpop.f32.mrf.mxu1 }
 0xec7   :  { %v3145_v9 = vmul.f32 -1.442695, %v2741_v43  ;;  %v2748_v4 = vadd.f32 %v2693_v28, %v1811_v14  ;;  %v2896_v43 = vpop.permute.xlu0 %2895  ;;  %v2901_v28 = vpop.permute.xlu1 %2900 }
 0xec8   :  { %v2695_v58 = vpop.f32.mrf.mxu0  ;;  %v2735_v7 = vpop.f32.mrf.mxu1  ;;  %v2929_v24 = vmul.f32 %v2896_v43, %v5178_v35 }
 0xec9   :  { %3962 = vpow2.f32 %v3145_v9  ;;  %v3146_v57 = vmul.f32 -1.442695, %v2748_v4  ;;  %v2928_v58 = vmul.f32 %v2891_v18, %v5128_v50  ;;  %v2930_v7 = vmul.f32 %v2901_v28, %v5228_v16 }
 0xeca   :  { %v2696_v53 = vpop.f32.mrf.mxu0  ;;  %v3664_v23 = vpop.f32.mrf.mxu1 }
 0xecb   :  { %3964 = vpow2.f32 %v3146_v57  ;;  %v2906_v9 = vpop.permute.xlu1 %2905  ;;  %v2911_v19 = vpop.permute.xlu0 %2910 }
 0xecc   :  { %v2931_v14 = vmul.f32 %v2906_v9, %v5278_v29  ;;  %v2932_v4 = vmul.f32 %v2911_v19, %v5328_v37 }
 0xecf   :  { %v2916_v6 = vpop.permute.xlu1 %2915  ;;  %v2921_v57 = vpop.permute.xlu0 %2920 }
 0xed6   :  { %v3963_v42 = vpop.eup %3962 }
 0xed7   :  { %v2745_v1 = vadd.f32 1.0, %v3963_v42 }
 0xed8   :  { %v3965_v46 = vpop.eup %3964 }
 0xed9   :  { %3966 = vrcp.f32 %v2745_v1  ;;  %v2752_v44 = vadd.f32 1.0, %v3965_v46  ;;  %v2933_v1 = vmul.f32 %v2916_v6, %v5380_v0 }
 0xedb   :  { %3968 = vrcp.f32 %v2752_v44 }
 0xee6   :  { %v3967_v11 = vpop.eup %3966 }
 0xee7   :  { %v2756_v34 = vmul.f32 %v3967_v11, %v2755_v45 }
 0xee8   :  { %v3969_v8 = vpop.eup %3968 }
 0xee9   :  { %v2757_v40 = vadd.f32 %v2756_v34, %v1812_v27  ;;  %v2759_v62 = vsub.f32 1.0, %v3969_v8  ;;  %v2761_v56 = vmul.f32 %v3969_v8, %v5380_v0  ;;  %v2926_v27 = vpop.permute.xlu1 %2925 }
 0xeeb   :  { %3970 = vtanh.f32 %v2757_v40 }
 0xef8   :  { %v3971_v63 = vpop.eup %3970 }
 0xef9   :  { %v2760_v30 = vmul.f32 %v3971_v63, %v2759_v62 }
 0xefb   :  { %v2762_v48 = vadd.f32 %v2761_v56, %v2760_v30 }
 0xefd   :  { %v2764_v20 = vpack.c.bf16 %v2762_v48, %v2762_v48  ;;  %v2934_v45 = vmul.f32 %v2921_v57, %v2762_v48 }
 0xeff   :  { %2798 = vmatmul.mubr.bf16.vlgmr.msra.gmra.mxu0 %v2764_v20  ;;  %3682 = vmatmul.mubr.bf16.vlgmr.msra.gmra.mxu1 %v2764_v20 }
 0xfbf   :  { %v2799_v26 = vpop.f32.mrf.mxu0  ;;  %v2840_v5 = vpop.f32.mrf.mxu1 }
 0xfc0   :  { %v2849_v61 = vadd.f32 %v2799_v26, %v1813_v41  ;;  %v2863_v13 = vadd.f32 %v5120_v39, %v2840_v5  ;;  %v2936_v39 = vadd.f32 %v2929_v24, %v2928_v58 }
 0xfc1   :  { %v2801_v51 = vpop.f32.mrf.mxu0  ;;  %v3683_v36 = vpop.f32.mrf.mxu1 }
 0xfc2   :  { %v3147_v59 = vmul.f32 -1.442695, %v2849_v61  ;;  %v2856_v47 = vadd.f32 %v2801_v51, %v1814_v10  ;;  %v2937_v23 = vadd.f32 %v2936_v39, %v2930_v7 }
 0xfc3   :  { %v2803_v15 = vpop.f32.mrf.mxu0  ;;  %v2843_v21 = vpop.f32.mrf.mxu1 }
 0xfc4   :  { %3972 = vpow2.f32 %v3147_v59  ;;  %v3148_v33 = vmul.f32 -1.442695, %v2856_v47  ;;  %v2938_v42 = vadd.f32 %v2937_v23, %v2931_v14 }
 0xfc5   :  { %v2804_v12 = vpop.f32.mrf.mxu0  ;;  %v3684_v60 = vpop.f32.mrf.mxu1 }
 0xfc6   :  { %3974 = vpow2.f32 %v3148_v33  ;;  %v2939_v44 = vadd.f32 %v2938_v42, %v2932_v4 }
 0xfc8   :  { %v2940_v16 = vadd.f32 %v2939_v44, %v2933_v1 }
 0xfca   :  { %v2941_v34 = vadd.f32 %v2940_v16, %v2934_v45 }
 0xfd1   :  { %v3973_v17 = vpop.eup %3972 }
 0xfd2   :  { %v2853_v31 = vadd.f32 1.0, %v3973_v17 }
 0xfd3   :  { %v3975_v54 = vpop.eup %3974 }
 0xfd4   :  { %3976 = vrcp.f32 %v2853_v31  ;;  %v2860_v38 = vadd.f32 1.0, %v3975_v54 }
 0xfd6   :  { %3978 = vrcp.f32 %v2860_v38 }
 0xfe1   :  { %v3977_v3 = vpop.eup %3976 }
 0xfe2   :  { %v2864_v52 = vmul.f32 %v3977_v3, %v2863_v13 }
 0xfe3   :  { %v3979_v53 = vpop.eup %3978 }
 0xfe4   :  { %v2865_v55 = vadd.f32 %v2864_v52, %v1815_v25  ;;  %v2867_v46 = vsub.f32 1.0, %v3979_v53  ;;  %v2869_v11 = vmul.f32 %v3979_v53, %v2762_v48 }
 0xfe6   :  { %3980 = vtanh.f32 %v2865_v55 }
 0xff3   :  { %v3981_v35 = vpop.eup %3980 }
 0xff4   :  { %v2868_v50 = vmul.f32 %v3981_v35, %v2867_v46 }
 0xff6   :  { %v2870_v32 = vadd.f32 %v2869_v11, %v2868_v50 }
 0xff8   :  { %v2935_v29 = vmul.f32 %v2926_v27, %v2870_v32 }
 0xffa   :  { %v2942_v40 = vadd.f32 %v2941_v34, %v2935_v29 }
 0xffc   :  { %v2943_v8 = vadd.f32 %v2942_v40, %v2870_v32 }
 0xffe   :  { %2944 = vst [vmem:[%s5496_s6] sm:$0xff] %v2943_v8 }

</bundles_post_ra>
